<compile_context>
chip_gen: v7x
topology: tpu7x:2x2x1
jax: 0.10.0
libtpu: 0.0.40
codegen_flags: <defaults>
</compile_context>

<pallas_src>
import functools
import math

import jax
import jax.numpy as jnp
from jax.experimental import pallas as pl
from jax.experimental.pallas import tpu as pltpu

# --- module hyper-parameters (from MultiSensorTeacher.__init__ defaults) -------------
SKEL_HIDDEN = 128          # == watch_inertial_hidden
NHEADS = 4                 # skeleton_heads == watch_inert_heads
FUSION_DIM = 256
NUM_CLASSES = 2
FFN_DIM = 2048             # nn.TransformerEncoderLayer default dim_feedforward
LN_EPS = 1e-5              # nn.TransformerEncoderLayer default layer_norm_eps
SKEL_IN_DIM = 1 + 96       # 97
INERT_IN_DIM = 8           # orientation_rep == 'quat'
IN_FEAT_PAD = 128          # zero-padded contraction dim for both input projections
HEAD_PAD = 128             # logits padded to a full lane tile inside the kernel
NEG_INF = -1e9
N_STREAMS = 2              # [0] = skeleton, [1] = inertial
N_LAYERS = 2               # encoder layers per stream
SLAB_ROWS = 1 + 8 * N_LAYERS   # b_in + 8 small params per layer


# ------------------------------ stream encoder kernel ----------------------------------
def _stream_encoder_kernel(B, S, x_ref, aux_ref, w_in_ref, w_qkv_ref, w_o_ref,
                           w_ff1_ref, w_ff2_ref, slab_ref, feat_ref):
    """One sensor stream: input projection + 2 transformer encoder layers + mean pool.

    Per-stream weights are already selected by the BlockSpec index_maps (grid axis 0).
    """
    D = SKEL_HIDDEN
    H = NHEADS
    hd = D // H
    M = B * S

    def mm(x, w):
        # bf16 MXU operands, f32 accumulation.
        return jnp.dot(x.astype(jnp.bfloat16), w, preferred_element_type=jnp.float32)

    def ln(x, g, b):
        mu = jnp.mean(x, axis=-1, keepdims=True)
        var = jnp.mean(jnp.square(x - mu), axis=-1, keepdims=True)
        return (x - mu) * jax.lax.rsqrt(var + LN_EPS) * g + b

    def srow(r, width):
        # static, lane-aligned slice of the packed small-parameter slab -> (1, width)
        return slab_ref[r:r + 1, 0:width]

    aux = aux_ref[...]                           # (2, B, S)
    # key-padding additive bias, broadcast hoisted out of the layer/head loops.
    # TODO(synk): a fully padded sequence yields a uniform softmax here instead of
    # PyTorch's NaNs / nested-tensor zeroing of fully padded rows.
    bias_b = aux[0][:, None, :]                  # (B, 1, S)
    pool = aux[1]                                # (B, S) mean-pool weights (1/S_orig)

    # --- input projection (batch*seq folded into M; feature dim pre-padded to 128) ---
    x = mm(x_ref[...], w_in_ref[...]) + srow(0, D)          # (M, D) f32

    for l in range(N_LAYERS):                    # unrolled: keeps ILP visible
        base = 1 + 8 * l
        # --- multi-head self-attention (1/sqrt(hd) already folded into Q weights) ---
        qkv = mm(x, w_qkv_ref[l]) + srow(base + 0, 3 * D)   # (M, 3D)
        qkv = qkv.reshape(B, S, 3 * D)
        heads = []
        for h in range(H):                       # per-head 3-D dots, single batch dim
            q = qkv[:, :, h * hd:(h + 1) * hd]
            k = qkv[:, :, D + h * hd:D + (h + 1) * hd]
            v = qkv[:, :, 2 * D + h * hd:2 * D + (h + 1) * hd]
            s = jax.lax.dot_general(q, k, (((2,), (2,)), ((0,), (0,))),
                                    preferred_element_type=jnp.float32)   # (B, S, S)
            s = s + bias_b
            s = s - jnp.max(s, axis=-1, keepdims=True)
            p = jnp.exp(s)
            p = p / jnp.sum(p, axis=-1, keepdims=True)       # exact divide (parity)
            heads.append(jax.lax.dot_general(p, v, (((2,), (1,)), ((0,), (0,))),
                                             preferred_element_type=jnp.float32))
        attn = jnp.concatenate(heads, axis=-1).reshape(M, D)
        attn = mm(attn, w_o_ref[l]) + srow(base + 1, D)

        # --- residual + LayerNorm 1 (post-norm, PyTorch default norm_first=False) ---
        y = ln(x + attn, srow(base + 2, D), srow(base + 3, D))

        # --- ReLU feed-forward (dropout == identity at inference) ---
        ff = jnp.maximum(mm(y, w_ff1_ref[l]) + srow(base + 4, FFN_DIM), 0.0)
        ff = mm(ff, w_ff2_ref[l]) + srow(base + 5, D)

        # --- residual + LayerNorm 2 ---
        x = ln(y + ff, srow(base + 6, D), srow(base + 7, D))

    # mean over the stream's real sequence positions (== PyTorch .mean(dim=1);
    # artificial seq padding beyond the real length gets zero pooling weight).
    feat = jnp.sum(x.reshape(B, S, D) * pool[:, :, None], axis=1)   # (B, D)
    feat_ref[...] = feat.astype(feat_ref.dtype)


# --------------------------------- fuse + head kernel -----------------------------------
def _fuse_head_kernel(feats_ref, w_fuse_ref, w_head_ref, b_ref, out_ref):
    f = feats_ref[...]                                       # (2, B, 128)
    cat = jnp.concatenate([f[0], f[1]], axis=-1)             # (B, 256)
    fused = (jnp.dot(cat.astype(jnp.bfloat16), w_fuse_ref[...],
                     preferred_element_type=jnp.float32)
             + b_ref[0:1, 0:FUSION_DIM])                     # (B, 256)
    logits = (jnp.dot(fused.astype(jnp.bfloat16), w_head_ref[...],
                      preferred_element_type=jnp.float32)
              + b_ref[0:1, FUSION_DIM:FUSION_DIM + HEAD_PAD])  # (B, 128) padded
    out_ref[:, 0:FUSION_DIM] = fused.astype(out_ref.dtype)
    out_ref[:, FUSION_DIM:FUSION_DIM + HEAD_PAD] = logits.astype(out_ref.dtype)


# ------------------------------ parameter construction ---------------------------------
def init_params(key):
    def dense(k, fan_in, fan_out):
        kw, kb = jax.random.split(k)
        lim = 1.0 / math.sqrt(fan_in)
        w = jax.random.uniform(kw, (fan_in, fan_out), jnp.float32, -lim, lim)
        b = jax.random.uniform(kb, (fan_out,), jnp.float32, -lim, lim)
        return w, b

    k_sk, k_in, k_layers, k_fuse, k_head = jax.random.split(key, 5)
    scale = 1.0 / math.sqrt(SKEL_HIDDEN // NHEADS)

    # input projections; contraction dim zero-padded to 128 (zero rows == no-op)
    w_sk, b_sk = dense(k_sk, SKEL_IN_DIM, SKEL_HIDDEN)
    w_sk = jnp.pad(w_sk, ((0, IN_FEAT_PAD - SKEL_IN_DIM), (0, 0)))
    w_ii, b_ii = dense(k_in, INERT_IN_DIM, SKEL_HIDDEN)
    w_ii = jnp.pad(w_ii, ((0, IN_FEAT_PAD - INERT_IN_DIM), (0, 0)))

    def enc_layer(k):
        ks = jax.random.split(k, 4)
        w_qkv, b_qkv = dense(ks[0], SKEL_HIDDEN, 3 * SKEL_HIDDEN)   # [q|k|v] columns
        # fold the 1/sqrt(head_dim) attention scale into the Q projection (host-side)
        w_qkv = jnp.concatenate([w_qkv[:, :SKEL_HIDDEN] * scale,
                                 w_qkv[:, SKEL_HIDDEN:]], axis=1)
        b_qkv = jnp.concatenate([b_qkv[:SKEL_HIDDEN] * scale, b_qkv[SKEL_HIDDEN:]])
        w_o, b_o = dense(ks[1], SKEL_HIDDEN, SKEL_HIDDEN)
        w1, b1 = dense(ks[2], SKEL_HIDDEN, FFN_DIM)
        w2, b2 = dense(ks[3], FFN_DIM, SKEL_HIDDEN)
        return dict(w_qkv=w_qkv, b_qkv=b_qkv, w_o=w_o, b_o=b_o, w1=w1, b1=b1,
                    w2=w2, b2=b2,
                    ln1_g=jnp.ones((SKEL_HIDDEN,), jnp.float32),
                    ln1_b=jnp.zeros((SKEL_HIDDEN,), jnp.float32),
                    ln2_g=jnp.ones((SKEL_HIDDEN,), jnp.float32),
                    ln2_b=jnp.zeros((SKEL_HIDDEN,), jnp.float32))

    lkeys = jax.random.split(k_layers, N_STREAMS * N_LAYERS)
    # stream 0 = skeleton encoder layers, stream 1 = inertial encoder layers
    layers = [[enc_layer(lkeys[s * N_LAYERS + l]) for l in range(N_LAYERS)]
              for s in range(N_STREAMS)]

    def stack_w(name):
        return jnp.stack([jnp.stack([layers[s][l][name] for l in range(N_LAYERS)])
                          for s in range(N_STREAMS)])

    # pack every small f32 parameter into one (stream, row, 2048) slab -> single DMA.
    def row(v):
        v = v.reshape(1, -1)
        return jnp.pad(v, ((0, 0), (0, FFN_DIM - v.shape[1])))

    def slab_stream(s, b_in_vec):
        rows = [row(b_in_vec)]
        for l in range(N_LAYERS):
            la = layers[s][l]
            rows += [row(la['b_qkv']), row(la['b_o']), row(la['ln1_g']), row(la['ln1_b']),
                     row(la['b1']), row(la['b2']), row(la['ln2_g']), row(la['ln2_b'])]
        slab = jnp.concatenate(rows, axis=0)
        assert slab.shape == (SLAB_ROWS, FFN_DIM)
        return slab

    slab = jnp.stack([slab_stream(0, b_sk), slab_stream(1, b_ii)])   # (2, 17, 2048)

    w_fuse, b_fuse = dense(k_fuse, 2 * SKEL_HIDDEN, FUSION_DIM)
    w_head, b_head = dense(k_head, FUSION_DIM, NUM_CLASSES)
    w_head = jnp.pad(w_head, ((0, 0), (0, HEAD_PAD - NUM_CLASSES)))
    b_head = jnp.pad(b_head, (0, HEAD_PAD - NUM_CLASSES))
    b_fh = jnp.concatenate([b_fuse, b_head]).reshape(1, FUSION_DIM + HEAD_PAD)

    bf16 = lambda w: w.astype(jnp.bfloat16)   # weights bf16; biases / LN stay f32
    return {
        'w_in':  bf16(jnp.stack([w_sk, w_ii])),    # (2, 128, 128)
        'w_qkv': bf16(stack_w('w_qkv')),           # (2, 2, 128, 384)  scale folded in Q
        'w_o':   bf16(stack_w('w_o')),             # (2, 2, 128, 128)
        'w_ff1': bf16(stack_w('w1')),              # (2, 2, 128, 2048)
        'w_ff2': bf16(stack_w('w2')),              # (2, 2, 2048, 128)
        'slab':  slab,                             # (2, 17, 2048) f32
        'w_fuse': bf16(w_fuse),                    # (256, 256)
        'w_head': bf16(w_head),                    # (256, 128)
        'b_fh':  b_fh,                             # (1, 384) f32
    }


# --------------------------------- full forward ----------------------------------------
def multi_sensor_teacher_forward(params, teacher_inert, teacher_inert_mask,
                                 skeleton, skeleton_mask):
    B, S_in, in_dim = teacher_inert.shape
    _, S_sk, sk_dim = skeleton.shape
    S = max(S_sk, S_in)        # pad both streams to a common sequence length

    def prep_x(x, s_orig):
        x = x.astype(jnp.float32)
        x = jnp.pad(x, ((0, 0), (0, S - s_orig), (0, IN_FEAT_PAD - x.shape[-1])))
        return x.reshape(B * S, IN_FEAT_PAD)

    def prep_aux(mask, s_orig):
        # mask: True == padding (PyTorch src_key_padding_mask convention)
        m = jnp.pad(mask.astype(jnp.float32), ((0, 0), (0, S - s_orig)),
                    constant_values=1.0)
        bias = m * NEG_INF                                           # (B, S)
        pool = jnp.broadcast_to((jnp.arange(S) < s_orig).astype(jnp.float32) / s_orig,
                                (B, S))                              # (B, S)
        return jnp.stack([bias, pool])                               # (2, B, S)

    x_stacked = jnp.stack([prep_x(skeleton, S_sk),
                           prep_x(teacher_inert, S_in)])             # (2, B*S, 128)
    aux = jnp.stack([prep_aux(skeleton_mask, S_sk),
                     prep_aux(teacher_inert_mask, S_in)])            # (2, 2, B, S)

    p = params

    def sblk(shape):
        # per-stream block: leading stream dim squeezed, rest taken whole.
        return pl.BlockSpec((None,) + shape, lambda i: (i,) + (0,) * len(shape))

    feats = pl.pallas_call(
        functools.partial(_stream_encoder_kernel, B, S),
        out_shape=jax.ShapeDtypeStruct((N_STREAMS, B, SKEL_HIDDEN), jnp.float32),
        grid=(N_STREAMS,),
        in_specs=[
            sblk((B * S, IN_FEAT_PAD)),                        # x (per stream)
            sblk((2, B, S)),                                   # [attn bias, pool w]
            sblk((IN_FEAT_PAD, SKEL_HIDDEN)),                  # w_in
            sblk((N_LAYERS, SKEL_HIDDEN, 3 * SKEL_HIDDEN)),    # w_qkv
            sblk((N_LAYERS, SKEL_HIDDEN, SKEL_HIDDEN)),        # w_o
            sblk((N_LAYERS, SKEL_HIDDEN, FFN_DIM)),            # w_ff1
            sblk((N_LAYERS, FFN_DIM, SKEL_HIDDEN)),            # w_ff2
            sblk((SLAB_ROWS, FFN_DIM)),                        # packed small params
        ],
        out_specs=sblk((B, SKEL_HIDDEN)),
        compiler_params=pltpu.CompilerParams(dimension_semantics=("parallel",)),
    )(x_stacked, aux, p['w_in'], p['w_qkv'], p['w_o'], p['w_ff1'], p['w_ff2'], p['slab'])

    vmem = lambda: pl.BlockSpec(memory_space=pltpu.MemorySpace.VMEM)
    packed = pl.pallas_call(
        _fuse_head_kernel,
        out_shape=jax.ShapeDtypeStruct((B, FUSION_DIM + HEAD_PAD), jnp.float32),
        in_specs=[vmem() for _ in range(4)],
        out_specs=vmem(),
    )(feats, p['w_fuse'], p['w_head'], p['b_fh'])

    return {
        'logits': packed[:, FUSION_DIM:FUSION_DIM + NUM_CLASSES],
        'skel_feat': feats[0],
        'inert_feat': feats[1],
        'fused_feat': packed[:, 0:FUSION_DIM],
    }


# ------------------------------------- main ---------------------------------------------
if __name__ == "__main__":
    key = jax.random.PRNGKey(0)
    k_params, k_data = jax.random.split(key)
    params = init_params(k_params)

    B, S_in, S_sk = 2, 8, 8
    k1, k2 = jax.random.split(k_data)
    teacher_inert = jax.random.normal(k1, (B, S_in, INERT_IN_DIM), jnp.float32)
    skeleton = jax.random.normal(k2, (B, S_sk, SKEL_IN_DIM), jnp.float32)
    # True == padding; keep at least one valid position per sequence
    teacher_inert_mask = jnp.arange(S_in)[None, :] >= jnp.array([S_in, S_in - 2])[:, None]
    skeleton_mask = jnp.arange(S_sk)[None, :] >= jnp.array([S_sk - 1, S_sk])[:, None]

    fwd = jax.jit(multi_sensor_teacher_forward)
    out = fwd(params, teacher_inert, teacher_inert_mask, skeleton, skeleton_mask)
    out = jax.tree_util.tree_map(jax.block_until_ready, out)

    assert out['logits'].shape == (B, NUM_CLASSES)
    assert out['skel_feat'].shape == (B, SKEL_HIDDEN)
    assert out['inert_feat'].shape == (B, SKEL_HIDDEN)
    assert out['fused_feat'].shape == (B, FUSION_DIM)
    assert all(bool(jnp.all(jnp.isfinite(v))) for v in out.values())
    print("KERNEL_OK")
</pallas_src>

<mosaic_0001>
module attributes {stable_mosaic.version = 11 : i64} {
  func.func @_fuse_head_kernel(%arg0: memref<2x2x128xf32, #tpu.memory_space<vmem>>, %arg1: memref<256x256xbf16, #tpu.memory_space<vmem>>, %arg2: memref<256x128xbf16, #tpu.memory_space<vmem>>, %arg3: memref<1x384xf32, #tpu.memory_space<vmem>>, %arg4: memref<2x384xf32, #tpu.memory_space<vmem>>) attributes {dimension_semantics = [], scalar_prefetch = 0 : i64, scratch_operands = 0 : i64, tpu.core_type = #tpu.core_type<tc>} {
    %c0 = arith.constant 0 : index
    %c0_0 = arith.constant 0 : index
    %c0_1 = arith.constant 0 : index
    %0 = vector.load %arg0[%c0, %c0_0, %c0_1] : memref<2x2x128xf32, #tpu.memory_space<vmem>>, vector<2x2x128xf32>
    %1 = vector.extract_strided_slice %0 {offsets = [0, 0, 0], sizes = [1, 2, 128], strides = [1, 1, 1]} : vector<2x2x128xf32> to vector<1x2x128xf32>
    %2 = vector.shape_cast %1 : vector<1x2x128xf32> to vector<2x128xf32>
    %3 = vector.extract_strided_slice %0 {offsets = [1, 0, 0], sizes = [1, 2, 128], strides = [1, 1, 1]} : vector<2x2x128xf32> to vector<1x2x128xf32>
    %4 = vector.shape_cast %3 : vector<1x2x128xf32> to vector<2x128xf32>
    %5 = tpu.concatenate %2, %4 in 1 : vector<2x128xf32>, vector<2x128xf32> -> vector<2x256xf32>
    %6 = arith.truncf %5 : vector<2x256xf32> to vector<2x256xbf16>
    %c0_2 = arith.constant 0 : index
    %c0_3 = arith.constant 0 : index
    %7 = vector.load %arg1[%c0_2, %c0_3] : memref<256x256xbf16, #tpu.memory_space<vmem>>, vector<256x256xbf16>
    %cst = arith.constant dense<0.000000e+00> : vector<2x256xf32>
    %8 = tpu.matmul %6, %7, %cst {dimension_numbers = #tpu.dot_dimension_numbers<[1], [0], [0], [1], [0, 0, 1, 1], [], []>} : vector<2x256xbf16>, vector<256x256xbf16>, vector<2x256xf32> -> vector<2x256xf32>
    %c0_4 = arith.constant 0 : index
    %c0_5 = arith.constant 0 : index
    %9 = vector.load %arg3[%c0_4, %c0_5] : memref<1x384xf32, #tpu.memory_space<vmem>>, vector<1x256xf32>
    %10 = vector.broadcast %9 : vector<1x256xf32> to vector<2x256xf32>
    %11 = arith.addf %8, %10 : vector<2x256xf32>
    %12 = arith.truncf %11 : vector<2x256xf32> to vector<2x256xbf16>
    %c0_6 = arith.constant 0 : index
    %c0_7 = arith.constant 0 : index
    %13 = vector.load %arg2[%c0_6, %c0_7] : memref<256x128xbf16, #tpu.memory_space<vmem>>, vector<256x128xbf16>
    %cst_8 = arith.constant dense<0.000000e+00> : vector<2x128xf32>
    %14 = tpu.matmul %12, %13, %cst_8 {dimension_numbers = #tpu.dot_dimension_numbers<[1], [0], [0], [1], [0, 0, 1, 1], [], []>} : vector<2x256xbf16>, vector<256x128xbf16>, vector<2x128xf32> -> vector<2x128xf32>
    %c0_9 = arith.constant 0 : index
    %c256 = arith.constant 256 : index
    %15 = vector.load %arg3[%c0_9, %c256] : memref<1x384xf32, #tpu.memory_space<vmem>>, vector<1x128xf32>
    %16 = vector.broadcast %15 : vector<1x128xf32> to vector<2x128xf32>
    %17 = arith.addf %14, %16 : vector<2x128xf32>
    %c0_10 = arith.constant 0 : index
    %c0_11 = arith.constant 0 : index
    %18 = vector.load %arg4[%c0_10, %c0_11] : memref<2x384xf32, #tpu.memory_space<vmem>>, vector<2x256xf32>
    tpu.vector_store %arg4[%c0_10, %c0_11], %11 {strides = array<i32>} : memref<2x384xf32, #tpu.memory_space<vmem>>, vector<2x256xf32>,
    %c0_12 = arith.constant 0 : index
    %c256_13 = arith.constant 256 : index
    %19 = vector.load %arg4[%c0_12, %c256_13] : memref<2x384xf32, #tpu.memory_space<vmem>>, vector<2x128xf32>
    tpu.vector_store %arg4[%c0_12, %c256_13], %17 {strides = array<i32>} : memref<2x384xf32, #tpu.memory_space<vmem>>, vector<2x128xf32>,
    return
  }
}

module attributes {stable_mosaic.version = 11 : i64} {
  func.func @_stream_encoder_kernel(%arg0: i32, %arg1: memref<1x16x128xf32, #tpu.memory_space<vmem>>, %arg2: memref<1x2x2x8xf32, #tpu.memory_space<vmem>>, %arg3: memref<1x128x128xbf16, #tpu.memory_space<vmem>>, %arg4: memref<1x2x128x384xbf16, #tpu.memory_space<vmem>>, %arg5: memref<1x2x128x128xbf16, #tpu.memory_space<vmem>>, %arg6: memref<1x2x128x2048xbf16, #tpu.memory_space<vmem>>, %arg7: memref<1x2x2048x128xbf16, #tpu.memory_space<vmem>>, %arg8: memref<1x17x2048xf32, #tpu.memory_space<vmem>>, %arg9: memref<1x2x128xf32, #tpu.memory_space<vmem>>) attributes {dimension_semantics = [#tpu.dimension_semantics<parallel>], iteration_bounds = array<i64: 2>, scalar_prefetch = 0 : i64, scratch_operands = 0 : i64, tpu.core_type = #tpu.core_type<tc>, window_params = [{transform_indices = @transform_0, window_bounds = array<i64: 1, 16, 128>}, {transform_indices = @transform_1, window_bounds = array<i64: 1, 2, 2, 8>}, {transform_indices = @transform_2, window_bounds = array<i64: 1, 128, 128>}, {transform_indices = @transform_3, window_bounds = array<i64: 1, 2, 128, 384>}, {transform_indices = @transform_4, window_bounds = array<i64: 1, 2, 128, 128>}, {transform_indices = @transform_5, window_bounds = array<i64: 1, 2, 128, 2048>}, {transform_indices = @transform_6, window_bounds = array<i64: 1, 2, 2048, 128>}, {transform_indices = @transform_7, window_bounds = array<i64: 1, 17, 2048>}, {transform_indices = @transform_8, window_bounds = array<i64: 1, 2, 128>}]} {
    %c0 = arith.constant 0 : index
    %c0_0 = arith.constant 0 : index
    %c0_1 = arith.constant 0 : index
    %c0_2 = arith.constant 0 : index
    %0 = vector.load %arg2[%c0, %c0_0, %c0_1, %c0_2] : memref<1x2x2x8xf32, #tpu.memory_space<vmem>>, vector<1x2x2x8xf32>
    %1 = vector.shape_cast %0 : vector<1x2x2x8xf32> to vector<2x2x8xf32>
    %2 = vector.extract_strided_slice %1 {offsets = [0, 0, 0], sizes = [1, 2, 8], strides = [1, 1, 1]} : vector<2x2x8xf32> to vector<1x2x8xf32>
    %3 = vector.shape_cast %2 : vector<1x2x8xf32> to vector<2x8xf32>
    %4 = vector.shape_cast %3 : vector<2x8xf32> to vector<2x1x8xf32>
    %5 = vector.extract_strided_slice %1 {offsets = [1, 0, 0], sizes = [1, 2, 8], strides = [1, 1, 1]} : vector<2x2x8xf32> to vector<1x2x8xf32>
    %6 = vector.shape_cast %5 : vector<1x2x8xf32> to vector<2x8xf32>
    %c0_3 = arith.constant 0 : index
    %c0_4 = arith.constant 0 : index
    %c0_5 = arith.constant 0 : index
    %7 = vector.load %arg1[%c0_3, %c0_4, %c0_5] : memref<1x16x128xf32, #tpu.memory_space<vmem>>, vector<1x16x128xf32>
    %8 = vector.shape_cast %7 : vector<1x16x128xf32> to vector<16x128xf32>
    %c0_6 = arith.constant 0 : index
    %c0_7 = arith.constant 0 : index
    %c0_8 = arith.constant 0 : index
    %9 = vector.load %arg3[%c0_6, %c0_7, %c0_8] : memref<1x128x128xbf16, #tpu.memory_space<vmem>>, vector<1x128x128xbf16>
    %10 = vector.shape_cast %9 : vector<1x128x128xbf16> to vector<128x128xbf16>
    %11 = arith.truncf %8 : vector<16x128xf32> to vector<16x128xbf16>
    %cst = arith.constant dense<0.000000e+00> : vector<16x128xf32>
    %12 = tpu.matmul %11, %10, %cst {dimension_numbers = #tpu.dot_dimension_numbers<[1], [0], [0], [1], [0, 0, 1, 1], [], []>} : vector<16x128xbf16>, vector<128x128xbf16>, vector<16x128xf32> -> vector<16x128xf32>
    %c0_9 = arith.constant 0 : index
    %c0_10 = arith.constant 0 : index
    %c0_11 = arith.constant 0 : index
    %13 = vector.load %arg8[%c0_9, %c0_10, %c0_11] : memref<1x17x2048xf32, #tpu.memory_space<vmem>>, vector<1x1x128xf32>
    %14 = vector.shape_cast %13 : vector<1x1x128xf32> to vector<1x128xf32>
    %15 = vector.broadcast %14 : vector<1x128xf32> to vector<16x128xf32>
    %16 = arith.addf %12, %15 : vector<16x128xf32>
    %c0_12 = arith.constant 0 : index
    %c0_13 = arith.constant 0 : index
    %c0_14 = arith.constant 0 : index
    %c0_15 = arith.constant 0 : index
    %17 = vector.load %arg4[%c0_12, %c0_13, %c0_14, %c0_15] : memref<1x2x128x384xbf16, #tpu.memory_space<vmem>>, vector<1x1x128x384xbf16>
    %18 = vector.shape_cast %17 : vector<1x1x128x384xbf16> to vector<128x384xbf16>
    %19 = arith.truncf %16 : vector<16x128xf32> to vector<16x128xbf16>
    %cst_16 = arith.constant dense<0.000000e+00> : vector<16x384xf32>
    %20 = tpu.matmul %19, %18, %cst_16 {dimension_numbers = #tpu.dot_dimension_numbers<[1], [0], [0], [1], [0, 0, 1, 1], [], []>} : vector<16x128xbf16>, vector<128x384xbf16>, vector<16x384xf32> -> vector<16x384xf32>
    %c0_17 = arith.constant 0 : index
    %c1 = arith.constant 1 : index
    %c0_18 = arith.constant 0 : index
    %21 = vector.load %arg8[%c0_17, %c1, %c0_18] : memref<1x17x2048xf32, #tpu.memory_space<vmem>>, vector<1x1x384xf32>
    %22 = vector.shape_cast %21 : vector<1x1x384xf32> to vector<1x384xf32>
    %23 = vector.broadcast %22 : vector<1x384xf32> to vector<16x384xf32>
    %24 = arith.addf %20, %23 : vector<16x384xf32>
    %25 = vector.shape_cast %24 : vector<16x384xf32> to vector<2x8x384xf32>
    %26 = vector.extract_strided_slice %25 {offsets = [0, 0, 0], sizes = [2, 8, 32], strides = [1, 1, 1]} : vector<2x8x384xf32> to vector<2x8x32xf32>
    %27 = vector.extract_strided_slice %25 {offsets = [0, 0, 128], sizes = [2, 8, 32], strides = [1, 1, 1]} : vector<2x8x384xf32> to vector<2x8x32xf32>
    %28 = vector.extract_strided_slice %25 {offsets = [0, 0, 256], sizes = [2, 8, 32], strides = [1, 1, 1]} : vector<2x8x384xf32> to vector<2x8x32xf32>
    %cst_19 = arith.constant dense<0.000000e+00> : vector<2x8x8xf32>
    %29 = tpu.matmul %26, %27, %cst_19 {dimension_numbers = #tpu.dot_dimension_numbers<[2], [2], [1], [1], [0, 0, 0, 1, 1, 1], [0], [0]>} : vector<2x8x32xf32>, vector<2x8x32xf32>, vector<2x8x8xf32> -> vector<2x8x8xf32>
    %30 = vector.broadcast %4 : vector<2x1x8xf32> to vector<2x8x8xf32>
    %31 = arith.addf %29, %30 : vector<2x8x8xf32>
    %cst_20 = arith.constant dense<0xFF800000> : vector<2x8xf32>
    %32 = vector.multi_reduction <maximumf>, %31, %cst_20 [2] : vector<2x8x8xf32> to vector<2x8xf32>
    %33 = vector.shape_cast %32 : vector<2x8xf32> to vector<2x8x1xf32>
    %34 = vector.broadcast %33 : vector<2x8x1xf32> to vector<2x8x8xf32>
    %35 = arith.subf %31, %34 : vector<2x8x8xf32>
    %36 = math.exp %35 : vector<2x8x8xf32>
    %cst_21 = arith.constant dense<0.000000e+00> : vector<2x8xf32>
    %37 = vector.multi_reduction <add>, %36, %cst_21 [2] : vector<2x8x8xf32> to vector<2x8xf32>
    %38 = vector.shape_cast %37 : vector<2x8xf32> to vector<2x8x1xf32>
    %39 = vector.broadcast %38 : vector<2x8x1xf32> to vector<2x8x8xf32>
    %40 = arith.divf %36, %39 : vector<2x8x8xf32>
    %cst_22 = arith.constant dense<0.000000e+00> : vector<2x8x32xf32>
    %41 = tpu.matmul %40, %28, %cst_22 {dimension_numbers = #tpu.dot_dimension_numbers<[2], [1], [1], [2], [0, 0, 0, 1, 1, 2], [0], [0]>} : vector<2x8x8xf32>, vector<2x8x32xf32>, vector<2x8x32xf32> -> vector<2x8x32xf32>
    %42 = vector.extract_strided_slice %25 {offsets = [0, 0, 32], sizes = [2, 8, 32], strides = [1, 1, 1]} : vector<2x8x384xf32> to vector<2x8x32xf32>
    %43 = vector.extract_strided_slice %25 {offsets = [0, 0, 160], sizes = [2, 8, 32], strides = [1, 1, 1]} : vector<2x8x384xf32> to vector<2x8x32xf32>
    %44 = vector.extract_strided_slice %25 {offsets = [0, 0, 288], sizes = [2, 8, 32], strides = [1, 1, 1]} : vector<2x8x384xf32> to vector<2x8x32xf32>
    %cst_23 = arith.constant dense<0.000000e+00> : vector<2x8x8xf32>
    %45 = tpu.matmul %42, %43, %cst_23 {dimension_numbers = #tpu.dot_dimension_numbers<[2], [2], [1], [1], [0, 0, 0, 1, 1, 1], [0], [0]>} : vector<2x8x32xf32>, vector<2x8x32xf32>, vector<2x8x8xf32> -> vector<2x8x8xf32>
    %46 = vector.broadcast %4 : vector<2x1x8xf32> to vector<2x8x8xf32>
    %47 = arith.addf %45, %46 : vector<2x8x8xf32>
    %cst_24 = arith.constant dense<0xFF800000> : vector<2x8xf32>
    %48 = vector.multi_reduction <maximumf>, %47, %cst_24 [2] : vector<2x8x8xf32> to vector<2x8xf32>
    %49 = vector.shape_cast %48 : vector<2x8xf32> to vector<2x8x1xf32>
    %50 = vector.broadcast %49 : vector<2x8x1xf32> to vector<2x8x8xf32>
    %51 = arith.subf %47, %50 : vector<2x8x8xf32>
    %52 = math.exp %51 : vector<2x8x8xf32>
    %cst_25 = arith.constant dense<0.000000e+00> : vector<2x8xf32>
    %53 = vector.multi_reduction <add>, %52, %cst_25 [2] : vector<2x8x8xf32> to vector<2x8xf32>
    %54 = vector.shape_cast %53 : vector<2x8xf32> to vector<2x8x1xf32>
    %55 = vector.broadcast %54 : vector<2x8x1xf32> to vector<2x8x8xf32>
    %56 = arith.divf %52, %55 : vector<2x8x8xf32>
    %cst_26 = arith.constant dense<0.000000e+00> : vector<2x8x32xf32>
    %57 = tpu.matmul %56, %44, %cst_26 {dimension_numbers = #tpu.dot_dimension_numbers<[2], [1], [1], [2], [0, 0, 0, 1, 1, 2], [0], [0]>} : vector<2x8x8xf32>, vector<2x8x32xf32>, vector<2x8x32xf32> -> vector<2x8x32xf32>
    %58 = vector.extract_strided_slice %25 {offsets = [0, 0, 64], sizes = [2, 8, 32], strides = [1, 1, 1]} : vector<2x8x384xf32> to vector<2x8x32xf32>
    %59 = vector.extract_strided_slice %25 {offsets = [0, 0, 192], sizes = [2, 8, 32], strides = [1, 1, 1]} : vector<2x8x384xf32> to vector<2x8x32xf32>
    %60 = vector.extract_strided_slice %25 {offsets = [0, 0, 320], sizes = [2, 8, 32], strides = [1, 1, 1]} : vector<2x8x384xf32> to vector<2x8x32xf32>
    %cst_27 = arith.constant dense<0.000000e+00> : vector<2x8x8xf32>
    %61 = tpu.matmul %58, %59, %cst_27 {dimension_numbers = #tpu.dot_dimension_numbers<[2], [2], [1], [1], [0, 0, 0, 1, 1, 1], [0], [0]>} : vector<2x8x32xf32>, vector<2x8x32xf32>, vector<2x8x8xf32> -> vector<2x8x8xf32>
    %62 = vector.broadcast %4 : vector<2x1x8xf32> to vector<2x8x8xf32>
    %63 = arith.addf %61, %62 : vector<2x8x8xf32>
    %cst_28 = arith.constant dense<0xFF800000> : vector<2x8xf32>
    %64 = vector.multi_reduction <maximumf>, %63, %cst_28 [2] : vector<2x8x8xf32> to vector<2x8xf32>
    %65 = vector.shape_cast %64 : vector<2x8xf32> to vector<2x8x1xf32>
    %66 = vector.broadcast %65 : vector<2x8x1xf32> to vector<2x8x8xf32>
    %67 = arith.subf %63, %66 : vector<2x8x8xf32>
    %68 = math.exp %67 : vector<2x8x8xf32>
    %cst_29 = arith.constant dense<0.000000e+00> : vector<2x8xf32>
    %69 = vector.multi_reduction <add>, %68, %cst_29 [2] : vector<2x8x8xf32> to vector<2x8xf32>
    %70 = vector.shape_cast %69 : vector<2x8xf32> to vector<2x8x1xf32>
    %71 = vector.broadcast %70 : vector<2x8x1xf32> to vector<2x8x8xf32>
    %72 = arith.divf %68, %71 : vector<2x8x8xf32>
    %cst_30 = arith.constant dense<0.000000e+00> : vector<2x8x32xf32>
    %73 = tpu.matmul %72, %60, %cst_30 {dimension_numbers = #tpu.dot_dimension_numbers<[2], [1], [1], [2], [0, 0, 0, 1, 1, 2], [0], [0]>} : vector<2x8x8xf32>, vector<2x8x32xf32>, vector<2x8x32xf32> -> vector<2x8x32xf32>
    %74 = vector.extract_strided_slice %25 {offsets = [0, 0, 96], sizes = [2, 8, 32], strides = [1, 1, 1]} : vector<2x8x384xf32> to vector<2x8x32xf32>
    %75 = vector.extract_strided_slice %25 {offsets = [0, 0, 224], sizes = [2, 8, 32], strides = [1, 1, 1]} : vector<2x8x384xf32> to vector<2x8x32xf32>
    %76 = vector.extract_strided_slice %25 {offsets = [0, 0, 352], sizes = [2, 8, 32], strides = [1, 1, 1]} : vector<2x8x384xf32> to vector<2x8x32xf32>
    %cst_31 = arith.constant dense<0.000000e+00> : vector<2x8x8xf32>
    %77 = tpu.matmul %74, %75, %cst_31 {dimension_numbers = #tpu.dot_dimension_numbers<[2], [2], [1], [1], [0, 0, 0, 1, 1, 1], [0], [0]>} : vector<2x8x32xf32>, vector<2x8x32xf32>, vector<2x8x8xf32> -> vector<2x8x8xf32>
    %78 = vector.broadcast %4 : vector<2x1x8xf32> to vector<2x8x8xf32>
    %79 = arith.addf %77, %78 : vector<2x8x8xf32>
    %cst_32 = arith.constant dense<0xFF800000> : vector<2x8xf32>
    %80 = vector.multi_reduction <maximumf>, %79, %cst_32 [2] : vector<2x8x8xf32> to vector<2x8xf32>
    %81 = vector.shape_cast %80 : vector<2x8xf32> to vector<2x8x1xf32>
    %82 = vector.broadcast %81 : vector<2x8x1xf32> to vector<2x8x8xf32>
    %83 = arith.subf %79, %82 : vector<2x8x8xf32>
    %84 = math.exp %83 : vector<2x8x8xf32>
    %cst_33 = arith.constant dense<0.000000e+00> : vector<2x8xf32>
    %85 = vector.multi_reduction <add>, %84, %cst_33 [2] : vector<2x8x8xf32> to vector<2x8xf32>
    %86 = vector.shape_cast %85 : vector<2x8xf32> to vector<2x8x1xf32>
    %87 = vector.broadcast %86 : vector<2x8x1xf32> to vector<2x8x8xf32>
    %88 = arith.divf %84, %87 : vector<2x8x8xf32>
    %cst_34 = arith.constant dense<0.000000e+00> : vector<2x8x32xf32>
    %89 = tpu.matmul %88, %76, %cst_34 {dimension_numbers = #tpu.dot_dimension_numbers<[2], [1], [1], [2], [0, 0, 0, 1, 1, 2], [0], [0]>} : vector<2x8x8xf32>, vector<2x8x32xf32>, vector<2x8x32xf32> -> vector<2x8x32xf32>
    %90 = tpu.concatenate %41, %57, %73, %89 in 2 : vector<2x8x32xf32>, vector<2x8x32xf32>, vector<2x8x32xf32>, vector<2x8x32xf32> -> vector<2x8x128xf32>
    %91 = vector.shape_cast %90 : vector<2x8x128xf32> to vector<16x128xf32>
    %c0_35 = arith.constant 0 : index
    %c0_36 = arith.constant 0 : index
    %c0_37 = arith.constant 0 : index
    %c0_38 = arith.constant 0 : index
    %92 = vector.load %arg5[%c0_35, %c0_36, %c0_37, %c0_38] : memref<1x2x128x128xbf16, #tpu.memory_space<vmem>>, vector<1x1x128x128xbf16>
    %93 = vector.shape_cast %92 : vector<1x1x128x128xbf16> to vector<128x128xbf16>
    %94 = arith.truncf %91 : vector<16x128xf32> to vector<16x128xbf16>
    %cst_39 = arith.constant dense<0.000000e+00> : vector<16x128xf32>
    %95 = tpu.matmul %94, %93, %cst_39 {dimension_numbers = #tpu.dot_dimension_numbers<[1], [0], [0], [1], [0, 0, 1, 1], [], []>} : vector<16x128xbf16>, vector<128x128xbf16>, vector<16x128xf32> -> vector<16x128xf32>
    %c0_40 = arith.constant 0 : index
    %c2 = arith.constant 2 : index
    %c0_41 = arith.constant 0 : index
    %96 = vector.load %arg8[%c0_40, %c2, %c0_41] : memref<1x17x2048xf32, #tpu.memory_space<vmem>>, vector<1x1x128xf32>
    %97 = vector.shape_cast %96 : vector<1x1x128xf32> to vector<1x128xf32>
    %98 = vector.broadcast %97 : vector<1x128xf32> to vector<16x128xf32>
    %99 = arith.addf %95, %98 : vector<16x128xf32>
    %100 = arith.addf %16, %99 : vector<16x128xf32>
    %c0_42 = arith.constant 0 : index
    %c3 = arith.constant 3 : index
    %c0_43 = arith.constant 0 : index
    %101 = vector.load %arg8[%c0_42, %c3, %c0_43] : memref<1x17x2048xf32, #tpu.memory_space<vmem>>, vector<1x1x128xf32>
    %102 = vector.shape_cast %101 : vector<1x1x128xf32> to vector<1x128xf32>
    %c0_44 = arith.constant 0 : index
    %c4 = arith.constant 4 : index
    %c0_45 = arith.constant 0 : index
    %103 = vector.load %arg8[%c0_44, %c4, %c0_45] : memref<1x17x2048xf32, #tpu.memory_space<vmem>>, vector<1x1x128xf32>
    %104 = vector.shape_cast %103 : vector<1x1x128xf32> to vector<1x128xf32>
    %cst_46 = arith.constant dense<0.000000e+00> : vector<16xf32>
    %105 = vector.multi_reduction <add>, %100, %cst_46 [1] : vector<16x128xf32> to vector<16xf32>
    %106 = vector.shape_cast %105 : vector<16xf32> to vector<16x1xf32>
    %cst_47 = arith.constant 1.280000e+02 : f32
    %107 = vector.broadcast %cst_47 : f32 to vector<16x1xf32>
    %108 = arith.divf %106, %107 : vector<16x1xf32>
    %109 = vector.broadcast %108 : vector<16x1xf32> to vector<16x128xf32>
    %110 = arith.subf %100, %109 : vector<16x128xf32>
    %111 = arith.mulf %110, %110 : vector<16x128xf32>
    %cst_48 = arith.constant dense<0.000000e+00> : vector<16xf32>
    %112 = vector.multi_reduction <add>, %111, %cst_48 [1] : vector<16x128xf32> to vector<16xf32>
    %113 = vector.shape_cast %112 : vector<16xf32> to vector<16x1xf32>
    %cst_49 = arith.constant 1.280000e+02 : f32
    %114 = vector.broadcast %cst_49 : f32 to vector<16x1xf32>
    %115 = arith.divf %113, %114 : vector<16x1xf32>
    %116 = vector.broadcast %108 : vector<16x1xf32> to vector<16x128xf32>
    %117 = arith.subf %100, %116 : vector<16x128xf32>
    %cst_50 = arith.constant 9.99999974E-6 : f32
    %118 = vector.broadcast %cst_50 : f32 to vector<16x1xf32>
    %119 = arith.addf %115, %118 : vector<16x1xf32>
    %120 = math.rsqrt %119 : vector<16x1xf32>
    %121 = vector.broadcast %120 : vector<16x1xf32> to vector<16x128xf32>
    %122 = arith.mulf %117, %121 : vector<16x128xf32>
    %123 = vector.broadcast %102 : vector<1x128xf32> to vector<16x128xf32>
    %124 = arith.mulf %122, %123 : vector<16x128xf32>
    %125 = vector.broadcast %104 : vector<1x128xf32> to vector<16x128xf32>
    %126 = arith.addf %124, %125 : vector<16x128xf32>
    %c0_51 = arith.constant 0 : index
    %c0_52 = arith.constant 0 : index
    %c0_53 = arith.constant 0 : index
    %c0_54 = arith.constant 0 : index
    %127 = vector.load %arg6[%c0_51, %c0_52, %c0_53, %c0_54] : memref<1x2x128x2048xbf16, #tpu.memory_space<vmem>>, vector<1x1x128x2048xbf16>
    %128 = vector.shape_cast %127 : vector<1x1x128x2048xbf16> to vector<128x2048xbf16>
    %129 = arith.truncf %126 : vector<16x128xf32> to vector<16x128xbf16>
    %cst_55 = arith.constant dense<0.000000e+00> : vector<16x2048xf32>
    %130 = tpu.matmul %129, %128, %cst_55 {dimension_numbers = #tpu.dot_dimension_numbers<[1], [0], [0], [1], [0, 0, 1, 1], [], []>} : vector<16x128xbf16>, vector<128x2048xbf16>, vector<16x2048xf32> -> vector<16x2048xf32>
    %c0_56 = arith.constant 0 : index
    %c5 = arith.constant 5 : index
    %c0_57 = arith.constant 0 : index
    %131 = vector.load %arg8[%c0_56, %c5, %c0_57] : memref<1x17x2048xf32, #tpu.memory_space<vmem>>, vector<1x1x2048xf32>
    %132 = vector.shape_cast %131 : vector<1x1x2048xf32> to vector<1x2048xf32>
    %133 = vector.broadcast %132 : vector<1x2048xf32> to vector<16x2048xf32>
    %134 = arith.addf %130, %133 : vector<16x2048xf32>
    %cst_58 = arith.constant 0.000000e+00 : f32
    %135 = vector.broadcast %cst_58 : f32 to vector<16x2048xf32>
    %136 = arith.maximumf %134, %135 : vector<16x2048xf32>
    %c0_59 = arith.constant 0 : index
    %c0_60 = arith.constant 0 : index
    %c0_61 = arith.constant 0 : index
    %c0_62 = arith.constant 0 : index
    %137 = vector.load %arg7[%c0_59, %c0_60, %c0_61, %c0_62] : memref<1x2x2048x128xbf16, #tpu.memory_space<vmem>>, vector<1x1x2048x128xbf16>
    %138 = vector.shape_cast %137 : vector<1x1x2048x128xbf16> to vector<2048x128xbf16>
    %139 = arith.truncf %136 : vector<16x2048xf32> to vector<16x2048xbf16>
    %cst_63 = arith.constant dense<0.000000e+00> : vector<16x128xf32>
    %140 = tpu.matmul %139, %138, %cst_63 {dimension_numbers = #tpu.dot_dimension_numbers<[1], [0], [0], [1], [0, 0, 1, 1], [], []>} : vector<16x2048xbf16>, vector<2048x128xbf16>, vector<16x128xf32> -> vector<16x128xf32>
    %c0_64 = arith.constant 0 : index
    %c6 = arith.constant 6 : index
    %c0_65 = arith.constant 0 : index
    %141 = vector.load %arg8[%c0_64, %c6, %c0_65] : memref<1x17x2048xf32, #tpu.memory_space<vmem>>, vector<1x1x128xf32>
    %142 = vector.shape_cast %141 : vector<1x1x128xf32> to vector<1x128xf32>
    %143 = vector.broadcast %142 : vector<1x128xf32> to vector<16x128xf32>
    %144 = arith.addf %140, %143 : vector<16x128xf32>
    %145 = arith.addf %126, %144 : vector<16x128xf32>
    %c0_66 = arith.constant 0 : index
    %c7 = arith.constant 7 : index
    %c0_67 = arith.constant 0 : index
    %146 = vector.load %arg8[%c0_66, %c7, %c0_67] : memref<1x17x2048xf32, #tpu.memory_space<vmem>>, vector<1x1x128xf32>
    %147 = vector.shape_cast %146 : vector<1x1x128xf32> to vector<1x128xf32>
    %c0_68 = arith.constant 0 : index
    %c8 = arith.constant 8 : index
    %c0_69 = arith.constant 0 : index
    %148 = vector.load %arg8[%c0_68, %c8, %c0_69] : memref<1x17x2048xf32, #tpu.memory_space<vmem>>, vector<1x1x128xf32>
    %149 = vector.shape_cast %148 : vector<1x1x128xf32> to vector<1x128xf32>
    %cst_70 = arith.constant dense<0.000000e+00> : vector<16xf32>
    %150 = vector.multi_reduction <add>, %145, %cst_70 [1] : vector<16x128xf32> to vector<16xf32>
    %151 = vector.shape_cast %150 : vector<16xf32> to vector<16x1xf32>
    %cst_71 = arith.constant 1.280000e+02 : f32
    %152 = vector.broadcast %cst_71 : f32 to vector<16x1xf32>
    %153 = arith.divf %151, %152 : vector<16x1xf32>
    %154 = vector.broadcast %153 : vector<16x1xf32> to vector<16x128xf32>
    %155 = arith.subf %145, %154 : vector<16x128xf32>
    %156 = arith.mulf %155, %155 : vector<16x128xf32>
    %cst_72 = arith.constant dense<0.000000e+00> : vector<16xf32>
    %157 = vector.multi_reduction <add>, %156, %cst_72 [1] : vector<16x128xf32> to vector<16xf32>
    %158 = vector.shape_cast %157 : vector<16xf32> to vector<16x1xf32>
    %cst_73 = arith.constant 1.280000e+02 : f32
    %159 = vector.broadcast %cst_73 : f32 to vector<16x1xf32>
    %160 = arith.divf %158, %159 : vector<16x1xf32>
    %161 = vector.broadcast %153 : vector<16x1xf32> to vector<16x128xf32>
    %162 = arith.subf %145, %161 : vector<16x128xf32>
    %cst_74 = arith.constant 9.99999974E-6 : f32
    %163 = vector.broadcast %cst_74 : f32 to vector<16x1xf32>
    %164 = arith.addf %160, %163 : vector<16x1xf32>
    %165 = math.rsqrt %164 : vector<16x1xf32>
    %166 = vector.broadcast %165 : vector<16x1xf32> to vector<16x128xf32>
    %167 = arith.mulf %162, %166 : vector<16x128xf32>
    %168 = vector.broadcast %147 : vector<1x128xf32> to vector<16x128xf32>
    %169 = arith.mulf %167, %168 : vector<16x128xf32>
    %170 = vector.broadcast %149 : vector<1x128xf32> to vector<16x128xf32>
    %171 = arith.addf %169, %170 : vector<16x128xf32>
    %c0_75 = arith.constant 0 : index
    %c1_76 = arith.constant 1 : index
    %c0_77 = arith.constant 0 : index
    %c0_78 = arith.constant 0 : index
    %172 = vector.load %arg4[%c0_75, %c1_76, %c0_77, %c0_78] : memref<1x2x128x384xbf16, #tpu.memory_space<vmem>>, vector<1x1x128x384xbf16>
    %173 = vector.shape_cast %172 : vector<1x1x128x384xbf16> to vector<128x384xbf16>
    %174 = arith.truncf %171 : vector<16x128xf32> to vector<16x128xbf16>
    %cst_79 = arith.constant dense<0.000000e+00> : vector<16x384xf32>
    %175 = tpu.matmul %174, %173, %cst_79 {dimension_numbers = #tpu.dot_dimension_numbers<[1], [0], [0], [1], [0, 0, 1, 1], [], []>} : vector<16x128xbf16>, vector<128x384xbf16>, vector<16x384xf32> -> vector<16x384xf32>
    %c0_80 = arith.constant 0 : index
    %c9 = arith.constant 9 : index
    %c0_81 = arith.constant 0 : index
    %176 = vector.load %arg8[%c0_80, %c9, %c0_81] : memref<1x17x2048xf32, #tpu.memory_space<vmem>>, vector<1x1x384xf32>
    %177 = vector.shape_cast %176 : vector<1x1x384xf32> to vector<1x384xf32>
    %178 = vector.broadcast %177 : vector<1x384xf32> to vector<16x384xf32>
    %179 = arith.addf %175, %178 : vector<16x384xf32>
    %180 = vector.shape_cast %179 : vector<16x384xf32> to vector<2x8x384xf32>
    %181 = vector.extract_strided_slice %180 {offsets = [0, 0, 0], sizes = [2, 8, 32], strides = [1, 1, 1]} : vector<2x8x384xf32> to vector<2x8x32xf32>
    %182 = vector.extract_strided_slice %180 {offsets = [0, 0, 128], sizes = [2, 8, 32], strides = [1, 1, 1]} : vector<2x8x384xf32> to vector<2x8x32xf32>
    %183 = vector.extract_strided_slice %180 {offsets = [0, 0, 256], sizes = [2, 8, 32], strides = [1, 1, 1]} : vector<2x8x384xf32> to vector<2x8x32xf32>
    %cst_82 = arith.constant dense<0.000000e+00> : vector<2x8x8xf32>
    %184 = tpu.matmul %181, %182, %cst_82 {dimension_numbers = #tpu.dot_dimension_numbers<[2], [2], [1], [1], [0, 0, 0, 1, 1, 1], [0], [0]>} : vector<2x8x32xf32>, vector<2x8x32xf32>, vector<2x8x8xf32> -> vector<2x8x8xf32>
    %185 = vector.broadcast %4 : vector<2x1x8xf32> to vector<2x8x8xf32>
    %186 = arith.addf %184, %185 : vector<2x8x8xf32>
    %cst_83 = arith.constant dense<0xFF800000> : vector<2x8xf32>
    %187 = vector.multi_reduction <maximumf>, %186, %cst_83 [2] : vector<2x8x8xf32> to vector<2x8xf32>
    %188 = vector.shape_cast %187 : vector<2x8xf32> to vector<2x8x1xf32>
    %189 = vector.broadcast %188 : vector<2x8x1xf32> to vector<2x8x8xf32>
    %190 = arith.subf %186, %189 : vector<2x8x8xf32>
    %191 = math.exp %190 : vector<2x8x8xf32>
    %cst_84 = arith.constant dense<0.000000e+00> : vector<2x8xf32>
    %192 = vector.multi_reduction <add>, %191, %cst_84 [2] : vector<2x8x8xf32> to vector<2x8xf32>
    %193 = vector.shape_cast %192 : vector<2x8xf32> to vector<2x8x1xf32>
    %194 = vector.broadcast %193 : vector<2x8x1xf32> to vector<2x8x8xf32>
    %195 = arith.divf %191, %194 : vector<2x8x8xf32>
    %cst_85 = arith.constant dense<0.000000e+00> : vector<2x8x32xf32>
    %196 = tpu.matmul %195, %183, %cst_85 {dimension_numbers = #tpu.dot_dimension_numbers<[2], [1], [1], [2], [0, 0, 0, 1, 1, 2], [0], [0]>} : vector<2x8x8xf32>, vector<2x8x32xf32>, vector<2x8x32xf32> -> vector<2x8x32xf32>
    %197 = vector.extract_strided_slice %180 {offsets = [0, 0, 32], sizes = [2, 8, 32], strides = [1, 1, 1]} : vector<2x8x384xf32> to vector<2x8x32xf32>
    %198 = vector.extract_strided_slice %180 {offsets = [0, 0, 160], sizes = [2, 8, 32], strides = [1, 1, 1]} : vector<2x8x384xf32> to vector<2x8x32xf32>
    %199 = vector.extract_strided_slice %180 {offsets = [0, 0, 288], sizes = [2, 8, 32], strides = [1, 1, 1]} : vector<2x8x384xf32> to vector<2x8x32xf32>
    %cst_86 = arith.constant dense<0.000000e+00> : vector<2x8x8xf32>
    %200 = tpu.matmul %197, %198, %cst_86 {dimension_numbers = #tpu.dot_dimension_numbers<[2], [2], [1], [1], [0, 0, 0, 1, 1, 1], [0], [0]>} : vector<2x8x32xf32>, vector<2x8x32xf32>, vector<2x8x8xf32> -> vector<2x8x8xf32>
    %201 = vector.broadcast %4 : vector<2x1x8xf32> to vector<2x8x8xf32>
    %202 = arith.addf %200, %201 : vector<2x8x8xf32>
    %cst_87 = arith.constant dense<0xFF800000> : vector<2x8xf32>
    %203 = vector.multi_reduction <maximumf>, %202, %cst_87 [2] : vector<2x8x8xf32> to vector<2x8xf32>
    %204 = vector.shape_cast %203 : vector<2x8xf32> to vector<2x8x1xf32>
    %205 = vector.broadcast %204 : vector<2x8x1xf32> to vector<2x8x8xf32>
    %206 = arith.subf %202, %205 : vector<2x8x8xf32>
    %207 = math.exp %206 : vector<2x8x8xf32>
    %cst_88 = arith.constant dense<0.000000e+00> : vector<2x8xf32>
    %208 = vector.multi_reduction <add>, %207, %cst_88 [2] : vector<2x8x8xf32> to vector<2x8xf32>
    %209 = vector.shape_cast %208 : vector<2x8xf32> to vector<2x8x1xf32>
    %210 = vector.broadcast %209 : vector<2x8x1xf32> to vector<2x8x8xf32>
    %211 = arith.divf %207, %210 : vector<2x8x8xf32>
    %cst_89 = arith.constant dense<0.000000e+00> : vector<2x8x32xf32>
    %212 = tpu.matmul %211, %199, %cst_89 {dimension_numbers = #tpu.dot_dimension_numbers<[2], [1], [1], [2], [0, 0, 0, 1, 1, 2], [0], [0]>} : vector<2x8x8xf32>, vector<2x8x32xf32>, vector<2x8x32xf32> -> vector<2x8x32xf32>
    %213 = vector.extract_strided_slice %180 {offsets = [0, 0, 64], sizes = [2, 8, 32], strides = [1, 1, 1]} : vector<2x8x384xf32> to vector<2x8x32xf32>
    %214 = vector.extract_strided_slice %180 {offsets = [0, 0, 192], sizes = [2, 8, 32], strides = [1, 1, 1]} : vector<2x8x384xf32> to vector<2x8x32xf32>
    %215 = vector.extract_strided_slice %180 {offsets = [0, 0, 320], sizes = [2, 8, 32], strides = [1, 1, 1]} : vector<2x8x384xf32> to vector<2x8x32xf32>
    %cst_90 = arith.constant dense<0.000000e+00> : vector<2x8x8xf32>
    %216 = tpu.matmul %213, %214, %cst_90 {dimension_numbers = #tpu.dot_dimension_numbers<[2], [2], [1], [1], [0, 0, 0, 1, 1, 1], [0], [0]>} : vector<2x8x32xf32>, vector<2x8x32xf32>, vector<2x8x8xf32> -> vector<2x8x8xf32>
    %217 = vector.broadcast %4 : vector<2x1x8xf32> to vector<2x8x8xf32>
    %218 = arith.addf %216, %217 : vector<2x8x8xf32>
    %cst_91 = arith.constant dense<0xFF800000> : vector<2x8xf32>
    %219 = vector.multi_reduction <maximumf>, %218, %cst_91 [2] : vector<2x8x8xf32> to vector<2x8xf32>
    %220 = vector.shape_cast %219 : vector<2x8xf32> to vector<2x8x1xf32>
    %221 = vector.broadcast %220 : vector<2x8x1xf32> to vector<2x8x8xf32>
    %222 = arith.subf %218, %221 : vector<2x8x8xf32>
    %223 = math.exp %222 : vector<2x8x8xf32>
    %cst_92 = arith.constant dense<0.000000e+00> : vector<2x8xf32>
    %224 = vector.multi_reduction <add>, %223, %cst_92 [2] : vector<2x8x8xf32> to vector<2x8xf32>
    %225 = vector.shape_cast %224 : vector<2x8xf32> to vector<2x8x1xf32>
    %226 = vector.broadcast %225 : vector<2x8x1xf32> to vector<2x8x8xf32>
    %227 = arith.divf %223, %226 : vector<2x8x8xf32>
    %cst_93 = arith.constant dense<0.000000e+00> : vector<2x8x32xf32>
    %228 = tpu.matmul %227, %215, %cst_93 {dimension_numbers = #tpu.dot_dimension_numbers<[2], [1], [1], [2], [0, 0, 0, 1, 1, 2], [0], [0]>} : vector<2x8x8xf32>, vector<2x8x32xf32>, vector<2x8x32xf32> -> vector<2x8x32xf32>
    %229 = vector.extract_strided_slice %180 {offsets = [0, 0, 96], sizes = [2, 8, 32], strides = [1, 1, 1]} : vector<2x8x384xf32> to vector<2x8x32xf32>
    %230 = vector.extract_strided_slice %180 {offsets = [0, 0, 224], sizes = [2, 8, 32], strides = [1, 1, 1]} : vector<2x8x384xf32> to vector<2x8x32xf32>
    %231 = vector.extract_strided_slice %180 {offsets = [0, 0, 352], sizes = [2, 8, 32], strides = [1, 1, 1]} : vector<2x8x384xf32> to vector<2x8x32xf32>
    %cst_94 = arith.constant dense<0.000000e+00> : vector<2x8x8xf32>
    %232 = tpu.matmul %229, %230, %cst_94 {dimension_numbers = #tpu.dot_dimension_numbers<[2], [2], [1], [1], [0, 0, 0, 1, 1, 1], [0], [0]>} : vector<2x8x32xf32>, vector<2x8x32xf32>, vector<2x8x8xf32> -> vector<2x8x8xf32>
    %233 = vector.broadcast %4 : vector<2x1x8xf32> to vector<2x8x8xf32>
    %234 = arith.addf %232, %233 : vector<2x8x8xf32>
    %cst_95 = arith.constant dense<0xFF800000> : vector<2x8xf32>
    %235 = vector.multi_reduction <maximumf>, %234, %cst_95 [2] : vector<2x8x8xf32> to vector<2x8xf32>
    %236 = vector.shape_cast %235 : vector<2x8xf32> to vector<2x8x1xf32>
    %237 = vector.broadcast %236 : vector<2x8x1xf32> to vector<2x8x8xf32>
    %238 = arith.subf %234, %237 : vector<2x8x8xf32>
    %239 = math.exp %238 : vector<2x8x8xf32>
    %cst_96 = arith.constant dense<0.000000e+00> : vector<2x8xf32>
    %240 = vector.multi_reduction <add>, %239, %cst_96 [2] : vector<2x8x8xf32> to vector<2x8xf32>
    %241 = vector.shape_cast %240 : vector<2x8xf32> to vector<2x8x1xf32>
    %242 = vector.broadcast %241 : vector<2x8x1xf32> to vector<2x8x8xf32>
    %243 = arith.divf %239, %242 : vector<2x8x8xf32>
    %cst_97 = arith.constant dense<0.000000e+00> : vector<2x8x32xf32>
    %244 = tpu.matmul %243, %231, %cst_97 {dimension_numbers = #tpu.dot_dimension_numbers<[2], [1], [1], [2], [0, 0, 0, 1, 1, 2], [0], [0]>} : vector<2x8x8xf32>, vector<2x8x32xf32>, vector<2x8x32xf32> -> vector<2x8x32xf32>
    %245 = tpu.concatenate %196, %212, %228, %244 in 2 : vector<2x8x32xf32>, vector<2x8x32xf32>, vector<2x8x32xf32>, vector<2x8x32xf32> -> vector<2x8x128xf32>
    %246 = vector.shape_cast %245 : vector<2x8x128xf32> to vector<16x128xf32>
    %c0_98 = arith.constant 0 : index
    %c1_99 = arith.constant 1 : index
    %c0_100 = arith.constant 0 : index
    %c0_101 = arith.constant 0 : index
    %247 = vector.load %arg5[%c0_98, %c1_99, %c0_100, %c0_101] : memref<1x2x128x128xbf16, #tpu.memory_space<vmem>>, vector<1x1x128x128xbf16>
    %248 = vector.shape_cast %247 : vector<1x1x128x128xbf16> to vector<128x128xbf16>
    %249 = arith.truncf %246 : vector<16x128xf32> to vector<16x128xbf16>
    %cst_102 = arith.constant dense<0.000000e+00> : vector<16x128xf32>
    %250 = tpu.matmul %249, %248, %cst_102 {dimension_numbers = #tpu.dot_dimension_numbers<[1], [0], [0], [1], [0, 0, 1, 1], [], []>} : vector<16x128xbf16>, vector<128x128xbf16>, vector<16x128xf32> -> vector<16x128xf32>
    %c0_103 = arith.constant 0 : index
    %c10 = arith.constant 10 : index
    %c0_104 = arith.constant 0 : index
    %251 = vector.load %arg8[%c0_103, %c10, %c0_104] : memref<1x17x2048xf32, #tpu.memory_space<vmem>>, vector<1x1x128xf32>
    %252 = vector.shape_cast %251 : vector<1x1x128xf32> to vector<1x128xf32>
    %253 = vector.broadcast %252 : vector<1x128xf32> to vector<16x128xf32>
    %254 = arith.addf %250, %253 : vector<16x128xf32>
    %255 = arith.addf %171, %254 : vector<16x128xf32>
    %c0_105 = arith.constant 0 : index
    %c11 = arith.constant 11 : index
    %c0_106 = arith.constant 0 : index
    %256 = vector.load %arg8[%c0_105, %c11, %c0_106] : memref<1x17x2048xf32, #tpu.memory_space<vmem>>, vector<1x1x128xf32>
    %257 = vector.shape_cast %256 : vector<1x1x128xf32> to vector<1x128xf32>
    %c0_107 = arith.constant 0 : index
    %c12 = arith.constant 12 : index
    %c0_108 = arith.constant 0 : index
    %258 = vector.load %arg8[%c0_107, %c12, %c0_108] : memref<1x17x2048xf32, #tpu.memory_space<vmem>>, vector<1x1x128xf32>
    %259 = vector.shape_cast %258 : vector<1x1x128xf32> to vector<1x128xf32>
    %cst_109 = arith.constant dense<0.000000e+00> : vector<16xf32>
    %260 = vector.multi_reduction <add>, %255, %cst_109 [1] : vector<16x128xf32> to vector<16xf32>
    %261 = vector.shape_cast %260 : vector<16xf32> to vector<16x1xf32>
    %cst_110 = arith.constant 1.280000e+02 : f32
    %262 = vector.broadcast %cst_110 : f32 to vector<16x1xf32>
    %263 = arith.divf %261, %262 : vector<16x1xf32>
    %264 = vector.broadcast %263 : vector<16x1xf32> to vector<16x128xf32>
    %265 = arith.subf %255, %264 : vector<16x128xf32>
    %266 = arith.mulf %265, %265 : vector<16x128xf32>
    %cst_111 = arith.constant dense<0.000000e+00> : vector<16xf32>
    %267 = vector.multi_reduction <add>, %266, %cst_111 [1] : vector<16x128xf32> to vector<16xf32>
    %268 = vector.shape_cast %267 : vector<16xf32> to vector<16x1xf32>
    %cst_112 = arith.constant 1.280000e+02 : f32
    %269 = vector.broadcast %cst_112 : f32 to vector<16x1xf32>
    %270 = arith.divf %268, %269 : vector<16x1xf32>
    %271 = vector.broadcast %263 : vector<16x1xf32> to vector<16x128xf32>
    %272 = arith.subf %255, %271 : vector<16x128xf32>
    %cst_113 = arith.constant 9.99999974E-6 : f32
    %273 = vector.broadcast %cst_113 : f32 to vector<16x1xf32>
    %274 = arith.addf %270, %273 : vector<16x1xf32>
    %275 = math.rsqrt %274 : vector<16x1xf32>
    %276 = vector.broadcast %275 : vector<16x1xf32> to vector<16x128xf32>
    %277 = arith.mulf %272, %276 : vector<16x128xf32>
    %278 = vector.broadcast %257 : vector<1x128xf32> to vector<16x128xf32>
    %279 = arith.mulf %277, %278 : vector<16x128xf32>
    %280 = vector.broadcast %259 : vector<1x128xf32> to vector<16x128xf32>
    %281 = arith.addf %279, %280 : vector<16x128xf32>
    %c0_114 = arith.constant 0 : index
    %c1_115 = arith.constant 1 : index
    %c0_116 = arith.constant 0 : index
    %c0_117 = arith.constant 0 : index
    %282 = vector.load %arg6[%c0_114, %c1_115, %c0_116, %c0_117] : memref<1x2x128x2048xbf16, #tpu.memory_space<vmem>>, vector<1x1x128x2048xbf16>
    %283 = vector.shape_cast %282 : vector<1x1x128x2048xbf16> to vector<128x2048xbf16>
    %284 = arith.truncf %281 : vector<16x128xf32> to vector<16x128xbf16>
    %cst_118 = arith.constant dense<0.000000e+00> : vector<16x2048xf32>
    %285 = tpu.matmul %284, %283, %cst_118 {dimension_numbers = #tpu.dot_dimension_numbers<[1], [0], [0], [1], [0, 0, 1, 1], [], []>} : vector<16x128xbf16>, vector<128x2048xbf16>, vector<16x2048xf32> -> vector<16x2048xf32>
    %c0_119 = arith.constant 0 : index
    %c13 = arith.constant 13 : index
    %c0_120 = arith.constant 0 : index
    %286 = vector.load %arg8[%c0_119, %c13, %c0_120] : memref<1x17x2048xf32, #tpu.memory_space<vmem>>, vector<1x1x2048xf32>
    %287 = vector.shape_cast %286 : vector<1x1x2048xf32> to vector<1x2048xf32>
    %288 = vector.broadcast %287 : vector<1x2048xf32> to vector<16x2048xf32>
    %289 = arith.addf %285, %288 : vector<16x2048xf32>
    %cst_121 = arith.constant 0.000000e+00 : f32
    %290 = vector.broadcast %cst_121 : f32 to vector<16x2048xf32>
    %291 = arith.maximumf %289, %290 : vector<16x2048xf32>
    %c0_122 = arith.constant 0 : index
    %c1_123 = arith.constant 1 : index
    %c0_124 = arith.constant 0 : index
    %c0_125 = arith.constant 0 : index
    %292 = vector.load %arg7[%c0_122, %c1_123, %c0_124, %c0_125] : memref<1x2x2048x128xbf16, #tpu.memory_space<vmem>>, vector<1x1x2048x128xbf16>
    %293 = vector.shape_cast %292 : vector<1x1x2048x128xbf16> to vector<2048x128xbf16>
    %294 = arith.truncf %291 : vector<16x2048xf32> to vector<16x2048xbf16>
    %cst_126 = arith.constant dense<0.000000e+00> : vector<16x128xf32>
    %295 = tpu.matmul %294, %293, %cst_126 {dimension_numbers = #tpu.dot_dimension_numbers<[1], [0], [0], [1], [0, 0, 1, 1], [], []>} : vector<16x2048xbf16>, vector<2048x128xbf16>, vector<16x128xf32> -> vector<16x128xf32>
    %c0_127 = arith.constant 0 : index
    %c14 = arith.constant 14 : index
    %c0_128 = arith.constant 0 : index
    %296 = vector.load %arg8[%c0_127, %c14, %c0_128] : memref<1x17x2048xf32, #tpu.memory_space<vmem>>, vector<1x1x128xf32>
    %297 = vector.shape_cast %296 : vector<1x1x128xf32> to vector<1x128xf32>
    %298 = vector.broadcast %297 : vector<1x128xf32> to vector<16x128xf32>
    %299 = arith.addf %295, %298 : vector<16x128xf32>
    %300 = arith.addf %281, %299 : vector<16x128xf32>
    %c0_129 = arith.constant 0 : index
    %c15 = arith.constant 15 : index
    %c0_130 = arith.constant 0 : index
    %301 = vector.load %arg8[%c0_129, %c15, %c0_130] : memref<1x17x2048xf32, #tpu.memory_space<vmem>>, vector<1x1x128xf32>
    %302 = vector.shape_cast %301 : vector<1x1x128xf32> to vector<1x128xf32>
    %c0_131 = arith.constant 0 : index
    %c16 = arith.constant 16 : index
    %c0_132 = arith.constant 0 : index
    %303 = vector.load %arg8[%c0_131, %c16, %c0_132] : memref<1x17x2048xf32, #tpu.memory_space<vmem>>, vector<1x1x128xf32>
    %304 = vector.shape_cast %303 : vector<1x1x128xf32> to vector<1x128xf32>
    %cst_133 = arith.constant dense<0.000000e+00> : vector<16xf32>
    %305 = vector.multi_reduction <add>, %300, %cst_133 [1] : vector<16x128xf32> to vector<16xf32>
    %306 = vector.shape_cast %305 : vector<16xf32> to vector<16x1xf32>
    %cst_134 = arith.constant 1.280000e+02 : f32
    %307 = vector.broadcast %cst_134 : f32 to vector<16x1xf32>
    %308 = arith.divf %306, %307 : vector<16x1xf32>
    %309 = vector.broadcast %308 : vector<16x1xf32> to vector<16x128xf32>
    %310 = arith.subf %300, %309 : vector<16x128xf32>
    %311 = arith.mulf %310, %310 : vector<16x128xf32>
    %cst_135 = arith.constant dense<0.000000e+00> : vector<16xf32>
    %312 = vector.multi_reduction <add>, %311, %cst_135 [1] : vector<16x128xf32> to vector<16xf32>
    %313 = vector.shape_cast %312 : vector<16xf32> to vector<16x1xf32>
    %cst_136 = arith.constant 1.280000e+02 : f32
    %314 = vector.broadcast %cst_136 : f32 to vector<16x1xf32>
    %315 = arith.divf %313, %314 : vector<16x1xf32>
    %316 = vector.broadcast %308 : vector<16x1xf32> to vector<16x128xf32>
    %317 = arith.subf %300, %316 : vector<16x128xf32>
    %cst_137 = arith.constant 9.99999974E-6 : f32
    %318 = vector.broadcast %cst_137 : f32 to vector<16x1xf32>
    %319 = arith.addf %315, %318 : vector<16x1xf32>
    %320 = math.rsqrt %319 : vector<16x1xf32>
    %321 = vector.broadcast %320 : vector<16x1xf32> to vector<16x128xf32>
    %322 = arith.mulf %317, %321 : vector<16x128xf32>
    %323 = vector.broadcast %302 : vector<1x128xf32> to vector<16x128xf32>
    %324 = arith.mulf %322, %323 : vector<16x128xf32>
    %325 = vector.broadcast %304 : vector<1x128xf32> to vector<16x128xf32>
    %326 = arith.addf %324, %325 : vector<16x128xf32>
    %327 = vector.shape_cast %326 : vector<16x128xf32> to vector<2x8x128xf32>
    %328 = vector.shape_cast %6 : vector<2x8xf32> to vector<2x8x1xf32>
    %329 = vector.broadcast %328 : vector<2x8x1xf32> to vector<2x8x128xf32>
    %330 = arith.mulf %327, %329 : vector<2x8x128xf32>
    %cst_138 = arith.constant dense<0.000000e+00> : vector<2x128xf32>
    %331 = vector.multi_reduction <add>, %330, %cst_138 [1] : vector<2x8x128xf32> to vector<2x128xf32>
    %c0_139 = arith.constant 0 : index
    %c0_140 = arith.constant 0 : index
    %c0_141 = arith.constant 0 : index
    %332 = vector.load %arg9[%c0_139, %c0_140, %c0_141] : memref<1x2x128xf32, #tpu.memory_space<vmem>>, vector<1x2x128xf32>
    %333 = vector.shape_cast %332 : vector<1x2x128xf32> to vector<2x128xf32>
    %334 = vector.shape_cast %331 : vector<2x128xf32> to vector<1x2x128xf32>
    tpu.vector_store %arg9[%c0_139, %c0_140, %c0_141], %334 {strides = array<i32>} : memref<1x2x128xf32, #tpu.memory_space<vmem>>, vector<1x2x128xf32>,
    return
  }
  func.func @transform_0(%arg0: i32) -> (i32, i32, i32) {
    %c0_i32 = arith.constant 0 : i32
    %c0_i32_0 = arith.constant 0 : i32
    %c0_i32_1 = arith.constant 0 : i32
    return %arg0, %c0_i32, %c0_i32_0 : i32, i32, i32
  }
  func.func @transform_1(%arg0: i32) -> (i32, i32, i32, i32) {
    %c0_i32 = arith.constant 0 : i32
    %c0_i32_0 = arith.constant 0 : i32
    %c0_i32_1 = arith.constant 0 : i32
    %c0_i32_2 = arith.constant 0 : i32
    return %arg0, %c0_i32, %c0_i32_0, %c0_i32_1 : i32, i32, i32, i32
  }
  func.func @transform_2(%arg0: i32) -> (i32, i32, i32) {
    %c0_i32 = arith.constant 0 : i32
    %c0_i32_0 = arith.constant 0 : i32
    %c0_i32_1 = arith.constant 0 : i32
    return %arg0, %c0_i32, %c0_i32_0 : i32, i32, i32
  }
  func.func @transform_3(%arg0: i32) -> (i32, i32, i32, i32) {
    %c0_i32 = arith.constant 0 : i32
    %c0_i32_0 = arith.constant 0 : i32
    %c0_i32_1 = arith.constant 0 : i32
    %c0_i32_2 = arith.constant 0 : i32
    return %arg0, %c0_i32, %c0_i32_0, %c0_i32_1 : i32, i32, i32, i32
  }
  func.func @transform_4(%arg0: i32) -> (i32, i32, i32, i32) {
    %c0_i32 = arith.constant 0 : i32
    %c0_i32_0 = arith.constant 0 : i32
    %c0_i32_1 = arith.constant 0 : i32
    %c0_i32_2 = arith.constant 0 : i32
    return %arg0, %c0_i32, %c0_i32_0, %c0_i32_1 : i32, i32, i32, i32
  }
  func.func @transform_5(%arg0: i32) -> (i32, i32, i32, i32) {
    %c0_i32 = arith.constant 0 : i32
    %c0_i32_0 = arith.constant 0 : i32
    %c0_i32_1 = arith.constant 0 : i32
    %c0_i32_2 = arith.constant 0 : i32
    return %arg0, %c0_i32, %c0_i32_0, %c0_i32_1 : i32, i32, i32, i32
  }
  func.func @transform_6(%arg0: i32) -> (i32, i32, i32, i32) {
    %c0_i32 = arith.constant 0 : i32
    %c0_i32_0 = arith.constant 0 : i32
    %c0_i32_1 = arith.constant 0 : i32
    %c0_i32_2 = arith.constant 0 : i32
    return %arg0, %c0_i32, %c0_i32_0, %c0_i32_1 : i32, i32, i32, i32
  }
  func.func @transform_7(%arg0: i32) -> (i32, i32, i32) {
    %c0_i32 = arith.constant 0 : i32
    %c0_i32_0 = arith.constant 0 : i32
    %c0_i32_1 = arith.constant 0 : i32
    return %arg0, %c0_i32, %c0_i32_0 : i32, i32, i32
  }
  func.func @transform_8(%arg0: i32) -> (i32, i32, i32) {
    %c0_i32 = arith.constant 0 : i32
    %c0_i32_0 = arith.constant 0 : i32
    %c0_i32_1 = arith.constant 0 : i32
    return %arg0, %c0_i32, %c0_i32_0 : i32, i32, i32
  }
}

</mosaic_0001>

<bundles_post_ra>
// kernel: multi_sensor_teacher_forward.3
= control target key start
LH: loop header
LB: loop body
LE: loop exit
PB: predicated region body
PF: predicated region fallthrough
CT: control target
= control target key end

     0   :  { %v56_v52 = vlaneseq  ;;  %s784_s1 = inlined_call_operand.vmem [shape: bf16[256,256], index: 1, kind: input, shape index: {}]   ;;  %s785_s0 = inlined_call_operand.vmem [shape: f32[2,2,128], index: 0, kind: input, shape index: {}]   ;;  %s786_s2 = inlined_call_operand.vmem [shape: bf16[256,128], index: 2, kind: input, shape index: {}]   ;;  %s787_s3 = inlined_call_operand.vmem [shape: f32[1,384], index: 3, kind: input, shape index: {}]   ;;  %s788_s4 = inlined_call_operand.vmem [shape: f32[2,384], index: 4, kind: output, shape index: {}]  }
   0x1   :  { %v533_v0 = vld [vmem:[%s784_s1 + $0x4] ss:$8 sps:$4 sm:$0xff]   ;;  %v535_v1 = vld [vmem:[%s784_s1] ss:$8 sps:$4 sm:$0xff]   ;;  %v536_v2 = vld [vmem:[%s784_s1 + $0x14] ss:$8 sps:$4 sm:$0xff]  }
   0x2   :  { %226 = vmatprep.subr.bf16.mxu0 %v533_v0  ;;  %v538_v3 = vld [vmem:[%s784_s1 + $0x10] ss:$8 sps:$4 sm:$0xff]   ;;  %v539_v4 = vld [vmem:[%s784_s1 + $0x24] ss:$8 sps:$4 sm:$0xff]   ;;  %v541_v5 = vld [vmem:[%s784_s1 + $0x20] ss:$8 sps:$4 sm:$0xff]  }
   0x3   :  { %227 = vmatpush1.bf16.msra.mxu0 %v535_v1  ;;  %v542_v6 = vld [vmem:[%s784_s1 + $0x34] ss:$8 sps:$4 sm:$0xff]   ;;  %v544_v7 = vld [vmem:[%s784_s1 + $0x30] ss:$8 sps:$4 sm:$0xff]   ;;  %v545_v8 = vld [vmem:[%s784_s1 + $0x44] ss:$8 sps:$4 sm:$0xff]  }
   0x4   :  { %228 = vmatprep.subr.bf16.mxu0 %v536_v2  ;;  %v547_v9 = vld [vmem:[%s784_s1 + $0x40] ss:$8 sps:$4 sm:$0xff]   ;;  %v548_v10 = vld [vmem:[%s784_s1 + $0x54] ss:$8 sps:$4 sm:$0xff]   ;;  %v550_v11 = vld [vmem:[%s784_s1 + $0x50] ss:$8 sps:$4 sm:$0xff]  }
   0x5   :  { %v551_v12 = vld [vmem:[%s784_s1 + $0x64] ss:$8 sps:$4 sm:$0xff]   ;;  %v553_v13 = vld [vmem:[%s784_s1 + $0x60] ss:$8 sps:$4 sm:$0xff]   ;;  %v554_v15 = vld [vmem:[%s784_s1 + $0x74] ss:$8 sps:$4 sm:$0xff]  }
   0x6   :  { %v19_v14 = vld [vmem:[%s785_s0 + $0x2] sm:$0x3]  ;;  %v583_v19 = vld [vmem:[%s786_s2 + $0x48] sm:$0xff]   ;;  %v556_v20 = vld [vmem:[%s784_s1 + $0x70] ss:$8 sps:$4 sm:$0xff]   ;;  %v57_v53 = vshrl.u32 %v56_v52, 7 }
   0x7   :  { %229 = vmatpush1.bf16.msra.mxu0 %v538_v3  ;;  %v21_v16 = vpack.c.bf16 %v19_v14, %v19_v14  ;;  %v581_v17 = vld [vmem:[%s786_s2 + $0x40] sm:$0xff]   ;;  %v584_v21 = vld [vmem:[%s786_s2 + $0x8] sm:$0xff]   ;;  %v585_v22 = vld [vmem:[%s786_s2 + $0x50] sm:$0xff]  }
   0x8   :  { %230 = vmatprep.subr.bf16.mxu0 %v539_v4  ;;  %v582_v18 = vld [vmem:[%s786_s2] sm:$0xff]   ;;  %511 = vmatprep.subr.bf16.mxu1 %v581_v17  ;;  %v586_v25 = vld [vmem:[%s786_s2 + $0x10] sm:$0xff]   ;;  %v587_v26 = vld [vmem:[%s786_s2 + $0x58] sm:$0xff]   ;;  %v58_v54 = vsub.s32 0, %v57_v53  ;;  %v62_v56 = vsub.s32 1, %v57_v53 }
   0x9   :  { %258 = vmatprep.mubr.bf16.mxu0 %v21_v16  ;;  %512 = vmatpush3.bf16.msra.mxu1 %v582_v18  ;;  %v557_v23 = vld [vmem:[%s784_s1 + $0x84] ss:$8 sps:$4 sm:$0xff]   ;;  %v559_v24 = vld [vmem:[%s784_s1 + $0x80] ss:$8 sps:$4 sm:$0xff]   ;;  %v560_v27 = vld [vmem:[%s784_s1 + $0x94] ss:$8 sps:$4 sm:$0xff]  }
   0xa   :  { %513 = vmatprep.subr.bf16.mxu1 %v583_v19  ;;  %v562_v28 = vld [vmem:[%s784_s1 + $0x90] ss:$8 sps:$4 sm:$0xff]   ;;  %v563_v29 = vld [vmem:[%s784_s1 + $0xa4] ss:$8 sps:$4 sm:$0xff]   ;;  %v565_v33 = vld [vmem:[%s784_s1 + $0xa0] ss:$8 sps:$4 sm:$0xff]  }
   0xb   :  { %231 = vmatpush1.bf16.msra.mxu0 %v541_v5  ;;  %v588_v30 = vld [vmem:[%s786_s2 + $0x18] sm:$0xff]   ;;  %v589_v31 = vld [vmem:[%s786_s2 + $0x60] sm:$0xff]   ;;  %v591_v34 = vld [vmem:[%s786_s2 + $0x68] sm:$0xff]  }
   0xc   :  { %232 = vmatprep.subr.bf16.mxu0 %v542_v6  ;;  %v590_v32 = vld [vmem:[%s786_s2 + $0x20] sm:$0xff]   ;;  %v566_v35 = vld [vmem:[%s784_s1 + $0xb4] ss:$8 sps:$4 sm:$0xff]   ;;  %v592_v36 = vld [vmem:[%s786_s2 + $0x28] sm:$0xff]  }
   0xd   :  { %514 = vmatpush3.bf16.msra.mxu1 %v584_v21  ;;  %v568_v37 = vld [vmem:[%s784_s1 + $0xb0] ss:$8 sps:$4 sm:$0xff]   ;;  %v569_v39 = vld [vmem:[%s784_s1 + $0xc4] ss:$8 sps:$4 sm:$0xff]   ;;  %v571_v40 = vld [vmem:[%s784_s1 + $0xc0] ss:$8 sps:$4 sm:$0xff]  }
   0xe   :  { %515 = vmatprep.subr.bf16.mxu1 %v585_v22  ;;  %v593_v38 = vld [vmem:[%s786_s2 + $0x70] sm:$0xff]   ;;  %v575_v43 = vld [vmem:[%s784_s1 + $0xe4] ss:$8 sps:$4 sm:$0xff]   ;;  %v577_v44 = vld [vmem:[%s784_s1 + $0xe0] ss:$8 sps:$4 sm:$0xff]  }
   0xf   :  { %233 = vmatpush1.bf16.msra.mxu0 %v544_v7  ;;  %v572_v41 = vld [vmem:[%s784_s1 + $0xd4] ss:$8 sps:$4 sm:$0xff]   ;;  %v574_v42 = vld [vmem:[%s784_s1 + $0xd0] ss:$8 sps:$4 sm:$0xff]   ;;  %v18_v47 = vld [vmem:[%s785_s0] sm:$0x3] }
  0x10   :  { %234 = vmatprep.subr.bf16.mxu0 %v545_v8  ;;  %v578_v45 = vld [vmem:[%s784_s1 + $0xf4] ss:$8 sps:$4 sm:$0xff]   ;;  %v580_v46 = vld [vmem:[%s784_s1 + $0xf0] ss:$8 sps:$4 sm:$0xff]   ;;  %v20_v48 = vpack.c.bf16 %v18_v47, %v18_v47  ;;  %v54_v55 = vld [vmem:[%s787_s3] sm:$0x3] }
  0x11   :  { %516 = vmatpush3.bf16.msra.mxu1 %v586_v25  ;;  %v594_v49 = vld [vmem:[%s786_s2 + $0x30] sm:$0xff]   ;;  %v595_v50 = vld [vmem:[%s786_s2 + $0x78] sm:$0xff]   ;;  %v59_v57 = vrot.slane %v54_v55, %v58_v54  ;;  %v63_v58 = vrot.slane %v54_v55, %v62_v56  ;;  %v493_v5 = vld [vmem:[%s787_s3 + $0x2] ss:$0 sm:$0xff] }
  0x12   :  { %517 = vmatprep.subr.bf16.mxu1 %v587_v26  ;;  %v596_v51 = vld [vmem:[%s786_s2 + $0x38] sm:$0xff]  }
  0x13   :  { %235 = vmatpush1.bf16.msra.mxu0 %v547_v9 }
  0x14   :  { %236 = vmatprep.subr.bf16.mxu0 %v548_v10 }
  0x15   :  { %518 = vmatpush3.bf16.msra.mxu1 %v588_v30 }
  0x16   :  { %519 = vmatprep.subr.bf16.mxu1 %v589_v31 }
  0x17   :  { %237 = vmatpush1.bf16.msra.mxu0 %v550_v11 }
  0x18   :  { %238 = vmatprep.subr.bf16.mxu0 %v551_v12 }
  0x19   :  { %520 = vmatpush3.bf16.msra.mxu1 %v590_v32 }
  0x1a   :  { %521 = vmatprep.subr.bf16.mxu1 %v591_v34 }
  0x1b   :  { %239 = vmatpush1.bf16.msra.mxu0 %v553_v13 }
  0x1c   :  { %240 = vmatprep.subr.bf16.mxu0 %v554_v15 }
  0x1d   :  { %522 = vmatpush3.bf16.msra.mxu1 %v592_v36 }
  0x1e   :  { %523 = vmatprep.subr.bf16.mxu1 %v593_v38 }
  0x1f   :  { %241 = vmatpush1.bf16.msra.mxu0 %v556_v20 }
  0x20   :  { %242 = vmatprep.subr.bf16.mxu0 %v557_v23 }
  0x21   :  { %524 = vmatpush3.bf16.msra.mxu1 %v594_v49 }
  0x22   :  { %525 = vmatprep.subr.bf16.mxu1 %v595_v50 }
  0x23   :  { %243 = vmatpush1.bf16.msra.mxu0 %v559_v24 }
  0x24   :  { %244 = vmatprep.subr.bf16.mxu0 %v560_v27 }
  0x25   :  { %526 = vmatpush3.bf16.msra.mxu1 %v596_v51 }
  0x27   :  { %245 = vmatpush1.bf16.msra.mxu0 %v562_v28 }
  0x28   :  { %246 = vmatprep.subr.bf16.mxu0 %v563_v29 }
  0x2b   :  { %247 = vmatpush1.bf16.msra.mxu0 %v565_v33 }
  0x2c   :  { %248 = vmatprep.subr.bf16.mxu0 %v566_v35 }
  0x2f   :  { %249 = vmatpush1.bf16.msra.mxu0 %v568_v37 }
  0x30   :  { %250 = vmatprep.subr.bf16.mxu0 %v569_v39 }
  0x33   :  { %251 = vmatpush1.bf16.msra.mxu0 %v571_v40 }
  0x34   :  { %252 = vmatprep.subr.bf16.mxu0 %v572_v41 }
  0x37   :  { %253 = vmatpush1.bf16.msra.mxu0 %v574_v42 }
  0x38   :  { %254 = vmatprep.subr.bf16.mxu0 %v575_v43 }
  0x3b   :  { %255 = vmatpush1.bf16.msra.mxu0 %v577_v44 }
  0x3c   :  { %256 = vmatprep.subr.bf16.mxu0 %v578_v45 }
  0x3f   :  { %257 = vmatpush1.bf16.msra.mxu0 %v580_v46 }
  0x42   :  { %259 = vmatmul.mubr.bf16.vlgmr.msra.gmra.mrb[0].mxu0 %v20_v48 }
 0x115   :  { %v260_v59 = vpop.f32.mrb[0].mxu0 }
 0x116   :  { %v261_v60 = vadd.f32 %v260_v59, %v59_v57  ;;  %v262_v61 = vpop.f32.mrb[1].mxu0 }
 0x117   :  { %v263_v62 = vadd.f32 %v262_v61, %v63_v58  ;;  %v264_v63 = vpop.f32.mrb[2].mxu0 }
 0x118   :  { %v265_v0 = vpop.f32.mrb[3].mxu0  ;;  %v267_v3 = vpack.c.bf16 %v261_v60, %v261_v60 }
 0x119   :  { %v446_v1 = vcombine.low %v261_v60, %v263_v62  ;;  %v268_v2 = vpack.c.bf16 %v263_v62, %v263_v62 }
 0x11b   :  { %510 = vst.sshfl [vmem:[%s788_s4] sm:$0x33 pattern:$0x76325410] %v446_v1  ;;  %436 = vmatprep.mubr.bf16.mxu1 %v268_v2 }
 0x11c   :  { %437 = vmatmul.mubr.bf16.vlgmr.msra.gmra.mrb[0].mxu1 %v267_v3 }
 0x1ef   :  { %v527_v4 = vpop.f32.mrb[0].mxu1 }
 0x1f0   :  { %v528_v6 = vpop.f32.mrb[1].mxu1 }
 0x1f1   :  { %v529_v7 = vadd.f32 %v528_v6, %v527_v4  ;;  %v530_v8 = vpop.f32.mrb[2].mxu1 }
 0x1f2   :  { %v531_v9 = vpop.f32.mrb[3].mxu1 }
 0x1f3   :  { %v439_v10 = vadd.f32 %v529_v7, %v493_v5 }
 0x1f5   :  { %456 = vst [vmem:[%s788_s4 + $0x4] sm:$0x3] %v439_v10 }

// kernel: multi_sensor_teacher_forward.2
= control target key start
LH: loop header
LB: loop body
LE: loop exit
PB: predicated region body
PF: predicated region fallthrough
CT: control target
= control target key end

     0   :  { %s13802_s0 = inlined_call_operand.vmem [shape: f32[2,16,128], index: 0, kind: input, shape index: {}]   ;;  %s13803_s1 = inlined_call_operand.vmem [shape: f32[2,2,2,8], index: 1, kind: input, shape index: {}]   ;;  %s13804_s2 = inlined_call_operand.hbm [shape: bf16[2,128,128], index: 2, kind: input, shape index: {}]   ;;  %s13805_s3 = inlined_call_operand.hbm [shape: bf16[2,2,128,384], index: 3, kind: input, shape index: {}]   ;;  %s13806_s4 = inlined_call_operand.hbm [shape: bf16[2,2,128,128], index: 4, kind: input, shape index: {}]   ;;  %s13807_s5 = inlined_call_operand.hbm [shape: bf16[2,2,128,2048], index: 5, kind: input, shape index: {}]   ;;  %s13808_s6 = inlined_call_operand.hbm [shape: bf16[2,2,2048,128], index: 6, kind: input, shape index: {}]   ;;  %s13809_s7 = inlined_call_operand.vmem [shape: f32[2,17,2048], index: 7, kind: input, shape index: {}]   ;;  %s13810_s8 = inlined_call_operand.vmem [shape: f32[2,2,128], index: 8, kind: output, shape index: {}]  }
   0x1   :  { %13816 = sst [smem:[#allocation16_spill]] %s13803_s1 }
   0x2   :  { %13817 = sst [smem:[#allocation17_spill]] %s13805_s3 }
   0x3   :  { %13818 = sst [smem:[#allocation18_spill]] %s13807_s5 }
   0x4   :  { %13819 = sst [smem:[#allocation19_spill]] %s13810_s8 }
   0x5   :  { %13 = vsyncpa [#allocation3], 0 }
   0x6   :  { %15 = vsyncpa [#allocation3 + $0x1], 0 }
   0x7   :  { %16 = vsyncpa [#allocation5], 0 }
   0x8   :  { %18 = vsyncpa [#allocation5 + $0x1], 0 }
   0x9   :  { %19 = vsyncpa [#allocation8], 0 }
   0xa   :  { %21 = vsyncpa [#allocation8 + $0x1], 0  ;;  %s12281_s27 = smov 0   ;;  %s12283_s28 = smov 0  }
   0xb   :  { %s12285_s29 = smov 0   ;;  %s12287_s30 = smov 0  }
   0xc LB: > { %13820 = sst [smem:[#allocation13_spill]] %s12213_s29  ;;  %s12300_s9 = sadd.s32 4294967295, %s12217_s30   ;;  %s12217_s30 = sphi %s12287_s30, %s13834_s30   ;;  %s12213_s29 = sphi %s12285_s29, %s13836_s29   ;;  %s12209_s28 = sphi %s12283_s28, %s13838_s28   ;;  %s12205_s27 = sphi %s12281_s27, %s13837_s27  }
   0xd   : > { %s12303_s10 = sadd.s32 1, %s12217_s30   ;;  %s86_s12 = sadd.s32 1, %s12213_s29 }
   0xe   : > { %13821 = sst [smem:[#allocation14_spill]] %s12303_s10  ;;  %s83_s11 = ssub.s32 %s12217_s30, %s12303_s10 }
   0xf   : > { %p84_p0 = scmp.eq.s32.totalorder %s83_s11, 0  ;;  %p93_p1 = scmp.ne.s32.totalorder %s12213_s29, %s12209_s28 }
  0x10   : > { %p94_p2 = scmp.eq.s32.totalorder %s12217_s30, 0  ;;  %p99_p3 = scmp.ne.s32.totalorder %s12209_s28, %s12205_s27 }
  0x11   : > { %s12313_s13 = scalar_select %p84_p0, %s12213_s29, %s86_s12  }
  0x12   : > { %p95_p4 = por %p94_p2, %p93_p1  ;;  %p100_p5 = scmp.eq.s32.totalorder %s12300_s9, 0 }
  0x13   : > { %13822 = sst [smem:[#allocation15_spill]] %s12313_s13  ;;  %p11526_p6 = scmp.lt.s32.totalorder %s12217_s30, 2 }
  0x14   : > { %p12317_p7 = por %p100_p5, %p99_p3  ;;  %s12322_s15 = sand.u32 1, %s12213_s29  }
  0x15   : > { %p12324_p8 = pnand %p11526_p6, %p95_p4  ;;  %s316_s17 = sand.u32 1, %s12217_s30  }
  0x16   : > { %s13823_s14 = scalar_select %p12317_p7, 1, 0 }
  0x17   : > { %s11496_s18 = smul.u32 384, %s12322_s15  ;;  %s13825_s3 = sld [smem:[#allocation17_spill]] }
  0x18   : > { %s11497_s19 = smul.u32 6144, %s12217_s30  ;;  %s12340_s25 = scalar_lea.sflag [#allocation5], %s316_s17 }
  0x19   : > { %s320_s23 = scalar_lea.vmem [#allocation4], %s11496_s18  ;;  %p12346_p10 = pneg %p12324_p8 }
  0x1a   : > { %s327_s24 = sshll.u32 %s320_s23, 4  ;;  %s12336_s24 = int_to_ptr.vmem [resolvable:$true] %s327_s24 }
  0x1d   : > { %s12334_s22 = scalar_lea.hbm %s13825_s3, %s11497_s19  ;;  %s12030_s18 = scalar_lea.hbm %s13825_s3, 12288 }
  0x1e   : > { %s12025_s26 = scalar_lea.hbm %s12334_s22, 6144  ;;  %p12031_p13 = scmp.lt.u32.totalorder %s12334_s22, %s13825_s3 }
  0x1f   : > { %p12026_p9 = scmp.ne.s32.totalorder %s12334_s22, %s12025_s26  ;;  %p12032_p0 = scmp.lt.u32.totalorder %s12030_s18, %s12025_s26 }
  0x20   : > { %p12034_p2 = scmp.lt.u32.totalorder %s12025_s26, %s12334_s22 }
  0x21   : > { %p12028_p11 = pnand %p12346_p10, %p12026_p9  ;;  %p12033_p1 = por %p12032_p0, %p12031_p13 }
  0x23   : > { %p12029_p12 = pneg %p12028_p11  ;;  %p12035_p3 = por %p12034_p2, %p12033_p1 }
  0x25   : > { %p12036_p4 = pnand %p12035_p3, %p12029_p12 }
  0x27   : > { %12039 = shalt.err (!%p12036_p4)
}
  0x28   : > { %s12040_s21 = scalar_lea.vmem %s12336_s24, 6144  ;;  %s12219_s23 = smov [#allocation4]  }
  0x29   : > { %p12041_p5 = scmp.ne.s32.totalorder %s12336_s24, %s12040_s21  ;;  %s12045_s11 = sshll.u32 %s12219_s23, 4  ;;  %s12046_s11 = int_to_ptr.vmem [resolvable:$false] %s12045_s11 }
  0x2a   : > { %s12047_s12 = scalar_lea.vmem %s12046_s11, 12288  ;;  %p12048_p11 = scmp.lt.s32.totalorder %s12336_s24, %s12046_s11 }
  0x2b   : > { %p12043_p6 = pnand %p12041_p5, %p12346_p10  ;;  %p12049_p7 = scmp.lt.s32.totalorder %s12047_s12, %s12040_s21 }
  0x2d   : > { %p12044_p9 = pneg %p12043_p6  ;;  %p12050_p13 = por %p12049_p7, %p12048_p11 }
  0x2f   : > { %p12051_p0 = pnand %p12050_p13, %p12044_p9 }
  0x31   : > { %12054 = shalt.err (!%p12051_p0)
}
  0x32   : > { %s12220_s26 = smov 192   ;;  %s12221_s18 = smov 12  }
  0x33   : > { %11516 = dma.hbm_to_vmem [thread:$0]  (!%p12324_p8), %s12334_s22, 6144, %s12336_s24, %s12340_s25, %s12220_s26, %s12220_s26, %s12221_s18  }
  0x34   : > { %p9681_p12 = scmp.ge.s32.totalorder %s12217_s30, 1  ;;  %p406_p7 = scmp.lt.s32.totalorder %s12217_s30, 3 }
  0x35   : > { %s9675_s20 = sshll.u32 %s12322_s15, 11  ;;  %s13812_s21 = sshll.u32 %s12217_s30, 15 }
  0x36   : > { %p12372_p1 = pnand %p9681_p12, %p406_p7  ;;  %s13828_s5 = sld [smem:[#allocation18_spill]] }
  0x37   : > { %s362_s22 = scalar_lea.vmem [#allocation7], %s9675_s20  ;;  %s12391_s26 = scalar_lea.sflag [#allocation8], %s316_s17 }
  0x38   : > { %s13827_s19 = scalar_select %p12372_p1, 1, 0 }
  0x39   : > { %s369_s24 = sshll.u32 %s362_s22, 4  ;;  %s12387_s24 = int_to_ptr.vmem [resolvable:$true] %s369_s24 }
  0x3c   : > { %s12383_s12 = scalar_lea.hbm %s13828_s5, %s13812_s21  ;;  %s12060_s21 = scalar_lea.hbm %s13828_s5, 65536 }
  0x3d   : > { %s12055_s18 = scalar_lea.hbm %s12383_s12, 32768  ;;  %p12061_p5 = scmp.lt.u32.totalorder %s12383_s12, %s13828_s5 }
  0x3e   : > { %p12056_p2 = scmp.ne.s32.totalorder %s12383_s12, %s12055_s18  ;;  %p12062_p6 = scmp.lt.u32.totalorder %s12060_s21, %s12055_s18 }
  0x3f   : > { %p12064_p11 = scmp.lt.u32.totalorder %s12055_s18, %s12383_s12 }
  0x40   : > { %p12058_p3 = pnand %p12056_p2, %p12346_p10  ;;  %p12063_p9 = por %p12062_p6, %p12061_p5 }
  0x42   : > { %p12059_p4 = pneg %p12058_p3  ;;  %p12065_p13 = por %p12064_p11, %p12063_p9 }
  0x44   : > { %p12066_p0 = pnand %p12065_p13, %p12059_p4 }
  0x46   : > { %12069 = shalt.err (!%p12066_p0)
}
  0x47   : > { %s12070_s17 = scalar_lea.vmem %s12387_s24, 32768  ;;  %s12222_s22 = smov [#allocation7]  }
  0x48   : > { %p12071_p12 = scmp.ne.s32.totalorder %s12387_s24, %s12070_s17  ;;  %s12075_s23 = sshll.u32 %s12222_s22, 4  ;;  %s12076_s23 = int_to_ptr.vmem [resolvable:$false] %s12075_s23 }
  0x49   : > { %s12077_s3 = scalar_lea.vmem %s12076_s23, 65536  ;;  %p12078_p3 = scmp.lt.s32.totalorder %s12387_s24, %s12076_s23 }
  0x4a   : > { %p12073_p7 = pnand %p12071_p12, %p12346_p10  ;;  %p12079_p1 = scmp.lt.s32.totalorder %s12077_s3, %s12070_s17 }
  0x4c   : > { %p12074_p2 = pneg %p12073_p7  ;;  %p12080_p5 = por %p12079_p1, %p12078_p3 }
  0x4e   : > { %p12081_p6 = pnand %p12080_p5, %p12074_p2 }
  0x50   : > { %12084 = shalt.err (!%p12081_p6)
}
  0x51   : > { %s12223_s13 = smov 1024   ;;  %s12224_s21 = smov 64  }
  0x52   : > { %11522 = dma.hbm_to_vmem [thread:$0]  (!%p12324_p8), %s12383_s12, 32768, %s12387_s24, %s12391_s26, %s12223_s13, %s12223_s13, %s12224_s21  }
  0x53   : > { %s13829_s18 = sshll.u32 %s12217_s30, 15  ;;  %s12425_s23 = scalar_lea.vmem [#allocation9], %s9675_s20 }
  0x54   : > { %s12421_s22 = scalar_lea.hbm %s13808_s6, %s13829_s18  ;;  %s390_s3 = sshll.u32 %s12425_s23, 4  ;;  %s12473_s3 = int_to_ptr.vmem [resolvable:$true] %s390_s3 }
  0x55   : > { %s9668_s5 = sshll.u32 %s12322_s15, 6  ;;  %s10769_s29 = sshll.u32 %s12217_s30, 10 }
  0x56   : > { %s12433_s1 = scalar_lea.hbm %s13804_s2, %s10769_s29  ;;  %s299_s12 = scalar_lea.vmem [#allocation2], %s9668_s5 }
  0x57   : > { %s306_s24 = sshll.u32 %s299_s12, 4  ;;  %s296_s13 = scalar_lea.sflag [#allocation3], %s12322_s15  ;;  %s12435_s24 = int_to_ptr.vmem [resolvable:$true] %s306_s24 }
  0x58   : > { %s12085_s20 = scalar_lea.hbm %s12433_s1, 1024  ;;  %s12090_s8 = scalar_lea.hbm %s13804_s2, 2048 }
  0x59   : > { %p12086_p1 = scmp.ne.s32.totalorder %s12433_s1, %s12085_s20  ;;  %p12091_p11 = scmp.lt.u32.totalorder %s12433_s1, %s13804_s2 }
  0x5a   : > { %p12092_p13 = scmp.lt.u32.totalorder %s12090_s8, %s12085_s20  ;;  %p12094_p12 = scmp.lt.u32.totalorder %s12085_s20, %s12433_s1 }
  0x5b   : > { %p12088_p4 = pnand %p12086_p1, %p12346_p10 }
  0x5c   : > { %p12093_p0 = por %p12092_p13, %p12091_p11 }
  0x5d   : > { %p12089_p9 = pneg %p12088_p4 }
  0x5e   : > { %p12095_p7 = por %p12094_p12, %p12093_p0 }
  0x60   : > { %p12096_p2 = pnand %p12095_p7, %p12089_p9 }
  0x62   : > { %12099 = shalt.err (!%p12096_p2)
}
  0x63   : > { %s12100_s5 = scalar_lea.vmem %s12435_s24, 1024  ;;  %s12225_s17 = smov [#allocation2]  }
  0x64   : > { %p12101_p3 = scmp.ne.s32.totalorder %s12435_s24, %s12100_s5  ;;  %s12105_s12 = sshll.u32 %s12225_s17, 4  ;;  %s12106_s12 = int_to_ptr.vmem [resolvable:$false] %s12105_s12 }
  0x65   : > { %s12107_s18 = scalar_lea.vmem %s12106_s12, 2048  ;;  %p12108_p1 = scmp.lt.s32.totalorder %s12435_s24, %s12106_s12 }
  0x66   : > { %p12103_p5 = pnand %p12101_p3, %p12346_p10  ;;  %p12109_p4 = scmp.lt.s32.totalorder %s12107_s18, %s12100_s5 }
  0x68   : > { %p12104_p6 = pneg %p12103_p5  ;;  %p12110_p11 = por %p12109_p4, %p12108_p1 }
  0x6a   : > { %p12111_p13 = pnand %p12110_p11, %p12104_p6 }
  0x6c   : > { %12114 = shalt.err (!%p12111_p13)
}
  0x6d   : > { %s12226_s20 = smov 4   ;;  %s9672_s11 = sshll.u32 %s12322_s15, 7 }
  0x6e   : > { %11513 = dma.hbm_to_vmem [thread:$0]  (!%p12324_p8), %s12433_s1, 1024, %s12435_s24, %s296_s13, %s12224_s21, %s12224_s21, %s12226_s20  }
  0x6f   : > { %s10770_s8 = sshll.u32 %s12217_s30, 11  ;;  %s341_s17 = scalar_lea.vmem [#allocation6], %s9672_s11 }
  0x70   : > { %s12469_s5 = scalar_lea.hbm %s13806_s4, %s10770_s8  ;;  %s348_s12 = sshll.u32 %s341_s17, 4  ;;  %s12475_s12 = int_to_ptr.vmem [resolvable:$true] %s348_s12 }
  0x71   : > { %s12115_s18 = scalar_lea.hbm %s12469_s5, 2048  ;;  %s12120_s15 = scalar_lea.hbm %s13806_s4, 4096 }
  0x72   : > { %p12116_p9 = scmp.ne.s32.totalorder %s12469_s5, %s12115_s18  ;;  %p12121_p7 = scmp.lt.u32.totalorder %s12469_s5, %s13806_s4 }
  0x73   : > { %p12122_p2 = scmp.lt.u32.totalorder %s12120_s15, %s12115_s18  ;;  %p12124_p5 = scmp.lt.u32.totalorder %s12115_s18, %s12469_s5 }
  0x74   : > { %p12118_p0 = pnand %p12116_p9, %p12346_p10 }
  0x75   : > { %p12123_p3 = por %p12122_p2, %p12121_p7 }
  0x76   : > { %p12119_p12 = pneg %p12118_p0 }
  0x77   : > { %p12125_p6 = por %p12124_p5, %p12123_p3 }
  0x79   : > { %p12126_p1 = pnand %p12125_p6, %p12119_p12 }
  0x7b   : > { %12129 = shalt.err (!%p12126_p1)
}
  0x7c   : > { %s12130_s13 = scalar_lea.vmem %s12475_s12, 2048  ;;  %s12227_s11 = smov [#allocation6]  }
  0x7d   : > { %p12131_p4 = scmp.ne.s32.totalorder %s12475_s12, %s12130_s13  ;;  %s12135_s8 = sshll.u32 %s12227_s11, 4  ;;  %s12136_s8 = int_to_ptr.vmem [resolvable:$false] %s12135_s8 }
  0x7e   : > { %s12137_s29 = scalar_lea.vmem %s12136_s8, 4096  ;;  %p12138_p9 = scmp.lt.s32.totalorder %s12475_s12, %s12136_s8 }
  0x7f   : > { %p12133_p11 = pnand %p12131_p4, %p12346_p10  ;;  %p12139_p0 = scmp.lt.s32.totalorder %s12137_s29, %s12130_s13 }
  0x81   : > { %p12134_p13 = pneg %p12133_p11  ;;  %p12140_p7 = por %p12139_p0, %p12138_p9 }
  0x83   : > { %p12141_p2 = pnand %p12140_p7, %p12134_p13 }
  0x85   : > { %12144 = shalt.err (!%p12141_p2)
}
  0x86   : > { %11519 = dma.hbm_to_vmem [thread:$0]  (!%p12324_p8), %s12469_s5, 2048, %s12475_s12, %s12340_s25, %s12224_s21, %s12224_s21, %s12226_s20  }
  0x87   : > { %s12145_s10 = scalar_lea.hbm %s12421_s22, 32768  ;;  %s12150_s1 = scalar_lea.hbm %s13808_s6, 65536 }
  0x88   : > { %p12146_p12 = scmp.ne.s32.totalorder %s12421_s22, %s12145_s10  ;;  %p12151_p6 = scmp.lt.u32.totalorder %s12421_s22, %s13808_s6 }
  0x89   : > { %p12152_p1 = scmp.lt.u32.totalorder %s12150_s1, %s12145_s10  ;;  %p12154_p11 = scmp.lt.u32.totalorder %s12145_s10, %s12421_s22 }
  0x8a   : > { %p12148_p3 = pnand %p12146_p12, %p12346_p10 }
  0x8b   : > { %p12153_p4 = por %p12152_p1, %p12151_p6 }
  0x8c   : > { %p12149_p5 = pneg %p12148_p3 }
  0x8d   : > { %p12155_p13 = por %p12154_p11, %p12153_p4 }
  0x8f   : > { %p12156_p9 = pnand %p12155_p13, %p12149_p5 }
  0x91   : > { %12159 = shalt.err (!%p12156_p9)
}
  0x92   : > { %s12160_s25 = scalar_lea.vmem %s12473_s3, 32768  ;;  %s12228_s5 = smov [#allocation9]  }
  0x93   : > { %p12161_p0 = scmp.ne.s32.totalorder %s12473_s3, %s12160_s25  ;;  %s12165_s12 = sshll.u32 %s12228_s5, 4  ;;  %s12166_s12 = int_to_ptr.vmem [resolvable:$false] %s12165_s12 }
  0x94   : > { %s12167_s23 = scalar_lea.vmem %s12166_s12, 65536  ;;  %p12168_p12 = scmp.lt.s32.totalorder %s12473_s3, %s12166_s12 }
  0x95   : > { %p12163_p7 = pnand %p12161_p0, %p12346_p10  ;;  %p12169_p3 = scmp.lt.s32.totalorder %s12167_s23, %s12160_s25 }
  0x97   : > { %p12164_p2 = pneg %p12163_p7  ;;  %p12170_p6 = por %p12169_p3, %p12168_p12 }
  0x99   : > { %p12171_p1 = pnand %p12170_p6, %p12164_p2 }
  0x9b   : > { %12174 = shalt.err (!%p12171_p1)
}
  0x9c   : > { %11525 = dma.hbm_to_vmem [thread:$0]  (!%p12324_p8), %s12421_s22, 32768, %s12473_s3, %s12391_s26, %s12224_s21, %s12224_s21, %s12226_s20  }
  0x9d   : > { %p13830_p10 = scmp.ne.s32.totalorder %s13827_s19, 0 }
  0x9e   : > { %s12530_s27 = sand.u32 (!%p13830_p10), 1, %s12209_s28   ;;  %p13831_p5 = scmp.ne.s32.totalorder (!%p13830_p10), %s13823_s14, 0 }
  0x9f   : > { %410 = sbr.rel (%p13830_p10) target bundleno = 8651 (0x21cb), region = 52  ;;  %s9682_s24 = sshll.u32 (!%p13830_p10), %s12530_s27, 6 }
  0xa0   : > { %s413_s13 = scalar_lea.sflag (!%p13830_p10), [#allocation3], %s12530_s27  ;;  %s12534_s11 = scalar_lea.vmem (!%p13830_p10), [#allocation2], %s9682_s24 }
  0xa6   : > { %12192 = dma.done.wait (%p13831_p5), %s413_s13, 1024  }
  0xa7   : > { %12194 = vsyncadd (%p13831_p5), %s413_s13, 4294966272  ;;  %s421_s16 = sand.u32 1, %s12300_s9   ;;  %s11498_s19 = smul.u32 384, %s12530_s27 }
  0xa8   : > { %s422_s26 = scalar_lea.sflag [#allocation5], %s421_s16 }
  0xa9   : > { %s12542_s21 = scalar_lea.vmem [#allocation4], %s11498_s19 }
  0xaa   : > { %12196 = dma.done.wait (%p13831_p5), %s422_s26, 8192  }
  0xab   : > { %12198 = vsyncadd (%p13831_p5), %s422_s26, 4294959104  ;;  %s9683_s22 = sshll.u32 %s12530_s27, 7  ;;  %s9684_s3 = sshll.u32 %s12530_s27, 11 }
  0xac   : > { %s12550_s20 = scalar_lea.vmem [#allocation6], %s9683_s22  ;;  %s440_s8 = scalar_lea.sflag [#allocation8], %s421_s16 }
  0xad   : > { %s12554_s29 = scalar_lea.vmem [#allocation7], %s9684_s3 }
  0xae   : > { %12200 = dma.done.wait (%p13831_p5), %s440_s8, 65536  }
  0xaf   : > { %12202 = vsyncadd (%p13831_p5), %s440_s8, 4294901760  ;;  %v12229_v0 = vmov 0.0   ;;  %vm12230_vm0 = vmmov 0   ;;  %v11601_v1 = vld [vmem:[%s12534_s11] sm:$0xff]   ;;  %v11602_v2 = vld [vmem:[%s12534_s11 + $0x8] sm:$0xff]   ;;  %p519_p8 = scmp.lt.s32.totalorder %s12300_s9, 1  ;;  %v553_v45 = vlaneseq }
  0xb0   : > { %11236 = vmatprep.subr.bf16.mxu0 %v12229_v0  ;;  %11252 = vmatprep.mubr.msk.bf16.mxu0 %vm12230_vm0, %v12229_v0  ;;  %v11603_v3 = vld [vmem:[%s12534_s11 + $0x10] sm:$0xff]   ;;  %v11604_v4 = vld [vmem:[%s12534_s11 + $0x18] sm:$0xff]   ;;  %v11611_v6 = vld [vmem:[%s12542_s21] ss:$12 sps:$4 sm:$0xff]   ;;  %v12231_v36 = vmov 0   ;;  %vm946_vm1 = vcmask 261120  }
  0xb1   : > { %11237 = vmatpush3.bf16.msra.mxu0 %v11601_v1  ;;  %v11609_v5 = vld [vmem:[%s12542_s21 + $0x4] ss:$12 sps:$4 sm:$0xff]   ;;  %v11613_v7 = vld [vmem:[%s12542_s21 + $0x1c] ss:$12 sps:$4 sm:$0xff]   ;;  %s13840_s9 = smov (!%p519_p8, %s12300_s9), 1  ;;  %884 = vmatprep.mubr.bf16.mxu1 %v12231_v36  ;;  %v12640_v46 = vshrl.u32 %v553_v45, 7 }
  0xb2   : > { %11238 = vmatprep.subr.bf16.mxu0 %v12229_v0  ;;  %852 = vmatprep.subr.bf16.mxu1 %v11609_v5  ;;  %v11615_v8 = vld [vmem:[%s12542_s21 + $0x18] ss:$12 sps:$4 sm:$0xff]   ;;  %v11617_v10 = vld [vmem:[%s12542_s21 + $0x34] ss:$12 sps:$4 sm:$0xff]   ;;  %v11619_v11 = vld [vmem:[%s12542_s21 + $0x30] ss:$12 sps:$4 sm:$0xff]  }
  0xb3   : > { %853 = vmatpush1.bf16.msra.mxu1 %v11611_v6  ;;  %v11605_v9 = vld [vmem:[%s12534_s11 + $0x20] sm:$0xff]   ;;  %v11621_v12 = vld [vmem:[%s12542_s21 + $0x4c] ss:$12 sps:$4 sm:$0xff]   ;;  %s10773_s14 = sshll.u32 %s13840_s9, 4  ;;  %v11623_v14 = vld [vmem:[%s12542_s21 + $0x48] ss:$12 sps:$4 sm:$0xff]  }
  0xb4   : > { %854 = vmatprep.subr.bf16.mxu1 %v11613_v7  ;;  %v11606_v13 = vld [vmem:[%s12534_s11 + $0x28] sm:$0xff]   ;;  %s523_s18 = scalar_lea.vmem %s13802_s0, %s10773_s14  ;;  %v11625_v15 = vld [vmem:[%s12542_s21 + $0x64] ss:$12 sps:$4 sm:$0xff]   ;;  %v11608_v18 = vld [vmem:[%s12534_s11 + $0x38] sm:$0xff]   ;;  %s11499_s1 = smul.u32 384, %s13840_s9  ;;  %v12643_v47 = vsub.s32 0, %v12640_v46 }
  0xb5   : > { %11239 = vmatpush3.bf16.msra.mxu0 %v11602_v2  ;;  %v11607_v16 = vld [vmem:[%s12534_s11 + $0x30] sm:$0xff]   ;;  %v11627_v17 = vld [vmem:[%s12542_s21 + $0x60] ss:$12 sps:$4 sm:$0xff]   ;;  %v11629_v21 = vld [vmem:[%s12542_s21 + $0x7c] ss:$12 sps:$4 sm:$0xff]   ;;  %v12647_v49 = vsub.s32 1, %v12640_v46 }
  0xb6   : > { %11240 = vmatprep.subr.bf16.mxu0 %v12229_v0  ;;  %v564_v19 = vld [vmem:[%s523_s18] sm:$0xff]  ;;  %v565_v20 = vld [vmem:[%s523_s18 + $0x8] sm:$0xff]  ;;  %v11624_v28 = vld [vmem:[%s12542_s21 + $0x50] ss:$12 sps:$4 sm:$0xff]   ;;  %s12627_s25 = scalar_lea.vmem %s13809_s7, %s11499_s1  ;;  %v12651_v51 = vsub.s32 2, %v12640_v46  ;;  %s12232_s5 = smov 96  }
  0xb7   : > { %855 = vmatpush1.bf16.msra.mxu1 %v11615_v8  ;;  %v11631_v22 = vld [vmem:[%s12542_s21 + $0x78] ss:$12 sps:$4 sm:$0xff]   ;;  %v11633_v23 = vld [vmem:[%s12542_s21 + $0x94] ss:$12 sps:$4 sm:$0xff]   ;;  %v582_v25 = vpack.c.bf16 %v565_v20, %v564_v19  ;;  %v11635_v31 = vld [vmem:[%s12542_s21 + $0x90] ss:$12 sps:$4 sm:$0xff]  }
  0xb8   : > { %856 = vmatprep.subr.bf16.mxu1 %v11617_v10  ;;  %v11612_v24 = vld [vmem:[%s12542_s21 + $0x8] ss:$12 sps:$4 sm:$0xff]   ;;  %v11616_v26 = vld [vmem:[%s12542_s21 + $0x20] ss:$12 sps:$4 sm:$0xff]   ;;  %v11620_v27 = vld [vmem:[%s12542_s21 + $0x38] ss:$12 sps:$4 sm:$0xff]  }
  0xb9   : > { %11241 = vmatpush3.bf16.msra.mxu0 %v11603_v3  ;;  %v11628_v29 = vld [vmem:[%s12542_s21 + $0x68] ss:$12 sps:$4 sm:$0xff]   ;;  %v11632_v30 = vld [vmem:[%s12542_s21 + $0x80] ss:$12 sps:$4 sm:$0xff]   ;;  %v11636_v32 = vld [vmem:[%s12542_s21 + $0x98] ss:$12 sps:$4 sm:$0xff]  }
  0xba   : > { %11242 = vmatprep.subr.bf16.mxu0 %v12229_v0  ;;  %v11637_v33 = vld [vmem:[%s12542_s21 + $0xac] ss:$12 sps:$4 sm:$0xff]   ;;  %v11639_v34 = vld [vmem:[%s12542_s21 + $0xa8] ss:$12 sps:$4 sm:$0xff]   ;;  %v11640_v35 = vld [vmem:[%s12542_s21 + $0xb0] ss:$12 sps:$4 sm:$0xff]  }
  0xbb   : > { %857 = vmatpush1.bf16.msra.mxu1 %v11619_v11  ;;  %v583_v37 = vld [vmem:[%s12627_s25] ss:$0 sm:$0xff]  ;;  %v9701_v48 = vld [vmem:[%s12627_s25 + $0x1] ss:$8 sm:$0x7]  ;;  %s10774_s12 = sshll.u32 %s13840_s9, 2 }
  0xbc   : > { %858 = vmatprep.subr.bf16.mxu1 %v11621_v12  ;;  %v712_v50 = vrot.slane %v9701_v48, %v12643_v47  ;;  %v716_v52 = vrot.slane %v9701_v48, %v12647_v49  ;;  %v720_v56 = vrot.slane %v9701_v48, %v12651_v51  ;;  %v12233_v5 = vmov 1966171168   ;;  %s13832_s13 = sld [smem:[#allocation16_spill]]  ;;  %s12234_s16 = smov 64  }
  0xbd   : > { %11243 = vmatpush3.bf16.msra.mxu0 %v11604_v4  ;;  %v551_v6 = vunpack.c.l.s4 %v12233_v5  ;;  %vm1099_vm2 = vcmask 64512   ;;  %s12235_s19 = smov 32   ;;  %vm2286_vm3 = vcmask 523264   ;;  %vm2289_vm4 = vcmask 785408   ;;  %s12906_s26 = scalar_lea.vmem [#allocation9], %s9684_s3 }
  0xbe   : > { %11244 = vmatprep.subr.bf16.mxu0 %v12229_v0  ;;  %s9691_s27 = sshll.u32 %s13840_s9, 1  ;;  %vm9474_vm5 = vcmask 1041409   ;;  %s13833_s3 = sld [smem:[#allocation19_spill]] }
  0xbf   : > { %859 = vmatpush1.bf16.msra.mxu1 %v11623_v14  ;;  %v552_v7 = vunpack.c.0.s8 %v551_v6 }
  0xc0   : > { %860 = vmatprep.subr.bf16.mxu1 %v11625_v15 }
  0xc1   : > { %11245 = vmatpush3.bf16.msra.mxu0 %v11605_v9  ;;  %v555_v8 = vsub.s32 %v552_v7, %v12640_v46 }
  0xc2   : > { %11246 = vmatprep.subr.bf16.mxu0 %v12229_v0  ;;  %s12689_s11 = scalar_lea.vmem %s13832_s13, %s10774_s12 }
  0xc3   : > { %861 = vmatpush1.bf16.msra.mxu1 %v11627_v17  ;;  %v9692_v9 = vld.sshfl [vmem:[%s12689_s11] sm:$0x11 pattern:$0x75316420] }
  0xc4   : > { %862 = vmatprep.subr.bf16.mxu1 %v11629_v21  ;;  %v549_v10 = vcombine.high %v9692_v9, %v9692_v9  ;;  %v556_v11 = vrot.slane %v9692_v9, %v555_v8 }
  0xc5   : > { %11247 = vmatpush3.bf16.msra.mxu0 %v11606_v13 }
  0xc6   : > { %11248 = vmatprep.subr.bf16.mxu0 %v12229_v0  ;;  %v563_v12 = vrot.slane %v549_v10, %v555_v8  ;;  %v12694_v13 = vrot.slane %v556_v11, %v12643_v47 }
  0xc7   : > { %863 = vmatpush1.bf16.msra.mxu1 %v11631_v22 }
  0xc8   : > { %864 = vmatprep.subr.bf16.mxu1 %v11633_v23  ;;  %v12697_v15 = vrot.slane %v563_v12, %v12643_v47 }
  0xc9   : > { %11249 = vmatpush3.bf16.msra.mxu0 %v11607_v16 }
  0xca   : > { %11250 = vmatprep.subr.bf16.mxu0 %v12229_v0 }
  0xcb   : > { %865 = vmatpush1.bf16.msra.mxu1 %v11635_v31 }
  0xcc   : > { %866 = vmatprep.subr.bf16.mxu1 %v11637_v33 }
  0xcd   : > { %11251 = vmatpush3.bf16.msra.mxu0 %v11608_v18 }
  0xce   : > { %11256 = vmatprep.subr.bf16.mxu0 %v12229_v0 }
  0xcf   : > { %867 = vmatpush1.bf16.msra.mxu1 %v11639_v34 }
  0xd0   : > { %11253 = vmatmul.mubr.bf16.vlgmr.msra.gmra.mrb[0].mxu0 %v582_v25  ;;  %11276 = vmatprep.subr.mxu1 %v12229_v0 }
  0xd1   : > { %11257 = vmatpush3.bf16.msra.mxu0 %v11612_v24  ;;  %11272 = vmatprep.mubr.msk.bf16.mxu0 %vm12230_vm0, %v12229_v0 }
  0xd2   : > { %11258 = vmatprep.subr.bf16.mxu0 %v12229_v0 }
  0xd5   : > { %11259 = vmatpush3.bf16.msra.mxu0 %v11616_v26 }
  0xd6   : > { %11260 = vmatprep.subr.bf16.mxu0 %v12229_v0 }
  0xd9   : > { %11261 = vmatpush3.bf16.msra.mxu0 %v11620_v27 }
  0xda   : > { %11262 = vmatprep.subr.bf16.mxu0 %v12229_v0 }
  0xdd   : > { %11263 = vmatpush3.bf16.msra.mxu0 %v11624_v28 }
  0xde   : > { %11264 = vmatprep.subr.bf16.mxu0 %v12229_v0 }
  0xe1   : > { %11265 = vmatpush3.bf16.msra.mxu0 %v11628_v29 }
  0xe2   : > { %11266 = vmatprep.subr.bf16.mxu0 %v12229_v0 }
  0xe5   : > { %11267 = vmatpush3.bf16.msra.mxu0 %v11632_v30 }
  0xe6   : > { %11268 = vmatprep.subr.bf16.mxu0 %v12229_v0 }
  0xe9   : > { %11269 = vmatpush3.bf16.msra.mxu0 %v11636_v32 }
  0xea   : > { %11270 = vmatprep.subr.bf16.mxu0 %v12229_v0 }
  0xed   : > { %11271 = vmatpush3.bf16.msra.mxu0 %v11640_v35 }
  0xee   : > { %11356 = vmatprep.subr.bf16.mxu0 %v12229_v0 }
 0x1a3   : > { %v666_v38 = vpop.f32.mrb[0].mxu0 }
 0x1a4   : > { %v11254_v39 = vpop.f32.mrb[1].mxu0  ;;  %v12630_v41 = vadd.f32 %v666_v38, %v583_v37 }
 0x1a5   : > { %v669_v40 = vpop.f32.mrb[2].mxu0 }
 0x1a6   : > { %v12632_v42 = vadd.f32 %v669_v40, %v583_v37  ;;  %v11255_v43 = vpop.f32.mrb[3].mxu0 }
 0x1a8   : > { %v705_v44 = vpack.c.bf16 %v12632_v42, %v12630_v41 }
 0x1aa   : > { %885 = vmatmul.mubr.bf16.vlgmr.msra.gmra.mrb[0].mxu1 %v705_v44  ;;  %11273 = vmatmul.mubr.bf16.vlgmr.msra.gmra.mrb[4].mxu0 %v705_v44 }
 0x1ab   : > { %11278 = vmatprep.mubr.msk.f32.mxu1 %vm12230_vm0, %v12229_v0  ;;  %11372 = vmatprep.mubr.msk.bf16.mxu0 %vm12230_vm0, %v12229_v0 }
 0x27d   : > { %v886_v53 = vpop.f32.mrb[0].mxu1  ;;  %v929_v54 = vpop.f32.mrb[4].mxu0 }
 0x27e   : > { %v12654_v55 = vadd.f32 %v886_v53, %v712_v50  ;;  %v888_v57 = vpop.f32.mrb[1].mxu1  ;;  %v11274_v58 = vpop.f32.mrb[5].mxu0  ;;  %v12677_v4 = vadd.f32 %v929_v54, %v720_v56 }
 0x27f   : > { %v12657_v59 = vadd.f32 %v888_v57, %v716_v52  ;;  %v890_v60 = vpop.f32.mrb[2].mxu1  ;;  %v932_v61 = vpop.f32.mrb[6].mxu0 }
 0x280   : > { %v12659_v62 = vadd.f32 %v932_v61, %v720_v56  ;;  %v892_v63 = vpop.f32.mrb[3].mxu1  ;;  %1268 = vrot.lane.b32.xlu1 %v12654_v55, %s12232_s5  ;;  %v11275_v1 = vpop.f32.mrb[7].mxu0  ;;  %v12674_v3 = vadd.f32 %v890_v60, %v712_v50 }
 0x281   : > { %11277 = vmatpush3.xpose.msk.msra.mxu1 %vm946_vm1, %v12657_v59  ;;  %v12666_v2 = vadd.f32 %v892_v63, %v716_v52 }
 0x282   : > { %11281 = vmatprep.subr.mxu1 %v12229_v0 }
 0x284   : > { %11279 = vmatmul.mubr.msk.f32.vlgmr.msra.gmra.mrb[4].mxu1 %vm946_vm1, %v12654_v55 }
 0x285   : > { %11282 = vmatpush3.xpose.msk.msra.mxu1 %vm946_vm1, %v12666_v2  ;;  %11283 = vmatprep.mubr.msk.f32.mxu1 %vm12230_vm0, %v12229_v0 }
 0x286   : > { %11286 = vmatprep.subr.mxu1 %v12229_v0 }
 0x288   : > { %11284 = vmatmul.mubr.msk.f32.vlgmr.msra.gmra.mrb[6].mxu1 %vm946_vm1, %v12674_v3 }
 0x289   : > { %11287 = vmatpush3.msra.mxu1 %v12677_v4  ;;  %11288 = vmatprep.mubr.msk.f32.mxu1 %vm12230_vm0, %v12229_v0 }
 0x28a   : > { %11291 = vmatprep.subr.mxu1 %v12229_v0 }
 0x2f2   : > { %v1269_v33 = vpop.permute.xlu1 %1268 }
 0x357   : > { %v1019_v14 = vpop.f32.mrb[4].mxu1 }
 0x358   : > { %v1020_v16 = vadd.f32 %v1019_v14, %v12694_v13  ;;  %v11280_v17 = vpop.f32.mrb[5].mxu1 }
 0x35a   : > { %v1100_v18 = vsel %vm1099_vm2, %v1020_v16, -inf }
 0x35b   : > { %v1095_v19 = vpop.f32.mrb[6].mxu1  ;;  %1101 = vmax.xlane.f32.xlu0 %v1100_v18 }
 0x35c   : > { %v1096_v20 = vadd.f32 %v1095_v19, %v12697_v15  ;;  %v11285_v21 = vpop.f32.mrb[7].mxu1 }
 0x35e   : > { %v1103_v22 = vsel %vm1099_vm2, %v1096_v20, -inf }
 0x35f   : > { %1104 = vmax.xlane.f32.xlu0 %v1103_v22 }
 0x375   : > { %1270 = vrot.lane.b32.xlu0 %v12657_v59, %s12232_s5 }
 0x3e8   : > { %v1102_v23 = vpop.xlane.xlu0 %1101 }
 0x3e9   : > { %v1106_v24 = vsub.f32 %v1020_v16, %v1102_v23 }
 0x3eb   : > { %v1108_v25 = vmul.f32 1.442695, %v1106_v24 }
 0x3ec   : > { %v1105_v26 = vpop.xlane.xlu0 %1104 }
 0x3ed   : > { %11945 = vpow2.f32 %v1108_v25  ;;  %v1107_v27 = vsub.f32 %v1096_v20, %v1105_v26 }
 0x3ef   : > { %v1110_v28 = vmul.f32 1.442695, %v1107_v27 }
 0x3f0   : > { %v1271_v43 = vpop.permute.xlu0 %1270 }
 0x3f1   : > { %11947 = vpow2.f32 %v1110_v28 }
 0x3f7   : > { %v11946_v29 = vpop.eup %11945 }
 0x3f8   : > { %v1112_v30 = vsel %vm1099_vm2, %v11946_v29, 0.0 }
 0x3f9   : > { %1113 = vadd.xlane.f32.xlu1 %v1112_v30 }
 0x3fb   : > { %v11948_v31 = vpop.eup %11947 }
 0x3fc   : > { %v1115_v32 = vsel %vm1099_vm2, %v11948_v31, 0.0 }
 0x3fd   : > { %1116 = vadd.xlane.f32.xlu1 %v1115_v32 }
 0x40e   : > { %1348 = vrot.lane.b32.xlu1 %v12666_v2, %s12232_s5 }
 0x412   : > { %1346 = vrot.lane.b32.xlu1 %v12674_v3, %s12232_s5 }
 0x486   : > { %v1114_v34 = vpop.xlane.xlu1 %1113 }
 0x487   : > { %11949 = vrcp.f32 %v1114_v34 }
 0x48a   : > { %v1117_v35 = vpop.xlane.xlu1 %1116 }
 0x48b   : > { %11951 = vrcp.f32 %v1117_v35 }
 0x48e   : > { %v1349_v44 = vpop.permute.xlu1 %1348 }
 0x491   : > { %v11950_v37 = vpop.eup %11949 }
 0x492   : > { %v1119_v38 = vmul.f32 %v11950_v37, %v11946_v29  ;;  %v1347_v45 = vpop.permute.xlu1 %1346 }
 0x494   : > { %11289 = vmatmul.mubr.msk.f32.vlgmr.msra.gmra.mrb[8].mxu1 %vm1099_vm2, %v1119_v38 }
 0x495   : > { %v11952_v39 = vpop.eup %11951  ;;  %11292 = vmatpush3.msra.mxu1 %v12659_v62  ;;  %11293 = vmatprep.mubr.msk.f32.mxu1 %vm12230_vm0, %v12229_v0 }
 0x496   : > { %v1121_v40 = vmul.f32 %v11952_v39, %v11948_v31  ;;  %11296 = vmatprep.subr.mxu1 %v12229_v0 }
 0x498   : > { %11294 = vmatmul.mubr.msk.f32.vlgmr.msra.gmra.mrb[10].mxu1 %vm1099_vm2, %v1121_v40 }
 0x499   : > { %11298 = vmatprep.mubr.msk.f32.mxu1 %vm12230_vm0, %v12229_v0 }
 0x49c   : > { %11297 = vmatpush3.xpose.msk.msra.mxu1 %vm946_vm1, %v1271_v43 }
 0x49d   : > { %11301 = vmatprep.subr.mxu1 %v12229_v0 }
 0x49f   : > { %11299 = vmatmul.mubr.msk.f32.vlgmr.msra.gmra.mrb[12].mxu1 %vm946_vm1, %v1269_v33 }
 0x4a0   : > { %11302 = vmatpush3.xpose.msk.msra.mxu1 %vm946_vm1, %v1349_v44  ;;  %11303 = vmatprep.mubr.msk.f32.mxu1 %vm12230_vm0, %v12229_v0 }
 0x4a1   : > { %11306 = vmatprep.subr.mxu1 %v12229_v0 }
 0x4a3   : > { %11304 = vmatmul.mubr.msk.f32.vlgmr.msra.gmra.mrb[14].mxu1 %vm946_vm1, %v1347_v45 }
 0x4a4   : > { %11308 = vmatprep.mubr.msk.f32.mxu1 %vm12230_vm0, %v12229_v0 }
 0x567   : > { %v12729_v48 = vpop.f32.mrb[8].mxu1 }
 0x568   : > { %v11290_v50 = vpop.f32.mrb[9].mxu1 }
 0x56b   : > { %v12731_v52 = vpop.f32.mrb[10].mxu1 }
 0x56c   : > { %v11295_v53 = vpop.f32.mrb[11].mxu1 }
 0x572   : > { %v1342_v54 = vpop.f32.mrb[12].mxu1 }
 0x573   : > { %v1343_v56 = vadd.f32 %v1342_v54, %v12694_v13  ;;  %v11300_v57 = vpop.f32.mrb[13].mxu1 }
 0x575   : > { %v1424_v58 = vsel %vm1099_vm2, %v1343_v56, -inf }
 0x576   : > { %1425 = vmax.xlane.f32.xlu0 %v1424_v58  ;;  %v1420_v60 = vpop.f32.mrb[14].mxu1 }
 0x577   : > { %v1421_v61 = vadd.f32 %v1420_v60, %v12697_v15  ;;  %v11305_v63 = vpop.f32.mrb[15].mxu1 }
 0x579   : > { %v1427_v1 = vsel %vm1099_vm2, %v1421_v61, -inf }
 0x57a   : > { %1428 = vmax.xlane.f32.xlu1 %v1427_v1 }
 0x58b   : > { %1524 = vrot.lane.b32.xlu1 %v12659_v62, %s12232_s5 }
 0x58f   : > { %1602 = vrot.lane.b32.xlu1 %v12657_v59, %s12234_s16 }
 0x593   : > { %1600 = vrot.lane.b32.xlu1 %v12654_v55, %s12234_s16 }
 0x597   : > { %1678 = vrot.lane.b32.xlu1 %v12674_v3, %s12234_s16 }
 0x603   : > { %v1426_v5 = vpop.xlane.xlu0 %1425 }
 0x604   : > { %v1430_v6 = vsub.f32 %v1343_v56, %v1426_v5 }
 0x606   : > { %v1432_v7 = vmul.f32 1.442695, %v1430_v6 }
 0x607   : > { %v1429_v8 = vpop.xlane.xlu1 %1428 }
 0x608   : > { %11953 = vpow2.f32 %v1432_v7  ;;  %v1431_v9 = vsub.f32 %v1421_v61, %v1429_v8 }
 0x60a   : > { %v1434_v10 = vmul.f32 1.442695, %v1431_v9 }
 0x60b   : > { %v1525_v20 = vpop.permute.xlu1 %1524 }
 0x60c   : > { %11955 = vpow2.f32 %v1434_v10 }
 0x60f   : > { %v1603_v24 = vpop.permute.xlu1 %1602 }
 0x612   : > { %v11954_v11 = vpop.eup %11953 }
 0x613   : > { %v1436_v12 = vsel %vm1099_vm2, %v11954_v11, 0.0  ;;  %v1601_v26 = vpop.permute.xlu1 %1600 }
 0x614   : > { %1437 = vadd.xlane.f32.xlu0 %v1436_v12 }
 0x616   : > { %v11956_v14 = vpop.eup %11955 }
 0x617   : > { %v1439_v16 = vsel %vm1099_vm2, %v11956_v14, 0.0  ;;  %v1679_v28 = vpop.permute.xlu1 %1678 }
 0x618   : > { %1440 = vadd.xlane.f32.xlu0 %v1439_v16 }
 0x62e   : > { %1447 = vrot.lane.b32.xlu0 %v12677_v4, %s12232_s5 }
 0x632   : > { %1680 = vrot.lane.b32.xlu0 %v12666_v2, %s12234_s16 }
 0x6a1   : > { %v1438_v17 = vpop.xlane.xlu0 %1437 }
 0x6a2   : > { %11957 = vrcp.f32 %v1438_v17 }
 0x6a5   : > { %v1441_v18 = vpop.xlane.xlu0 %1440 }
 0x6a6   : > { %11959 = vrcp.f32 %v1441_v18 }
 0x6a9   : > { %v1448_v19 = vpop.permute.xlu0 %1447 }
 0x6aa   : > { %11307 = vmatpush3.msra.mxu1 %v1448_v19 }
 0x6ab   : > { %11311 = vmatprep.subr.mxu1 %v12229_v0 }
 0x6ac   : > { %v11958_v21 = vpop.eup %11957 }
 0x6ad   : > { %v1443_v22 = vmul.f32 %v11958_v21, %v11954_v11  ;;  %v1681_v27 = vpop.permute.xlu0 %1680 }
 0x6af   : > { %11309 = vmatmul.mubr.msk.f32.vlgmr.msra.gmra.mrb[16].mxu1 %vm1099_vm2, %v1443_v22 }
 0x6b0   : > { %v11960_v23 = vpop.eup %11959  ;;  %11312 = vmatpush3.msra.mxu1 %v1525_v20  ;;  %11313 = vmatprep.mubr.msk.f32.mxu1 %vm12230_vm0, %v12229_v0 }
 0x6b1   : > { %v1445_v25 = vmul.f32 %v11960_v23, %v11956_v14  ;;  %11316 = vmatprep.subr.mxu1 %v12229_v0 }
 0x6b3   : > { %11314 = vmatmul.mubr.msk.f32.vlgmr.msra.gmra.mrb[18].mxu1 %vm1099_vm2, %v1445_v25 }
 0x6b4   : > { %11318 = vmatprep.mubr.msk.f32.mxu1 %vm12230_vm0, %v12229_v0 }
 0x6b7   : > { %11317 = vmatpush3.xpose.msk.msra.mxu1 %vm946_vm1, %v1603_v24 }
 0x6b8   : > { %11321 = vmatprep.subr.mxu1 %v12229_v0 }
 0x6ba   : > { %11319 = vmatmul.mubr.msk.f32.vlgmr.msra.gmra.mrb[20].mxu1 %vm946_vm1, %v1601_v26 }
 0x6bb   : > { %11322 = vmatpush3.xpose.msk.msra.mxu1 %vm946_vm1, %v1681_v27  ;;  %11323 = vmatprep.mubr.msk.f32.mxu1 %vm12230_vm0, %v12229_v0 }
 0x6bc   : > { %11326 = vmatprep.subr.mxu1 %v12229_v0 }
 0x6be   : > { %11324 = vmatmul.mubr.msk.f32.vlgmr.msra.gmra.mrb[22].mxu1 %vm946_vm1, %v1679_v28 }
 0x6bf   : > { %11328 = vmatprep.mubr.msk.f32.mxu1 %vm12230_vm0, %v12229_v0 }
 0x782   : > { %v12769_v29 = vpop.f32.mrb[16].mxu1 }
 0x783   : > { %v11310_v30 = vpop.f32.mrb[17].mxu1 }
 0x786   : > { %v12771_v31 = vpop.f32.mrb[18].mxu1 }
 0x787   : > { %v11571_v32 = vpack.i.bf16 %v12771_v31, %v12769_v29  ;;  %v11315_v33 = vpop.f32.mrb[19].mxu1 }
 0x78d   : > { %v1674_v34 = vpop.f32.mrb[20].mxu1 }
 0x78e   : > { %v1675_v35 = vadd.f32 %v1674_v34, %v12694_v13  ;;  %v11320_v37 = vpop.f32.mrb[21].mxu1 }
 0x790   : > { %v1756_v38 = vsel %vm1099_vm2, %v1675_v35, -inf }
 0x791   : > { %1757 = vmax.xlane.f32.xlu0 %v1756_v38  ;;  %v1752_v39 = vpop.f32.mrb[22].mxu1 }
 0x792   : > { %v1753_v40 = vadd.f32 %v1752_v39, %v12697_v15  ;;  %v11325_v43 = vpop.f32.mrb[23].mxu1 }
 0x794   : > { %v1759_v44 = vsel %vm1099_vm2, %v1753_v40, -inf }
 0x795   : > { %1760 = vmax.xlane.f32.xlu1 %v1759_v44 }
 0x7a6   : > { %1854 = vrot.lane.b32.xlu1 %v12659_v62, %s12234_s16 }
 0x7aa   : > { %1932 = vrot.lane.b32.xlu1 %v12657_v59, %s12235_s19 }
 0x7ae   : > { %1930 = vrot.lane.b32.xlu1 %v12654_v55, %s12235_s19 }
 0x7b2   : > { %2008 = vrot.lane.b32.xlu1 %v12674_v3, %s12235_s19 }
 0x81e   : > { %v1758_v45 = vpop.xlane.xlu0 %1757 }
 0x81f   : > { %v1762_v50 = vsub.f32 %v1675_v35, %v1758_v45 }
 0x821   : > { %v1764_v53 = vmul.f32 1.442695, %v1762_v50  ;;  %v11641_v50 = vld [vmem:[%s12550_s20] sm:$0xff]  }
 0x822   : > { %v1761_v54 = vpop.xlane.xlu1 %1760  ;;  %11357 = vmatpush3.bf16.msra.mxu0 %v11641_v50 }
 0x823   : > { %11961 = vpow2.f32 %v1764_v53  ;;  %v1763_v56 = vsub.f32 %v1753_v40, %v1761_v54  ;;  %v11642_v53 = vld [vmem:[%s12550_s20 + $0x8] sm:$0xff]   ;;  %11358 = vmatprep.subr.bf16.mxu0 %v12229_v0  ;;  %v11643_v54 = vld [vmem:[%s12550_s20 + $0x10] sm:$0xff]  }
 0x825   : > { %v1766_v57 = vmul.f32 1.442695, %v1763_v56  ;;  %v11644_v56 = vld [vmem:[%s12550_s20 + $0x18] sm:$0xff]  }
 0x826   : > { %v1855_v1 = vpop.permute.xlu1 %1854  ;;  %11359 = vmatpush3.bf16.msra.mxu0 %v11642_v53 }
 0x827   : > { %11963 = vpow2.f32 %v1766_v57  ;;  %11360 = vmatprep.subr.bf16.mxu0 %v12229_v0  ;;  %v11645_v57 = vld [vmem:[%s12550_s20 + $0x20] sm:$0xff]  }
 0x82a   : > { %v1933_v8 = vpop.permute.xlu1 %1932  ;;  %11361 = vmatpush3.bf16.msra.mxu0 %v11643_v54 }
 0x82b   : > { %11362 = vmatprep.subr.bf16.mxu0 %v12229_v0 }
 0x82d   : > { %v11962_v58 = vpop.eup %11961 }
 0x82e   : > { %v1768_v60 = vsel %vm1099_vm2, %v11962_v58, 0.0  ;;  %v1931_v9 = vpop.permute.xlu1 %1930  ;;  %11363 = vmatpush3.bf16.msra.mxu0 %v11644_v56 }
 0x82f   : > { %1769 = vadd.xlane.f32.xlu0 %v1768_v60  ;;  %11364 = vmatprep.subr.bf16.mxu0 %v12229_v0  ;;  %v11647_v60 = vld [vmem:[%s12550_s20 + $0x30] sm:$0xff]  }
 0x831   : > { %v11964_v61 = vpop.eup %11963 }
 0x832   : > { %v1771_v59 = vsel %vm1099_vm2, %v11964_v61, 0.0  ;;  %v2009_v11 = vpop.permute.xlu1 %2008  ;;  %11365 = vmatpush3.bf16.msra.mxu0 %v11645_v57 }
 0x833   : > { %1772 = vadd.xlane.f32.xlu0 %v1771_v59  ;;  %11366 = vmatprep.subr.bf16.mxu0 %v12229_v0 }
 0x849   : > { %1778 = vrot.lane.b32.xlu0 %v12677_v4, %s12234_s16 }
 0x84d   : > { %2010 = vrot.lane.b32.xlu0 %v12666_v2, %s12235_s19 }
 0x8bc   : > { %v1770_v55 = vpop.xlane.xlu0 %1769 }
 0x8bd   : > { %11965 = vrcp.f32 %v1770_v55 }
 0x8c0   : > { %v1773_v3 = vpop.xlane.xlu0 %1772 }
 0x8c1   : > { %11967 = vrcp.f32 %v1773_v3 }
 0x8c4   : > { %v1779_v63 = vpop.permute.xlu0 %1778 }
 0x8c5   : > { %11327 = vmatpush3.msra.mxu1 %v1779_v63 }
 0x8c6   : > { %11331 = vmatprep.subr.mxu1 %v12229_v0 }
 0x8c7   : > { %v11966_v5 = vpop.eup %11965 }
 0x8c8   : > { %v1775_v6 = vmul.f32 %v11966_v5, %v11962_v58  ;;  %v2011_v10 = vpop.permute.xlu0 %2010  ;;  %v11646_v58 = vld [vmem:[%s12550_s20 + $0x28] sm:$0xff]  }
 0x8c9   : > { %11367 = vmatpush3.bf16.msra.mxu0 %v11646_v58 }
 0x8ca   : > { %11329 = vmatmul.mubr.msk.f32.vlgmr.msra.gmra.mrb[24].mxu1 %vm1099_vm2, %v1775_v6  ;;  %11368 = vmatprep.subr.bf16.mxu0 %v12229_v0 }
 0x8cb   : > { %v11968_v7 = vpop.eup %11967  ;;  %11332 = vmatpush3.msra.mxu1 %v1855_v1  ;;  %11333 = vmatprep.mubr.msk.f32.mxu1 %vm12230_vm0, %v12229_v0 }
 0x8cc   : > { %v1777_v2 = vmul.f32 %v11968_v7, %v11964_v61  ;;  %11336 = vmatprep.subr.mxu1 %v12229_v0  ;;  %v11648_v61 = vld [vmem:[%s12550_s20 + $0x38] sm:$0xff]  }
 0x8cd   : > { %11369 = vmatpush3.bf16.msra.mxu0 %v11647_v60  ;;  %v2462_v60 = vld [vmem:[%s12554_s29 + $0x100] sm:$0xff] }
 0x8ce   : > { %11334 = vmatmul.mubr.msk.f32.vlgmr.msra.gmra.mrb[26].mxu1 %vm1099_vm2, %v1777_v2  ;;  %11370 = vmatprep.subr.bf16.mxu0 %v12229_v0 }
 0x8cf   : > { %11338 = vmatprep.mubr.msk.f32.mxu1 %vm12230_vm0, %v12229_v0 }
 0x8d1   : > { %11371 = vmatpush3.bf16.msra.mxu0 %v11648_v61  ;;  %v2470_v61 = vld [vmem:[%s12554_s29 + $0x140] sm:$0xff] }
 0x8d2   : > { %11337 = vmatpush3.xpose.msk.msra.mxu1 %vm946_vm1, %v1933_v8 }
 0x8d3   : > { %11341 = vmatprep.subr.mxu1 %v12229_v0 }
 0x8d5   : > { %11339 = vmatmul.mubr.msk.f32.vlgmr.msra.gmra.mrb[28].mxu1 %vm946_vm1, %v1931_v9 }
 0x8d6   : > { %11342 = vmatpush3.xpose.msk.msra.mxu1 %vm946_vm1, %v2011_v10  ;;  %11343 = vmatprep.mubr.msk.f32.mxu1 %vm12230_vm0, %v12229_v0 }
 0x8d7   : > { %11346 = vmatprep.subr.mxu1 %v12229_v0 }
 0x8d9   : > { %11344 = vmatmul.mubr.msk.f32.vlgmr.msra.gmra.mrb[30].mxu1 %vm946_vm1, %v2009_v11 }
 0x8da   : > { %11348 = vmatprep.mubr.msk.f32.mxu1 %vm12230_vm0, %v12229_v0 }
 0x99d   : > { %v1850_v12 = vpop.f32.mrb[24].mxu1 }
 0x99e   : > { %v11330_v14 = vpop.f32.mrb[25].mxu1 }
 0x9a1   : > { %v1926_v16 = vpop.f32.mrb[26].mxu1 }
 0x9a2   : > { %v11576_v17 = vpack.i.bf16 %v1926_v16, %v1850_v12  ;;  %v11335_v18 = vpop.f32.mrb[27].mxu1 }
 0x9a8   : > { %v2004_v19 = vpop.f32.mrb[28].mxu1 }
 0x9a9   : > { %v2005_v20 = vadd.f32 %v2004_v19, %v12694_v13  ;;  %v11340_v21 = vpop.f32.mrb[29].mxu1 }
 0x9ab   : > { %v2086_v22 = vsel %vm1099_vm2, %v2005_v20, -inf }
 0x9ac   : > { %2087 = vmax.xlane.f32.xlu0 %v2086_v22  ;;  %v2082_v23 = vpop.f32.mrb[30].mxu1 }
 0x9ad   : > { %v2083_v24 = vadd.f32 %v2082_v23, %v12697_v15  ;;  %v11345_v25 = vpop.f32.mrb[31].mxu1 }
 0x9af   : > { %v2089_v26 = vsel %vm1099_vm2, %v2083_v24, -inf }
 0x9b0   : > { %2090 = vmax.xlane.f32.xlu1 %v2089_v26 }
 0x9c1   : > { %2184 = vrot.lane.b32.xlu1 %v12659_v62, %s12235_s19 }
 0x9c5   : > { %11572 = vrot.lane.b32.xlu1 %v11571_v32, %s12235_s19 }
 0x9c9   : > { %11577 = vrot.lane.b32.xlu1 %v11576_v17, %s12234_s16 }
 0xa39   : > { %v2088_v27 = vpop.xlane.xlu0 %2087 }
 0xa3a   : > { %v2092_v28 = vsub.f32 %v2005_v20, %v2088_v27 }
 0xa3c   : > { %v2094_v30 = vmul.f32 1.442695, %v2092_v28 }
 0xa3d   : > { %v2091_v33 = vpop.xlane.xlu1 %2090 }
 0xa3e   : > { %11969 = vpow2.f32 %v2094_v30  ;;  %v2093_v34 = vsub.f32 %v2083_v24, %v2091_v33  ;;  %v2430_v30 = vld [vmem:[%s12554_s29] sm:$0xff] }
 0xa3f   : > { %v2438_v33 = vld [vmem:[%s12554_s29 + $0x40] sm:$0xff] }
 0xa40   : > { %v2096_v35 = vmul.f32 1.442695, %v2093_v34  ;;  %v2431_v34 = vld [vmem:[%s12554_s29 + $0x8] sm:$0xff] }
 0xa41   : > { %v2185_v44 = vpop.permute.xlu1 %2184 }
 0xa42   : > { %11971 = vpow2.f32 %v2096_v35  ;;  %v9762_v35 = vcombine.low %v2430_v30, %v2438_v33 }
 0xa45   : > { %v11573_v5 = vpop.permute.xlu1 %11572 }
 0xa46   : > { %v11575_v7 = vunpack.i.h.bf16 %v11573_v5  ;;  %v11574_v8 = vunpack.i.l.bf16 %v11573_v5 }
 0xa48   : > { %v11970_v37 = vpop.eup %11969  ;;  %v2285_v11 = vsel %vm946_vm1, %v12731_v52, %v11575_v7  ;;  %v2284_v12 = vsel %vm946_vm1, %v12729_v48, %v11574_v8  ;;  %v2309_v52 = vld [vmem:[%s12627_s25 + $0x2] ss:$0 sm:$0xff]  ;;  %v2479_v8 = vld [vmem:[%s12554_s29 + $0x188] sm:$0xff] }
 0xa49   : > { %v2098_v38 = vsel %vm1099_vm2, %v11970_v37, 0.0  ;;  %v11578_v6 = vpop.permute.xlu1 %11577  ;;  %v2486_v7 = vld [vmem:[%s12554_s29 + $0x1c0] sm:$0xff] }
 0xa4a   : > { %2099 = vadd.xlane.f32.xlu0 %v2098_v38  ;;  %v11580_v2 = vunpack.i.h.bf16 %v11578_v6  ;;  %v11579_v9 = vunpack.i.l.bf16 %v11578_v6  ;;  %v2439_v38 = vld [vmem:[%s12554_s29 + $0x48] sm:$0xff]  ;;  %v2478_v6 = vld [vmem:[%s12554_s29 + $0x180] sm:$0xff] }
 0xa4c   : > { %v11972_v62 = vpop.eup %11971  ;;  %v2287_v17 = vsel %vm2286_vm3, %v2284_v12, %v11579_v9  ;;  %v2288_v18 = vsel %vm2286_vm3, %v2285_v11, %v11580_v2  ;;  %v9811_v2 = vcombine.high %v2478_v6, %v2486_v7  ;;  %v2487_v9 = vld [vmem:[%s12554_s29 + $0x1c8] sm:$0xff] }
 0xa4d   : > { %v2101_v39 = vsel %vm1099_vm2, %v11972_v62, 0.0  ;;  %v9812_v11 = vcombine.low %v2479_v8, %v2487_v9  ;;  %v9813_v12 = vcombine.high %v2479_v8, %v2487_v9  ;;  %v2401_v8 = vld [vmem:[%s12627_s25 + $0x3] ss:$0 sm:$0xff]  ;;  %v2402_v9 = vld [vmem:[%s12627_s25 + $0x4] ss:$0 sm:$0xff] }
 0xa4e   : > { %2102 = vadd.xlane.f32.xlu0 %v2101_v39  ;;  %v2454_v39 = vld [vmem:[%s12554_s29 + $0xc0] sm:$0xff] }
 0xa64   : > { %2108 = vrot.lane.b32.xlu0 %v12677_v4, %s12235_s19 }
 0xad7   : > { %v2100_v29 = vpop.xlane.xlu0 %2099 }
 0xad8   : > { %11973 = vrcp.f32 %v2100_v29  ;;  %v9764_v29 = vcombine.low %v2431_v34, %v2439_v38 }
 0xadb   : > { %v2103_v31 = vpop.xlane.xlu0 %2102 }
 0xadc   : > { %11975 = vrcp.f32 %v2103_v31  ;;  %v9765_v31 = vcombine.high %v2431_v34, %v2439_v38  ;;  %v2527_v34 = vld [vmem:[%s12554_s29 + $0x308] sm:$0xff] }
 0xade   : > { %3332 = vmatprep.subr.bf16.mxu0 %v9765_v31  ;;  %v2550_v31 = vld [vmem:[%s12554_s29 + $0x3c0] sm:$0xff] }
 0xadf   : > { %v2109_v32 = vpop.permute.xlu0 %2108 }
 0xae0   : > { %11347 = vmatpush3.msra.mxu1 %v2109_v32 }
 0xae1   : > { %11351 = vmatprep.subr.mxu1 %v12229_v0 }
 0xae2   : > { %v11974_v40 = vpop.eup %11973 }
 0xae3   : > { %v2105_v43 = vmul.f32 %v11974_v40, %v11970_v37  ;;  %v9763_v37 = vcombine.high %v2430_v30, %v2438_v33  ;;  %v2447_v40 = vld [vmem:[%s12554_s29 + $0x88] sm:$0xff]  ;;  %v2526_v30 = vld [vmem:[%s12554_s29 + $0x300] sm:$0xff] }
 0xae4   : > { %v2534_v33 = vld [vmem:[%s12554_s29 + $0x340] sm:$0xff] }
 0xae5   : > { %11349 = vmatmul.mubr.msk.f32.vlgmr.msra.gmra.mrb[32].mxu1 %vm1099_vm2, %v2105_v43  ;;  %v2455_v43 = vld [vmem:[%s12554_s29 + $0xc8] sm:$0xff]  ;;  %v9858_v38 = vcombine.low %v2526_v30, %v2534_v33 }
 0xae6   : > { %v11976_v45 = vpop.eup %11975  ;;  %11352 = vmatpush3.msra.mxu1 %v2185_v44  ;;  %11353 = vmatprep.mubr.msk.f32.mxu1 %vm12230_vm0, %v12229_v0 }
 0xae7   : > { %v2107_v4 = vmul.f32 %v11976_v45, %v11972_v62  ;;  %v2446_v62 = vld [vmem:[%s12554_s29 + $0x80] sm:$0xff]  ;;  %3289 = vmatprep.subr.bf16.mxu1 %v9763_v37  ;;  %v2535_v37 = vld [vmem:[%s12554_s29 + $0x348] sm:$0xff] }
 0xae8   : > { %v9779_v32 = vcombine.high %v2446_v62, %v2454_v39  ;;  %v9778_v44 = vcombine.low %v2446_v62, %v2454_v39  ;;  %v9860_v62 = vcombine.low %v2527_v34, %v2535_v37  ;;  %v9861_v39 = vcombine.high %v2527_v34, %v2535_v37 }
 0xae9   : > { %11354 = vmatmul.mubr.msk.f32.vlgmr.msra.gmra.mrb[34].mxu1 %vm1099_vm2, %v2107_v4 }
 0xaea   : > { %3321 = vmatprep.mubr.bf16.mxu1 %v12231_v36  ;;  %3290 = vmatpush1.bf16.msra.mxu1 %v9762_v35  ;;  %v9859_v35 = vcombine.high %v2526_v30, %v2534_v33  ;;  %v2489_v30 = vld [vmem:[%s12554_s29 + $0x1d8] sm:$0xff] }
 0xaeb   : > { %3291 = vmatprep.subr.bf16.mxu1 %v9779_v32  ;;  %v2543_v32 = vld [vmem:[%s12554_s29 + $0x388] sm:$0xff] }
 0xaee   : > { %3292 = vmatpush1.bf16.msra.mxu1 %v9778_v44 }
 0xbb8   : > { %v2180_v59 = vpop.f32.mrb[32].mxu1 }
 0xbb9   : > { %v11350_v55 = vpop.f32.mrb[33].mxu1 }
 0xbba   : > { %v9795_v55 = vcombine.high %v2462_v60, %v2470_v61 }
 0xbbc   : > { %v2256_v3 = vpop.f32.mrb[34].mxu1  ;;  %3293 = vmatprep.subr.bf16.mxu1 %v9795_v55 }
 0xbbd   : > { %v11581_v63 = vpack.i.bf16 %v2256_v3, %v2180_v59  ;;  %v11355_v1 = vpop.f32.mrb[35].mxu1  ;;  %v2463_v59 = vld [vmem:[%s12554_s29 + $0x108] sm:$0xff] }
 0xbbe   : > { %v2471_v3 = vld [vmem:[%s12554_s29 + $0x148] sm:$0xff] }
 0xbbf   : > { %11582 = vrot.lane.b32.xlu0 %v11581_v63, %s12232_s5  ;;  %v9794_v63 = vcombine.low %v2462_v60, %v2470_v61  ;;  %v9796_v1 = vcombine.low %v2463_v59, %v2471_v3  ;;  %v9797_v5 = vcombine.high %v2463_v59, %v2471_v3 }
 0xbc1   : > { %3294 = vmatpush1.bf16.msra.mxu1 %v9794_v63 }
 0xbc2   : > { %3295 = vmatprep.subr.bf16.mxu1 %v9811_v2 }
 0xc31   : > { %v11583_v10 = vpop.permute.xlu0 %11582 }
 0xc32   : > { %v11585_v14 = vunpack.i.h.bf16 %v11583_v10  ;;  %v11584_v16 = vunpack.i.l.bf16 %v11583_v10  ;;  %v9810_v10 = vcombine.low %v2478_v6, %v2486_v7 }
 0xc34   : > { %v2291_v19 = vsel %vm2289_vm4, %v2288_v18, %v11585_v14  ;;  %v2290_v20 = vsel %vm2289_vm4, %v2287_v17, %v11584_v16  ;;  %3296 = vmatpush1.bf16.msra.mxu1 %v9810_v10  ;;  %v2494_v14 = vld [vmem:[%s12554_s29 + $0x200] sm:$0xff]  ;;  %v2495_v17 = vld [vmem:[%s12554_s29 + $0x208] sm:$0xff] }
 0xc35   : > { %v2308_v21 = vpack.c.bf16 %v2291_v19, %v2290_v20  ;;  %v2502_v16 = vld [vmem:[%s12554_s29 + $0x240] sm:$0xff]  ;;  %v2503_v19 = vld [vmem:[%s12554_s29 + $0x248] sm:$0xff] }
 0xc36   : > { %v9827_v18 = vcombine.high %v2494_v14, %v2502_v16  ;;  %v9826_v20 = vcombine.low %v2494_v14, %v2502_v16  ;;  %v2456_v14 = vld [vmem:[%s12554_s29 + $0xd0] sm:$0xff] }
 0xc37   : > { %11373 = vmatmul.mubr.bf16.vlgmr.msra.gmra.mrb[8].mxu0 %v2308_v21  ;;  %v9828_v21 = vcombine.low %v2495_v17, %v2503_v19 }
 0xc38   : > { %3364 = vmatprep.mubr.bf16.mxu0 %v12231_v36  ;;  %3333 = vmatpush1.bf16.msra.mxu0 %v9764_v29  ;;  %v2542_v29 = vld [vmem:[%s12554_s29 + $0x380] sm:$0xff] }
 0xc39   : > { %3297 = vmatprep.subr.bf16.mxu1 %v9827_v18  ;;  %v2457_v18 = vld [vmem:[%s12554_s29 + $0xd8] sm:$0xff] }
 0xc3a   : > { %3298 = vmatpush1.bf16.msra.mxu1 %v9826_v20 }
 0xd0a   : > { %v2392_v48 = vpop.f32.mrb[8].mxu0 }
 0xd0b   : > { %v2393_v22 = vadd.f32 %v2392_v48, %v2309_v52  ;;  %v11374_v23 = vpop.f32.mrb[9].mxu0  ;;  %v2510_v48 = vld [vmem:[%s12554_s29 + $0x280] sm:$0xff] }
 0xd0c   : > { %v2395_v24 = vpop.f32.mrb[10].mxu0  ;;  %v2511_v23 = vld [vmem:[%s12554_s29 + $0x288] sm:$0xff] }
 0xd0d   : > { %v2396_v25 = vadd.f32 %v2395_v24, %v2309_v52  ;;  %v11375_v26 = vpop.f32.mrb[11].mxu0  ;;  %v2399_v27 = vadd.f32 %v2393_v22, %v12630_v41  ;;  %v9781_v41 = vcombine.high %v2447_v40, %v2455_v43  ;;  %v9829_v52 = vcombine.high %v2495_v17, %v2503_v19  ;;  %v2518_v22 = vld [vmem:[%s12554_s29 + $0x2c0] sm:$0xff]  ;;  %v2449_v17 = vld [vmem:[%s12554_s29 + $0x98] sm:$0xff] }
 0xd0e   : > { %v9843_v24 = vcombine.high %v2510_v48, %v2518_v22  ;;  %v9842_v26 = vcombine.low %v2510_v48, %v2518_v22  ;;  %v2473_v48 = vld [vmem:[%s12554_s29 + $0x158] sm:$0xff] }
 0xd0f   : > { %2403 = vadd.xlane.f32.xlu1 %v2399_v27  ;;  %v2400_v28 = vadd.f32 %v2396_v25, %v12632_v42  ;;  %v9780_v42 = vcombine.low %v2447_v40, %v2455_v43  ;;  %3334 = vmatprep.subr.bf16.mxu0 %v9781_v41  ;;  %v2519_v25 = vld [vmem:[%s12554_s29 + $0x2c8] sm:$0xff]  ;;  %v9875_v40 = vcombine.high %v2542_v29, %v2550_v31 }
 0xd10   : > { %3299 = vmatprep.subr.bf16.mxu1 %v9843_v24  ;;  %v2551_v43 = vld [vmem:[%s12554_s29 + $0x3c8] sm:$0xff]  ;;  %v9874_v41 = vcombine.low %v2542_v29, %v2550_v31  ;;  %v2505_v29 = vld [vmem:[%s12554_s29 + $0x258] sm:$0xff] }
 0xd11   : > { %2405 = vadd.xlane.f32.xlu0 %v2400_v28  ;;  %3335 = vmatpush1.bf16.msra.mxu0 %v9780_v42  ;;  %v9876_v44 = vcombine.low %v2543_v32, %v2551_v43  ;;  %v9877_v42 = vcombine.high %v2543_v32, %v2551_v43 }
 0xd12   : > { %3336 = vmatprep.subr.bf16.mxu0 %v9797_v5  ;;  %3300 = vmatpush1.bf16.msra.mxu1 %v9842_v26  ;;  %v2480_v26 = vld [vmem:[%s12554_s29 + $0x190] sm:$0xff] }
 0xd13   : > { %3301 = vmatprep.subr.bf16.mxu1 %v9859_v35 }
 0xd15   : > { %3337 = vmatpush1.bf16.msra.mxu0 %v9796_v1 }
 0xd16   : > { %3338 = vmatprep.subr.bf16.mxu0 %v9813_v12  ;;  %3302 = vmatpush1.bf16.msra.mxu1 %v9858_v38  ;;  %v2448_v12 = vld [vmem:[%s12554_s29 + $0x90] sm:$0xff] }
 0xd17   : > { %3303 = vmatprep.subr.bf16.mxu1 %v9875_v40  ;;  %v9783_v22 = vcombine.high %v2448_v12, %v2456_v14  ;;  %v9782_v24 = vcombine.low %v2448_v12, %v2456_v14  ;;  %v2496_v38 = vld [vmem:[%s12554_s29 + $0x210] sm:$0xff]  ;;  %v2434_v12 = vld [vmem:[%s12554_s29 + $0x20] sm:$0xff] }
 0xd18   : > { %v2442_v14 = vld [vmem:[%s12554_s29 + $0x60] sm:$0xff] }
 0xd19   : > { %3339 = vmatpush1.bf16.msra.mxu0 %v9812_v11 }
 0xd1a   : > { %3340 = vmatprep.subr.bf16.mxu0 %v9829_v52  ;;  %3304 = vmatpush1.bf16.msra.mxu1 %v9874_v41  ;;  %v2465_v52 = vld [vmem:[%s12554_s29 + $0x118] sm:$0xff]  ;;  %v2512_v41 = vld [vmem:[%s12554_s29 + $0x290] sm:$0xff] }
 0xd1b   : > { %v9801_v34 = vcombine.high %v2465_v52, %v2473_v48  ;;  %v9800_v37 = vcombine.low %v2465_v52, %v2473_v48  ;;  %v2450_v48 = vld [vmem:[%s12554_s29 + $0xa0] sm:$0xff] }
 0xd1d   : > { %3341 = vmatpush1.bf16.msra.mxu0 %v9828_v21  ;;  %v2472_v21 = vld [vmem:[%s12554_s29 + $0x150] sm:$0xff] }
 0xd9c   : > { %v2404_v45 = vpop.xlane.xlu1 %2403 }
 0xd9d   : > { %v2408_v4 = vmul.f32 0.0078125, %v2404_v45  ;;  %v2432_v45 = vld [vmem:[%s12554_s29 + $0x10] sm:$0xff] }
 0xd9e   : > { %v2406_v50 = vpop.xlane.xlu0 %2405 }
 0xd9f   : > { %v12868_v53 = vsub.f32 %v2399_v27, %v2408_v4  ;;  %v2409_v54 = vmul.f32 0.0078125, %v2406_v50  ;;  %v9844_v27 = vcombine.low %v2511_v23, %v2519_v25  ;;  %v2440_v4 = vld [vmem:[%s12554_s29 + $0x50] sm:$0xff]  ;;  %v2433_v50 = vld [vmem:[%s12554_s29 + $0x18] sm:$0xff] }
 0xda1   : > { %v12870_v56 = vsub.f32 %v2400_v28, %v2409_v54  ;;  %v2412_v57 = vmul.f32 %v12868_v53, %v12868_v53  ;;  %v9845_v28 = vcombine.high %v2511_v23, %v2519_v25  ;;  %v9766_v54 = vcombine.low %v2432_v45, %v2440_v4 }
 0xda2   : > { %v9785_v23 = vcombine.high %v2449_v17, %v2457_v18  ;;  %v9784_v25 = vcombine.low %v2449_v17, %v2457_v18  ;;  %v2443_v17 = vld [vmem:[%s12554_s29 + $0x68] sm:$0xff] }
 0xda3   : > { %2414 = vadd.xlane.f32.xlu0 %v2412_v57  ;;  %v2413_v58 = vmul.f32 %v12870_v56, %v12870_v56  ;;  %3342 = vmatprep.subr.bf16.mxu0 %v9845_v28  ;;  %v9767_v57 = vcombine.high %v2432_v45, %v2440_v4  ;;  %v2481_v28 = vld [vmem:[%s12554_s29 + $0x198] sm:$0xff] }
 0xda4   : > { %3343 = vmatpush1.bf16.msra.mxu0 %v9844_v27  ;;  %v2488_v27 = vld [vmem:[%s12554_s29 + $0x1d0] sm:$0xff]  ;;  %v9817_v32 = vcombine.high %v2481_v28, %v2489_v30  ;;  %v9816_v43 = vcombine.low %v2481_v28, %v2489_v30  ;;  %v2521_v45 = vld [vmem:[%s12554_s29 + $0x2d8] sm:$0xff]  ;;  %v2466_v30 = vld [vmem:[%s12554_s29 + $0x120] sm:$0xff] }
 0xda5   : > { %3344 = vmatprep.subr.bf16.mxu0 %v9861_v39  ;;  %3375 = vmatprep.subr.bf16.mxu1 %v9767_v57  ;;  %v2497_v39 = vld [vmem:[%s12554_s29 + $0x218] sm:$0xff]  ;;  %v9815_v31 = vcombine.high %v2480_v26, %v2488_v27  ;;  %v9814_v40 = vcombine.low %v2480_v26, %v2488_v27  ;;  %v9770_v27 = vcombine.low %v2434_v12, %v2442_v14 }
 0xda6   : > { %v9832_v57 = vcombine.low %v2497_v39, %v2505_v29 }
 0xda7   : > { %2416 = vadd.xlane.f32.xlu0 %v2413_v58  ;;  %v2441_v58 = vld [vmem:[%s12554_s29 + $0x58] sm:$0xff] }
 0xda8   : > { %3345 = vmatpush1.bf16.msra.mxu0 %v9860_v62  ;;  %v9768_v60 = vcombine.low %v2433_v50, %v2441_v58  ;;  %v9769_v61 = vcombine.high %v2433_v50, %v2441_v58  ;;  %v2504_v62 = vld [vmem:[%s12554_s29 + $0x250] sm:$0xff]  ;;  %v9833_v50 = vcombine.high %v2497_v39, %v2505_v29  ;;  %v2482_v29 = vld [vmem:[%s12554_s29 + $0x1a0] sm:$0xff] }
 0xda9   : > { %3346 = vmatprep.subr.bf16.mxu0 %v9877_v42  ;;  %v2513_v42 = vld [vmem:[%s12554_s29 + $0x298] sm:$0xff]  ;;  %v9831_v4 = vcombine.high %v2496_v38, %v2504_v62  ;;  %v2528_v58 = vld [vmem:[%s12554_s29 + $0x310] sm:$0xff] }
 0xdac   : > { %3347 = vmatpush1.bf16.msra.mxu0 %v9876_v44  ;;  %v2520_v44 = vld [vmem:[%s12554_s29 + $0x2d0] sm:$0xff] }
 0xdad   : > { %3418 = vmatprep.subr.bf16.mxu0 %v9769_v61  ;;  %v2529_v61 = vld [vmem:[%s12554_s29 + $0x318] sm:$0xff] }
 0xe30   : > { %v2415_v59 = vpop.xlane.xlu0 %2414 }
 0xe31   : > { %v2418_v55 = vmul.f32 0.0078125, %v2415_v59  ;;  %v2537_v59 = vld [vmem:[%s12554_s29 + $0x358] sm:$0xff] }
 0xe33   : > { %v2420_v3 = vadd.f32 1e-05, %v2418_v55  ;;  %v9847_v55 = vcombine.high %v2512_v41, %v2520_v44 }
 0xe34   : > { %v2417_v63 = vpop.xlane.xlu0 %2416 }
 0xe35   : > { %11977 = vrsqrt.f32 %v2420_v3  ;;  %v2419_v1 = vmul.f32 0.0078125, %v2417_v63  ;;  %v9849_v3 = vcombine.high %v2513_v42, %v2521_v45  ;;  %v9846_v63 = vcombine.low %v2512_v41, %v2520_v44 }
 0xe37   : > { %v2421_v5 = vadd.f32 1e-05, %v2419_v1  ;;  %v9848_v1 = vcombine.low %v2513_v42, %v2521_v45  ;;  %v2498_v45 = vld [vmem:[%s12554_s29 + $0x220] sm:$0xff] }
 0xe39   : > { %11979 = vrsqrt.f32 %v2421_v5  ;;  %v2544_v5 = vld [vmem:[%s12554_s29 + $0x390] sm:$0xff] }
 0xe3f   : > { %v11978_v6 = vpop.eup %11977 }
 0xe40   : > { %v2424_v7 = vmul.f32 %v11978_v6, %v12868_v53  ;;  %v2464_v53 = vld [vmem:[%s12554_s29 + $0x110] sm:$0xff] }
 0xe41   : > { %v9799_v33 = vcombine.high %v2464_v53, %v2472_v21  ;;  %v9798_v35 = vcombine.low %v2464_v53, %v2472_v21  ;;  %v2552_v6 = vld [vmem:[%s12554_s29 + $0x3d0] sm:$0xff] }
 0xe42   : > { %v2426_v10 = vmul.f32 %v2424_v7, %v2401_v8  ;;  %v2545_v7 = vld [vmem:[%s12554_s29 + $0x398] sm:$0xff]  ;;  %v9879_v18 = vcombine.high %v2544_v5, %v2552_v6  ;;  %v9878_v21 = vcombine.low %v2544_v5, %v2552_v6 }
 0xe43   : > { %v11980_v2 = vpop.eup %11979 }
 0xe44   : > { %v2425_v11 = vmul.f32 %v11980_v2, %v12870_v56  ;;  %v12916_v19 = vadd.f32 %v2426_v10, %v2402_v9 }
 0xe46   : > { %v2427_v16 = vmul.f32 %v2425_v11, %v2401_v8  ;;  %v2553_v8 = vld [vmem:[%s12554_s29 + $0x3d8] sm:$0xff]  ;;  %v9864_v11 = vcombine.low %v2529_v61, %v2537_v59 }
 0xe47   : > { %v9881_v53 = vcombine.high %v2545_v7, %v2553_v8  ;;  %v9880_v52 = vcombine.low %v2545_v7, %v2553_v8  ;;  %v2530_v8 = vld [vmem:[%s12554_s29 + $0x320] sm:$0xff] }
 0xe48   : > { %v12918_v20 = vadd.f32 %v2427_v16, %v2402_v9  ;;  %v9865_v9 = vcombine.high %v2529_v61, %v2537_v59  ;;  %v2435_v16 = vld [vmem:[%s12554_s29 + $0x28] sm:$0xff]  ;;  %v2514_v59 = vld [vmem:[%s12554_s29 + $0x2a0] sm:$0xff] }
 0xe49   : > { %v9773_v26 = vcombine.high %v2435_v16, %v2443_v17  ;;  %v9772_v28 = vcombine.low %v2435_v16, %v2443_v17  ;;  %v2546_v17 = vld [vmem:[%s12554_s29 + $0x3a0] sm:$0xff] }
 0xe4a   : > { %v12926_v56 = vpack.c.bf16 %v12918_v20, %v12916_v19 }
 0xe4c   : > { %3322 = vmatmul.mubr.bf16.vlgmr.msra.gmra.mrb[36].mxu1 %v12926_v56  ;;  %3365 = vmatmul.mubr.bf16.vlgmr.msra.gmra.mrb[12].mxu0 %v12926_v56 }
 0xe4d   : > { %3376 = vmatpush1.bf16.msra.mxu1 %v9766_v54  ;;  %3419 = vmatpush1.bf16.msra.mxu0 %v9768_v60  ;;  %v9830_v54 = vcombine.low %v2496_v38, %v2504_v62  ;;  %v2536_v60 = vld [vmem:[%s12554_s29 + $0x350] sm:$0xff] }
 0xe4e   : > { %3377 = vmatprep.subr.bf16.mxu1 %v9783_v22  ;;  %3420 = vmatprep.subr.bf16.mxu0 %v9785_v23  ;;  %v9863_v2 = vcombine.high %v2528_v58, %v2536_v60  ;;  %v9862_v10 = vcombine.low %v2528_v58, %v2536_v60  ;;  %v2458_v22 = vld [vmem:[%s12554_s29 + $0xe0] sm:$0xff]  ;;  %v2451_v23 = vld [vmem:[%s12554_s29 + $0xa8] sm:$0xff] }
 0xe4f   : > { %3407 = vmatprep.mubr.bf16.mxu1 %v12231_v36  ;;  %3450 = vmatprep.mubr.bf16.mxu0 %v12231_v36  ;;  %v9786_v62 = vcombine.low %v2450_v48, %v2458_v22 }
 0xe51   : > { %3378 = vmatpush1.bf16.msra.mxu1 %v9782_v24  ;;  %3421 = vmatpush1.bf16.msra.mxu0 %v9784_v25  ;;  %v2459_v24 = vld [vmem:[%s12554_s29 + $0xe8] sm:$0xff]  ;;  %v9771_v25 = vcombine.high %v2434_v12, %v2442_v14 }
 0xe52   : > { %3379 = vmatprep.subr.bf16.mxu1 %v9799_v33  ;;  %3422 = vmatprep.subr.bf16.mxu0 %v9801_v34  ;;  %v2474_v33 = vld [vmem:[%s12554_s29 + $0x160] sm:$0xff]  ;;  %v2467_v34 = vld [vmem:[%s12554_s29 + $0x128] sm:$0xff]  ;;  %v9789_v38 = vcombine.high %v2451_v23, %v2459_v24  ;;  %v9788_v39 = vcombine.low %v2451_v23, %v2459_v24  ;;  %v2436_v24 = vld [vmem:[%s12554_s29 + $0x30] sm:$0xff] }
 0xe53   : > { %v9802_v44 = vcombine.low %v2466_v30, %v2474_v33 }
 0xe55   : > { %3380 = vmatpush1.bf16.msra.mxu1 %v9798_v35  ;;  %3423 = vmatpush1.bf16.msra.mxu0 %v9800_v37  ;;  %v2475_v35 = vld [vmem:[%s12554_s29 + $0x168] sm:$0xff]  ;;  %v9787_v37 = vcombine.high %v2450_v48, %v2458_v22 }
 0xe56   : > { %3381 = vmatprep.subr.bf16.mxu1 %v9815_v31  ;;  %3424 = vmatprep.subr.bf16.mxu0 %v9817_v32  ;;  %v2490_v31 = vld [vmem:[%s12554_s29 + $0x1e0] sm:$0xff]  ;;  %v2483_v32 = vld [vmem:[%s12554_s29 + $0x1a8] sm:$0xff]  ;;  %v9805_v41 = vcombine.high %v2467_v34, %v2475_v35  ;;  %v9804_v42 = vcombine.low %v2467_v34, %v2475_v35  ;;  %v2452_v35 = vld [vmem:[%s12554_s29 + $0xb0] sm:$0xff] }
 0xe57   : > { %v9818_v60 = vcombine.low %v2482_v29, %v2490_v31 }
 0xe59   : > { %3382 = vmatpush1.bf16.msra.mxu1 %v9814_v40  ;;  %3425 = vmatpush1.bf16.msra.mxu0 %v9816_v43  ;;  %v2491_v40 = vld [vmem:[%s12554_s29 + $0x1e8] sm:$0xff]  ;;  %v9803_v43 = vcombine.high %v2466_v30, %v2474_v33 }
 0xe5a   : > { %3383 = vmatprep.subr.bf16.mxu1 %v9831_v4  ;;  %3426 = vmatprep.subr.bf16.mxu0 %v9833_v50  ;;  %v2506_v4 = vld [vmem:[%s12554_s29 + $0x260] sm:$0xff]  ;;  %v2499_v50 = vld [vmem:[%s12554_s29 + $0x228] sm:$0xff]  ;;  %v9821_v58 = vcombine.high %v2483_v32, %v2491_v40  ;;  %v9820_v61 = vcombine.low %v2483_v32, %v2491_v40  ;;  %v2468_v40 = vld [vmem:[%s12554_s29 + $0x130] sm:$0xff] }
 0xe5b   : > { %v9834_v6 = vcombine.low %v2498_v45, %v2506_v4 }
 0xe5d   : > { %3384 = vmatpush1.bf16.msra.mxu1 %v9830_v54  ;;  %3427 = vmatpush1.bf16.msra.mxu0 %v9832_v57  ;;  %v2507_v54 = vld [vmem:[%s12554_s29 + $0x268] sm:$0xff]  ;;  %v9819_v57 = vcombine.high %v2482_v29, %v2490_v31 }
 0xe5e   : > { %3385 = vmatprep.subr.bf16.mxu1 %v9847_v55  ;;  %3428 = vmatprep.subr.bf16.mxu0 %v9849_v3  ;;  %v2522_v55 = vld [vmem:[%s12554_s29 + $0x2e0] sm:$0xff]  ;;  %v2515_v3 = vld [vmem:[%s12554_s29 + $0x2a8] sm:$0xff]  ;;  %v9837_v5 = vcombine.high %v2499_v50, %v2507_v54  ;;  %v9836_v7 = vcombine.low %v2499_v50, %v2507_v54  ;;  %v2484_v54 = vld [vmem:[%s12554_s29 + $0x1b0] sm:$0xff] }
 0xe5f   : > { %v9850_v14 = vcombine.low %v2514_v59, %v2522_v55 }
 0xe61   : > { %3386 = vmatpush1.bf16.msra.mxu1 %v9846_v63  ;;  %3429 = vmatpush1.bf16.msra.mxu0 %v9848_v1  ;;  %v2523_v63 = vld [vmem:[%s12554_s29 + $0x2e8] sm:$0xff]  ;;  %v9835_v1 = vcombine.high %v2498_v45, %v2506_v4 }
 0xe62   : > { %3387 = vmatprep.subr.bf16.mxu1 %v9863_v2  ;;  %3430 = vmatprep.subr.bf16.mxu0 %v9865_v9  ;;  %v2538_v2 = vld [vmem:[%s12554_s29 + $0x360] sm:$0xff]  ;;  %v2531_v9 = vld [vmem:[%s12554_s29 + $0x328] sm:$0xff]  ;;  %v9853_v12 = vcombine.high %v2515_v3, %v2523_v63  ;;  %v9852_v16 = vcombine.low %v2515_v3, %v2523_v63  ;;  %v2500_v63 = vld [vmem:[%s12554_s29 + $0x230] sm:$0xff] }
 0xe63   : > { %v9866_v22 = vcombine.low %v2530_v8, %v2538_v2 }
 0xe65   : > { %3388 = vmatpush1.bf16.msra.mxu1 %v9862_v10  ;;  %3431 = vmatpush1.bf16.msra.mxu0 %v9864_v11  ;;  %v2539_v10 = vld [vmem:[%s12554_s29 + $0x368] sm:$0xff]  ;;  %v9851_v11 = vcombine.high %v2514_v59, %v2522_v55 }
 0xe66   : > { %3389 = vmatprep.subr.bf16.mxu1 %v9879_v18  ;;  %3432 = vmatprep.subr.bf16.mxu0 %v9881_v53  ;;  %v2554_v18 = vld [vmem:[%s12554_s29 + $0x3e0] sm:$0xff]  ;;  %v2547_v53 = vld [vmem:[%s12554_s29 + $0x3a8] sm:$0xff]  ;;  %v9869_v48 = vcombine.high %v2531_v9, %v2539_v10  ;;  %v9868_v23 = vcombine.low %v2531_v9, %v2539_v10  ;;  %v2516_v10 = vld [vmem:[%s12554_s29 + $0x2b0] sm:$0xff] }
 0xe67   : > { %v9882_v33 = vcombine.low %v2546_v17, %v2554_v18 }
 0xe69   : > { %3390 = vmatpush1.bf16.msra.mxu1 %v9878_v21  ;;  %3433 = vmatpush1.bf16.msra.mxu0 %v9880_v52  ;;  %v2555_v21 = vld [vmem:[%s12554_s29 + $0x3e8] sm:$0xff]  ;;  %v9867_v52 = vcombine.high %v2530_v8, %v2538_v2 }
 0xe6a   : > { %3461 = vmatprep.subr.bf16.mxu1 %v9771_v25  ;;  %3504 = vmatprep.subr.bf16.mxu0 %v9773_v26  ;;  %v2444_v25 = vld [vmem:[%s12554_s29 + $0x70] sm:$0xff]  ;;  %v2437_v26 = vld [vmem:[%s12554_s29 + $0x38] sm:$0xff]  ;;  %v9885_v30 = vcombine.high %v2547_v53, %v2555_v21  ;;  %v9884_v34 = vcombine.low %v2547_v53, %v2555_v21 }
 0xe6b   : > { %v9774_v31 = vcombine.low %v2436_v24, %v2444_v25  ;;  %v2532_v21 = vld [vmem:[%s12554_s29 + $0x330] sm:$0xff] }
 0xe6c   : > { %3408 = vmatmul.mubr.bf16.vlgmr.msra.gmra.mrb[40].mxu1 %v12926_v56  ;;  %3451 = vmatmul.mubr.bf16.vlgmr.msra.gmra.mrb[16].mxu0 %v12926_v56 }
 0xe6d   : > { %3462 = vmatpush1.bf16.msra.mxu1 %v9770_v27  ;;  %3505 = vmatpush1.bf16.msra.mxu0 %v9772_v28  ;;  %v2445_v27 = vld [vmem:[%s12554_s29 + $0x78] sm:$0xff]  ;;  %v9883_v28 = vcombine.high %v2546_v17, %v2554_v18 }
 0xe6e   : > { %3463 = vmatprep.subr.bf16.mxu1 %v9787_v37  ;;  %3506 = vmatprep.subr.bf16.mxu0 %v9789_v38  ;;  %v2460_v37 = vld [vmem:[%s12554_s29 + $0xf0] sm:$0xff]  ;;  %v2453_v38 = vld [vmem:[%s12554_s29 + $0xb8] sm:$0xff]  ;;  %v9777_v29 = vcombine.high %v2437_v26, %v2445_v27  ;;  %v9776_v32 = vcombine.low %v2437_v26, %v2445_v27 }
 0xe6f   : > { %3493 = vmatprep.mubr.bf16.mxu1 %v12231_v36  ;;  %3536 = vmatprep.mubr.bf16.mxu0 %v12231_v36  ;;  %v9790_v4 = vcombine.low %v2452_v35, %v2460_v37  ;;  %v2548_v27 = vld [vmem:[%s12554_s29 + $0x3b0] sm:$0xff] }
 0xe71   : > { %3464 = vmatpush1.bf16.msra.mxu1 %v9786_v62  ;;  %3507 = vmatpush1.bf16.msra.mxu0 %v9788_v39  ;;  %v2461_v62 = vld [vmem:[%s12554_s29 + $0xf8] sm:$0xff]  ;;  %v9775_v39 = vcombine.high %v2436_v24, %v2444_v25 }
 0xe72   : > { %3465 = vmatprep.subr.bf16.mxu1 %v9803_v43  ;;  %3508 = vmatprep.subr.bf16.mxu0 %v9805_v41  ;;  %v2476_v43 = vld [vmem:[%s12554_s29 + $0x170] sm:$0xff]  ;;  %v2469_v41 = vld [vmem:[%s12554_s29 + $0x138] sm:$0xff]  ;;  %v9793_v45 = vcombine.high %v2453_v38, %v2461_v62  ;;  %v9792_v50 = vcombine.low %v2453_v38, %v2461_v62 }
 0xe73   : > { %v9806_v55 = vcombine.low %v2468_v40, %v2476_v43 }
 0xe75   : > { %3466 = vmatpush1.bf16.msra.mxu1 %v9802_v44  ;;  %3509 = vmatpush1.bf16.msra.mxu0 %v9804_v42  ;;  %v2477_v44 = vld [vmem:[%s12554_s29 + $0x178] sm:$0xff]  ;;  %v9791_v42 = vcombine.high %v2452_v35, %v2460_v37 }
 0xe76   : > { %3467 = vmatprep.subr.bf16.mxu1 %v9819_v57  ;;  %3510 = vmatprep.subr.bf16.mxu0 %v9821_v58  ;;  %v2492_v57 = vld [vmem:[%s12554_s29 + $0x1f0] sm:$0xff]  ;;  %v2485_v58 = vld [vmem:[%s12554_s29 + $0x1b8] sm:$0xff]  ;;  %v9809_v59 = vcombine.high %v2469_v41, %v2477_v44  ;;  %v9808_v3 = vcombine.low %v2469_v41, %v2477_v44  ;;  %v11652_v41 = vld [vmem:[%s12906_s26 + $0x80] sm:$0xff]  }
 0xe77   : > { %v9822_v2 = vcombine.low %v2484_v54, %v2492_v57  ;;  %v2557_v35 = vld [vmem:[%s12554_s29 + $0x3f8] sm:$0xff]  ;;  %v11653_v44 = vld [vmem:[%s12906_s26 + $0x48] sm:$0xff]  }
 0xe79   : > { %3468 = vmatpush1.bf16.msra.mxu1 %v9818_v60  ;;  %3511 = vmatpush1.bf16.msra.mxu0 %v9820_v61  ;;  %v2493_v60 = vld [vmem:[%s12554_s29 + $0x1f8] sm:$0xff]  ;;  %v9807_v61 = vcombine.high %v2468_v40, %v2476_v43  ;;  %v11650_v40 = vld [vmem:[%s12906_s26 + $0xc0] sm:$0xff]  }
 0xe7a   : > { %3469 = vmatprep.subr.bf16.mxu1 %v9835_v1  ;;  %3512 = vmatprep.subr.bf16.mxu0 %v9837_v5  ;;  %v2508_v1 = vld [vmem:[%s12554_s29 + $0x270] sm:$0xff]  ;;  %v2501_v5 = vld [vmem:[%s12554_s29 + $0x238] sm:$0xff]  ;;  %v9825_v8 = vcombine.high %v2485_v58, %v2493_v60  ;;  %v9824_v9 = vcombine.low %v2485_v58, %v2493_v60  ;;  %v11651_v43 = vld [vmem:[%s12906_s26] sm:$0xff]  }
 0xe7b   : > { %v9838_v18 = vcombine.low %v2500_v63, %v2508_v1  ;;  %v11660_v58 = vld [vmem:[%s12906_s26 + $0x90] sm:$0xff]   ;;  %v11661_v60 = vld [vmem:[%s12906_s26 + $0x58] sm:$0xff]  }
 0xe7d   : > { %3470 = vmatpush1.bf16.msra.mxu1 %v9834_v6  ;;  %3513 = vmatpush1.bf16.msra.mxu0 %v9836_v7  ;;  %v2509_v6 = vld [vmem:[%s12554_s29 + $0x278] sm:$0xff]  ;;  %v9823_v7 = vcombine.high %v2484_v54, %v2492_v57  ;;  %v11658_v54 = vld [vmem:[%s12906_s26 + $0xd0] sm:$0xff]  }
 0xe7e   : > { %3471 = vmatprep.subr.bf16.mxu1 %v9851_v11  ;;  %3514 = vmatprep.subr.bf16.mxu0 %v9853_v12  ;;  %v2524_v11 = vld [vmem:[%s12554_s29 + $0x2f0] sm:$0xff]  ;;  %v2517_v12 = vld [vmem:[%s12554_s29 + $0x2b8] sm:$0xff]  ;;  %v9841_v17 = vcombine.high %v2501_v5, %v2509_v6  ;;  %v9840_v53 = vcombine.low %v2501_v5, %v2509_v6  ;;  %v11669_v5 = vld [vmem:[%s12906_s26 + $0x68] sm:$0xff]  }
 0xe7f   : > { %v9854_v25 = vcombine.low %v2516_v10, %v2524_v11  ;;  %v11659_v57 = vld [vmem:[%s12906_s26 + $0x10] sm:$0xff]   ;;  %v11670_v6 = vld [vmem:[%s12906_s26 + $0xe8] sm:$0xff]  }
 0xe81   : > { %3472 = vmatpush1.bf16.msra.mxu1 %v9850_v14  ;;  %3515 = vmatpush1.bf16.msra.mxu0 %v9852_v16  ;;  %v2525_v14 = vld [vmem:[%s12554_s29 + $0x2f8] sm:$0xff]  ;;  %v9839_v16 = vcombine.high %v2500_v63, %v2508_v1  ;;  %v11667_v63 = vld [vmem:[%s12906_s26 + $0x20] sm:$0xff]  }
 0xe82   : > { %3473 = vmatprep.subr.bf16.mxu1 %v9867_v52  ;;  %3516 = vmatprep.subr.bf16.mxu0 %v9869_v48  ;;  %v2540_v52 = vld [vmem:[%s12554_s29 + $0x370] sm:$0xff]  ;;  %v2533_v48 = vld [vmem:[%s12554_s29 + $0x338] sm:$0xff]  ;;  %v9857_v24 = vcombine.high %v2517_v12, %v2525_v14  ;;  %v9856_v26 = vcombine.low %v2517_v12, %v2525_v14  ;;  %v11668_v1 = vld [vmem:[%s12906_s26 + $0xa0] sm:$0xff]  }
 0xe83   : > { %v9870_v37 = vcombine.low %v2532_v21, %v2540_v52  ;;  %v11677_v12 = vld [vmem:[%s12906_s26 + $0x78] sm:$0xff]  }
 0xe84   : > { %v11678_v14 = vld [vmem:[%s12906_s26 + $0xf8] sm:$0xff]  }
 0xe85   : > { %3474 = vmatpush1.bf16.msra.mxu1 %v9866_v22  ;;  %3517 = vmatpush1.bf16.msra.mxu0 %v9868_v23  ;;  %v2541_v22 = vld [vmem:[%s12554_s29 + $0x378] sm:$0xff]  ;;  %v9855_v23 = vcombine.high %v2516_v10, %v2524_v11  ;;  %v11675_v10 = vld [vmem:[%s12906_s26 + $0x30] sm:$0xff]  }
 0xe86   : > { %3475 = vmatprep.subr.bf16.mxu1 %v9883_v28  ;;  %3518 = vmatprep.subr.bf16.mxu0 %v9885_v30  ;;  %v2556_v28 = vld [vmem:[%s12554_s29 + $0x3f0] sm:$0xff]  ;;  %v2549_v30 = vld [vmem:[%s12554_s29 + $0x3b8] sm:$0xff]  ;;  %v9872_v38 = vcombine.low %v2533_v48, %v2541_v22 }
 0xe87   : > { %v9887_v62 = vcombine.high %v2548_v27, %v2556_v28  ;;  %v11676_v11 = vld [vmem:[%s12906_s26 + $0xb0] sm:$0xff]  }
 0xe89   : > { %3476 = vmatpush1.bf16.msra.mxu1 %v9882_v33  ;;  %3519 = vmatpush1.bf16.msra.mxu0 %v9884_v34  ;;  %v9871_v33 = vcombine.high %v2532_v21, %v2540_v52  ;;  %v9873_v34 = vcombine.high %v2533_v48, %v2541_v22  ;;  %v9758_v21 = vld [vmem:[%s12627_s25 + $0x5] ss:$8 sm:$0xf]  ;;  %v13065_v22 = vsub.s32 3, %v12640_v46 }
 0xe8a   : > { %3547 = vmatprep.subr.bf16.mxu1 %v9775_v39  ;;  %3590 = vmatprep.subr.bf16.mxu0 %v9777_v29  ;;  %v9889_v39 = vcombine.high %v2549_v30, %v2557_v35  ;;  %v9886_v29 = vcombine.low %v2548_v27, %v2556_v28  ;;  %v9759_v52 = vld [vmem:[%s12627_s25 + $0x5] ss:$8 sm:$0xf0] }
 0xe8b   : > { %v13062_v48 = vor.u32 %v9759_v52, %v9758_v21  ;;  %v11701_v21 = vld [vmem:[%s12906_s26 + $0x168] sm:$0xff]  }
 0xe8c   : > { %3494 = vmatmul.mubr.bf16.vlgmr.msra.gmra.mrb[44].mxu1 %v12926_v56  ;;  %3537 = vmatmul.mubr.bf16.vlgmr.msra.gmra.mrb[20].mxu0 %v12926_v56  ;;  %v11702_v52 = vld [vmem:[%s12906_s26 + $0x1e8] sm:$0xff]  }
 0xe8d   : > { %3548 = vmatpush1.bf16.msra.mxu1 %v9774_v31  ;;  %3591 = vmatpush1.bf16.msra.mxu0 %v9776_v32  ;;  %v9888_v31 = vcombine.low %v2549_v30, %v2557_v35  ;;  %v11649_v32 = vld [vmem:[%s12906_s26 + $0x40] sm:$0xff]  }
 0xe8e   : > { %3549 = vmatprep.subr.bf16.mxu1 %v9791_v42  ;;  %3592 = vmatprep.subr.bf16.mxu0 %v9793_v45  ;;  %v11654_v42 = vld [vmem:[%s12906_s26 + $0xc8] sm:$0xff]  }
 0xe8f   : > { %3579 = vmatprep.mubr.bf16.mxu1 %v12231_v36  ;;  %3622 = vmatprep.mubr.bf16.mxu0 %v12231_v36  ;;  %v11655_v45 = vld [vmem:[%s12906_s26 + $0x8] sm:$0xff]  }
 0xe91   : > { %3550 = vmatpush1.bf16.msra.mxu1 %v9790_v4  ;;  %3593 = vmatpush1.bf16.msra.mxu0 %v9792_v50  ;;  %v11656_v4 = vld [vmem:[%s12906_s26 + $0x88] sm:$0xff]   ;;  %v11657_v50 = vld [vmem:[%s12906_s26 + $0x50] sm:$0xff]  }
 0xe92   : > { %3551 = vmatprep.subr.bf16.mxu1 %v9807_v61  ;;  %3594 = vmatprep.subr.bf16.mxu0 %v9809_v59  ;;  %v11663_v61 = vld [vmem:[%s12906_s26 + $0x18] sm:$0xff]  }
 0xe93   : > { %v11664_v59 = vld [vmem:[%s12906_s26 + $0x98] sm:$0xff]  }
 0xe95   : > { %3552 = vmatpush1.bf16.msra.mxu1 %v9806_v55  ;;  %3595 = vmatpush1.bf16.msra.mxu0 %v9808_v3  ;;  %v11665_v55 = vld [vmem:[%s12906_s26 + $0x60] sm:$0xff]  }
 0xe96   : > { %3553 = vmatprep.subr.bf16.mxu1 %v9823_v7  ;;  %3596 = vmatprep.subr.bf16.mxu0 %v9825_v8  ;;  %v11666_v3 = vld [vmem:[%s12906_s26 + $0xe0] sm:$0xff]   ;;  %v11671_v7 = vld [vmem:[%s12906_s26 + $0x28] sm:$0xff]  }
 0xe97   : > { %v11672_v8 = vld [vmem:[%s12906_s26 + $0xa8] sm:$0xff]  }
 0xe99   : > { %3554 = vmatpush1.bf16.msra.mxu1 %v9822_v2  ;;  %3597 = vmatpush1.bf16.msra.mxu0 %v9824_v9  ;;  %v11673_v2 = vld [vmem:[%s12906_s26 + $0x70] sm:$0xff]  }
 0xe9a   : > { %3555 = vmatprep.subr.bf16.mxu1 %v9839_v16  ;;  %3598 = vmatprep.subr.bf16.mxu0 %v9841_v17  ;;  %v11674_v9 = vld [vmem:[%s12906_s26 + $0xf0] sm:$0xff]   ;;  %v11679_v16 = vld [vmem:[%s12906_s26 + $0x38] sm:$0xff]  }
 0xe9b   : > { %v11680_v17 = vld [vmem:[%s12906_s26 + $0xb8] sm:$0xff]  }
 0xe9d   : > { %3556 = vmatpush1.bf16.msra.mxu1 %v9838_v18  ;;  %3599 = vmatpush1.bf16.msra.mxu0 %v9840_v53  ;;  %v11681_v18 = vld [vmem:[%s12906_s26 + $0x140] sm:$0xff]  }
 0xe9e   : > { %3557 = vmatprep.subr.bf16.mxu1 %v9855_v23  ;;  %3600 = vmatprep.subr.bf16.mxu0 %v9857_v24  ;;  %v11682_v53 = vld [vmem:[%s12906_s26 + $0x1c0] sm:$0xff]   ;;  %v2572_v23 = vrot.slane %v13062_v48, %v12643_v47  ;;  %v2580_v24 = vrot.slane %v13062_v48, %v12651_v51 }
 0xea1   : > { %3558 = vmatpush1.bf16.msra.mxu1 %v9854_v25  ;;  %3601 = vmatpush1.bf16.msra.mxu0 %v9856_v26  ;;  %v2576_v25 = vrot.slane %v13062_v48, %v12647_v49  ;;  %v2584_v26 = vrot.slane %v13062_v48, %v13065_v22 }
 0xea2   : > { %3559 = vmatprep.subr.bf16.mxu1 %v9871_v33  ;;  %3602 = vmatprep.subr.bf16.mxu0 %v9873_v34 }
 0xea5   : > { %3560 = vmatpush1.bf16.msra.mxu1 %v9870_v37  ;;  %3603 = vmatpush1.bf16.msra.mxu0 %v9872_v38 }
 0xea6   : > { %3561 = vmatprep.subr.bf16.mxu1 %v9887_v62  ;;  %3604 = vmatprep.subr.bf16.mxu0 %v9889_v39 }
 0xea9   : > { %3562 = vmatpush1.bf16.msra.mxu1 %v9886_v29  ;;  %3605 = vmatpush1.bf16.msra.mxu0 %v9888_v31 }
 0xeaa   : > { %10834 = vmatprep.subr.bf16.mxu1 %v11649_v32  ;;  %10856 = vmatprep.subr.bf16.mxu0 %v11650_v40 }
 0xeac   : > { %3580 = vmatmul.mubr.bf16.vlgmr.msra.gmra.mrb[48].mxu1 %v12926_v56  ;;  %3623 = vmatmul.mubr.bf16.vlgmr.msra.gmra.mrb[24].mxu0 %v12926_v56  ;;  %v11662_v56 = vld [vmem:[%s12906_s26 + $0xd8] sm:$0xff]  }
 0xead   : > { %10835 = vmatpush3.bf16.msra.mxu1 %v11651_v43  ;;  %10857 = vmatpush3.bf16.msra.mxu0 %v11652_v41 }
 0xeae   : > { %10836 = vmatprep.subr.bf16.mxu1 %v11653_v44  ;;  %10858 = vmatprep.subr.bf16.mxu0 %v11654_v42 }
 0xeb1   : > { %10837 = vmatpush3.bf16.msra.mxu1 %v11655_v45  ;;  %10859 = vmatpush3.bf16.msra.mxu0 %v11656_v4 }
 0xeb2   : > { %10838 = vmatprep.subr.bf16.mxu1 %v11657_v50  ;;  %10860 = vmatprep.subr.bf16.mxu0 %v11658_v54 }
 0xeb5   : > { %10839 = vmatpush3.bf16.msra.mxu1 %v11659_v57  ;;  %10861 = vmatpush3.bf16.msra.mxu0 %v11660_v58 }
 0xeb6   : > { %10840 = vmatprep.subr.bf16.mxu1 %v11661_v60  ;;  %10862 = vmatprep.subr.bf16.mxu0 %v11662_v56 }
 0xeb9   : > { %10841 = vmatpush3.bf16.msra.mxu1 %v11663_v61  ;;  %10863 = vmatpush3.bf16.msra.mxu0 %v11664_v59 }
 0xeba   : > { %10842 = vmatprep.subr.bf16.mxu1 %v11665_v55  ;;  %10864 = vmatprep.subr.bf16.mxu0 %v11666_v3  ;;  %v11683_v55 = vld [vmem:[%s12906_s26 + $0x100] sm:$0xff]  }
 0xebb   : > { %v11684_v3 = vld [vmem:[%s12906_s26 + $0x180] sm:$0xff]  }
 0xebd   : > { %10843 = vmatpush3.bf16.msra.mxu1 %v11667_v63  ;;  %10865 = vmatpush3.bf16.msra.mxu0 %v11668_v1  ;;  %v11685_v63 = vld [vmem:[%s12906_s26 + $0x148] sm:$0xff]  }
 0xebe   : > { %10844 = vmatprep.subr.bf16.mxu1 %v11669_v5  ;;  %10866 = vmatprep.subr.bf16.mxu0 %v11670_v6  ;;  %v11686_v1 = vld [vmem:[%s12906_s26 + $0x1c8] sm:$0xff]  }
 0xebf   : > { %v11687_v5 = vld [vmem:[%s12906_s26 + $0x108] sm:$0xff]  }
 0xec0   : > { %v11688_v6 = vld [vmem:[%s12906_s26 + $0x188] sm:$0xff]  }
 0xec1   : > { %10845 = vmatpush3.bf16.msra.mxu1 %v11671_v7  ;;  %10867 = vmatpush3.bf16.msra.mxu0 %v11672_v8  ;;  %v11689_v7 = vld [vmem:[%s12906_s26 + $0x150] sm:$0xff]  }
 0xec2   : > { %10846 = vmatprep.subr.bf16.mxu1 %v11673_v2  ;;  %10868 = vmatprep.subr.bf16.mxu0 %v11674_v9  ;;  %v11690_v8 = vld [vmem:[%s12906_s26 + $0x1d0] sm:$0xff]  }
 0xec3   : > { %v11691_v2 = vld [vmem:[%s12906_s26 + $0x110] sm:$0xff]  }
 0xec4   : > { %v11692_v9 = vld [vmem:[%s12906_s26 + $0x190] sm:$0xff]  }
 0xec5   : > { %10847 = vmatpush3.bf16.msra.mxu1 %v11675_v10  ;;  %10869 = vmatpush3.bf16.msra.mxu0 %v11676_v11  ;;  %v11693_v10 = vld [vmem:[%s12906_s26 + $0x158] sm:$0xff]  }
 0xec6   : > { %10848 = vmatprep.subr.bf16.mxu1 %v11677_v12  ;;  %10870 = vmatprep.subr.bf16.mxu0 %v11678_v14  ;;  %v11694_v11 = vld [vmem:[%s12906_s26 + $0x1d8] sm:$0xff]  }
 0xec7   : > { %v11695_v12 = vld [vmem:[%s12906_s26 + $0x118] sm:$0xff]  }
 0xec8   : > { %v11696_v14 = vld [vmem:[%s12906_s26 + $0x198] sm:$0xff]  }
 0xec9   : > { %10849 = vmatpush3.bf16.msra.mxu1 %v11679_v16  ;;  %10871 = vmatpush3.bf16.msra.mxu0 %v11680_v17  ;;  %v11697_v16 = vld [vmem:[%s12906_s26 + $0x160] sm:$0xff]  }
 0xeca   : > { %10878 = vmatprep.subr.bf16.mxu1 %v11681_v18  ;;  %10900 = vmatprep.subr.bf16.mxu0 %v11682_v53  ;;  %v11698_v17 = vld [vmem:[%s12906_s26 + $0x1e0] sm:$0xff]  }
 0xecb   : > { %v11699_v18 = vld [vmem:[%s12906_s26 + $0x120] sm:$0xff]  }
 0xecc   : > { %v11700_v53 = vld [vmem:[%s12906_s26 + $0x1a0] sm:$0xff]  }
 0xf1f   : > { %v3323_v27 = vpop.f32.mrb[36].mxu1  ;;  %v3366_v28 = vpop.f32.mrb[12].mxu0 }
 0xf20   : > { %v3324_v30 = vadd.f32 %v3323_v27, %v2572_v23  ;;  %v3367_v33 = vadd.f32 %v3366_v28, %v2580_v24  ;;  %v3325_v34 = vpop.f32.mrb[37].mxu1  ;;  %v3368_v35 = vpop.f32.mrb[13].mxu0  ;;  %v11703_v27 = vld [vmem:[%s12906_s26 + $0x128] sm:$0xff]  }
 0xf21   : > { %v3326_v37 = vadd.f32 %v3325_v34, %v2576_v25  ;;  %v3369_v38 = vadd.f32 %v3368_v35, %v2584_v26  ;;  %v3327_v62 = vpop.f32.mrb[38].mxu1  ;;  %v3370_v39 = vpop.f32.mrb[14].mxu0  ;;  %v11704_v28 = vld [vmem:[%s12906_s26 + $0x1a8] sm:$0xff]   ;;  %v11705_v34 = vld [vmem:[%s12906_s26 + $0x170] sm:$0xff]  }
 0xf22   : > { %v3328_v29 = vadd.f32 %v3327_v62, %v2572_v23  ;;  %v3371_v31 = vadd.f32 %v3370_v39, %v2580_v24  ;;  %v3329_v32 = vpop.f32.mrb[39].mxu1  ;;  %v3372_v40 = vpop.f32.mrb[15].mxu0  ;;  %v3633_v44 = vmax.f32 %v3324_v30, 0.0  ;;  %v3635_v42 = vmax.f32 %v3367_v33, 0.0  ;;  %v11706_v35 = vld [vmem:[%s12906_s26 + $0x1f0] sm:$0xff]  }
 0xf23   : > { %v3330_v43 = vadd.f32 %v3329_v32, %v2576_v25  ;;  %v3373_v41 = vadd.f32 %v3372_v40, %v2584_v26  ;;  %v3634_v50 = vmax.f32 %v3326_v37, 0.0  ;;  %v3636_v54 = vmax.f32 %v3369_v38, 0.0  ;;  %v11707_v39 = vld [vmem:[%s12906_s26 + $0x130] sm:$0xff]  }
 0xf24   : > { %v3649_v45 = vmax.f32 %v3328_v29, 0.0  ;;  %v3651_v4 = vmax.f32 %v3371_v31, 0.0  ;;  %v13096_v23 = vsub.s32 4, %v12640_v46  ;;  %v13099_v24 = vsub.s32 6, %v12640_v46  ;;  %v11708_v29 = vld [vmem:[%s12906_s26 + $0x1b0] sm:$0xff]  }
 0xf25   : > { %v3650_v57 = vmax.f32 %v3330_v43, 0.0  ;;  %v3652_v58 = vmax.f32 %v3373_v41, 0.0  ;;  %v13102_v25 = vsub.s32 5, %v12640_v46  ;;  %v13105_v26 = vsub.s32 7, %v12640_v46  ;;  %v11709_v41 = vld [vmem:[%s12906_s26 + $0x178] sm:$0xff]  }
 0xf26   : > { %v3921_v60 = vpack.c.bf16 %v3649_v45, %v3633_v44  ;;  %v3923_v56 = vpack.c.bf16 %v3651_v4, %v3635_v42  ;;  %v2588_v30 = vrot.slane %v13062_v48, %v13096_v23  ;;  %v2596_v33 = vrot.slane %v13062_v48, %v13099_v24  ;;  %v11710_v44 = vld [vmem:[%s12906_s26 + $0x1f8] sm:$0xff]  }
 0xf27   : > { %v3922_v61 = vpack.c.bf16 %v3650_v57, %v3634_v50  ;;  %v3924_v59 = vpack.c.bf16 %v3652_v58, %v3636_v54  ;;  %v2592_v46 = vrot.slane %v13062_v48, %v13102_v25  ;;  %v2600_v37 = vrot.slane %v13062_v48, %v13105_v26 }
 0xf29   : > { %4738 = vmatprep.mubr.bf16.mxu1 %v3922_v61  ;;  %4779 = vmatprep.mubr.bf16.mxu0 %v3924_v59  ;;  %v11711_v61 = vld [vmem:[%s12906_s26 + $0x138] sm:$0xff]  }
 0xf2a   : > { %4739 = vmatmul.mubr.bf16.vlgmr.msra.gmra.mrb[52].mxu1 %v3921_v60  ;;  %4780 = vmatmul.mubr.bf16.vlgmr.msra.gmra.mrb[28].mxu0 %v3923_v56  ;;  %v11712_v59 = vld [vmem:[%s12906_s26 + $0x1b8] sm:$0xff]  }
 0xf2b   : > { %10879 = vmatpush3.bf16.msra.mxu1 %v11683_v55  ;;  %10901 = vmatpush3.bf16.msra.mxu0 %v11684_v3 }
 0xf2c   : > { %10880 = vmatprep.subr.bf16.mxu1 %v11685_v63  ;;  %10902 = vmatprep.subr.bf16.mxu0 %v11686_v1 }
 0xf2f   : > { %10881 = vmatpush3.bf16.msra.mxu1 %v11687_v5  ;;  %10903 = vmatpush3.bf16.msra.mxu0 %v11688_v6  ;;  %v11713_v5 = vld [vmem:[%s12906_s26 + $0x240] sm:$0xff]  }
 0xf30   : > { %10882 = vmatprep.subr.bf16.mxu1 %v11689_v7  ;;  %10904 = vmatprep.subr.bf16.mxu0 %v11690_v8  ;;  %v11714_v6 = vld [vmem:[%s12906_s26 + $0x2c0] sm:$0xff]  }
 0xf33   : > { %10883 = vmatpush3.bf16.msra.mxu1 %v11691_v2  ;;  %10905 = vmatpush3.bf16.msra.mxu0 %v11692_v9 }
 0xf34   : > { %10884 = vmatprep.subr.bf16.mxu1 %v11693_v10  ;;  %10906 = vmatprep.subr.bf16.mxu0 %v11694_v11 }
 0xf37   : > { %10885 = vmatpush3.bf16.msra.mxu1 %v11695_v12  ;;  %10907 = vmatpush3.bf16.msra.mxu0 %v11696_v14 }
 0xf38   : > { %10886 = vmatprep.subr.bf16.mxu1 %v11697_v16  ;;  %10908 = vmatprep.subr.bf16.mxu0 %v11698_v17  ;;  %v11715_v16 = vld [vmem:[%s12906_s26 + $0x200] sm:$0xff]  }
 0xf39   : > { %v11716_v17 = vld [vmem:[%s12906_s26 + $0x280] sm:$0xff]  }
 0xf3b   : > { %10887 = vmatpush3.bf16.msra.mxu1 %v11699_v18  ;;  %10909 = vmatpush3.bf16.msra.mxu0 %v11700_v53  ;;  %v11717_v18 = vld [vmem:[%s12906_s26 + $0x248] sm:$0xff]  }
 0xf3c   : > { %10888 = vmatprep.subr.bf16.mxu1 %v11701_v21  ;;  %10910 = vmatprep.subr.bf16.mxu0 %v11702_v52  ;;  %v11718_v53 = vld [vmem:[%s12906_s26 + $0x2c8] sm:$0xff]  }
 0xf3d   : > { %v11719_v21 = vld [vmem:[%s12906_s26 + $0x208] sm:$0xff]  }
 0xf3e   : > { %v11720_v52 = vld [vmem:[%s12906_s26 + $0x288] sm:$0xff]  }
 0xf3f   : > { %v3409_v38 = vpop.f32.mrb[40].mxu1  ;;  %v3452_v62 = vpop.f32.mrb[16].mxu0  ;;  %10889 = vmatpush3.bf16.msra.mxu1 %v11703_v27  ;;  %10911 = vmatpush3.bf16.msra.mxu0 %v11704_v28  ;;  %v11721_v27 = vld [vmem:[%s12906_s26 + $0x250] sm:$0xff]  }
 0xf40   : > { %v3410_v31 = vadd.f32 %v3409_v38, %v2588_v30  ;;  %v3453_v32 = vadd.f32 %v3452_v62, %v2596_v33  ;;  %v3411_v40 = vpop.f32.mrb[41].mxu1  ;;  %v3454_v43 = vpop.f32.mrb[17].mxu0  ;;  %10890 = vmatprep.subr.bf16.mxu1 %v11705_v34  ;;  %10912 = vmatprep.subr.bf16.mxu0 %v11706_v35  ;;  %v11722_v28 = vld [vmem:[%s12906_s26 + $0x2d0] sm:$0xff]   ;;  %v11725_v34 = vld [vmem:[%s12906_s26 + $0x258] sm:$0xff]   ;;  %v11729_v38 = vld [vmem:[%s12906_s26 + $0x260] sm:$0xff]  }
 0xf41   : > { %v3412_v42 = vadd.f32 %v3411_v40, %v2592_v46  ;;  %v3455_v45 = vadd.f32 %v3454_v43, %v2600_v37  ;;  %v3413_v4 = vpop.f32.mrb[42].mxu1  ;;  %v3456_v48 = vpop.f32.mrb[18].mxu0  ;;  %v11726_v35 = vld [vmem:[%s12906_s26 + $0x2d8] sm:$0xff]   ;;  %v11730_v62 = vld [vmem:[%s12906_s26 + $0x2e0] sm:$0xff]   ;;  %v11733_v40 = vld [vmem:[%s12906_s26 + $0x268] sm:$0xff]  }
 0xf42   : > { %v3414_v50 = vadd.f32 %v3413_v4, %v2588_v30  ;;  %v3457_v54 = vadd.f32 %v3456_v48, %v2596_v33  ;;  %v3415_v57 = vpop.f32.mrb[43].mxu1  ;;  %v3458_v58 = vpop.f32.mrb[19].mxu0  ;;  %v3637_v55 = vmax.f32 %v3410_v31, 0.0  ;;  %v3639_v3 = vmax.f32 %v3453_v32, 0.0  ;;  %v11723_v30 = vld [vmem:[%s12906_s26 + $0x210] sm:$0xff]   ;;  %v11731_v31 = vld [vmem:[%s12906_s26 + $0x220] sm:$0xff]  }
 0xf43   : > { %v3416_v60 = vadd.f32 %v3415_v57, %v2592_v46  ;;  %v3459_v56 = vadd.f32 %v3458_v58, %v2600_v37  ;;  %10891 = vmatpush3.bf16.msra.mxu1 %v11707_v39  ;;  %10913 = vmatpush3.bf16.msra.mxu0 %v11708_v29  ;;  %v3638_v7 = vmax.f32 %v3412_v42, 0.0  ;;  %v3640_v8 = vmax.f32 %v3455_v45, 0.0  ;;  %v11724_v33 = vld [vmem:[%s12906_s26 + $0x290] sm:$0xff]   ;;  %v11727_v46 = vld [vmem:[%s12906_s26 + $0x218] sm:$0xff]   ;;  %v11732_v32 = vld [vmem:[%s12906_s26 + $0x2a0] sm:$0xff]  }
 0xf44   : > { %v3653_v63 = vmax.f32 %v3414_v50, 0.0  ;;  %v3655_v1 = vmax.f32 %v3457_v54, 0.0  ;;  %10892 = vmatprep.subr.bf16.mxu1 %v11709_v41  ;;  %10914 = vmatprep.subr.bf16.mxu0 %v11710_v44  ;;  %v11728_v37 = vld [vmem:[%s12906_s26 + $0x298] sm:$0xff]   ;;  %v11734_v43 = vld [vmem:[%s12906_s26 + $0x2e8] sm:$0xff]   ;;  %v11737_v48 = vld [vmem:[%s12906_s26 + $0x270] sm:$0xff]  }
 0xf45   : > { %v3654_v2 = vmax.f32 %v3416_v60, 0.0  ;;  %v3656_v9 = vmax.f32 %v3459_v56, 0.0  ;;  %v9760_v39 = vld [vmem:[%s12627_s25 + $0x45] ss:$8 sm:$0xf] }
 0xf46   : > { %v3925_v10 = vpack.c.bf16 %v3653_v63, %v3637_v55  ;;  %v3927_v11 = vpack.c.bf16 %v3655_v1, %v3639_v3  ;;  %v9761_v29 = vld [vmem:[%s12627_s25 + $0x45] ss:$8 sm:$0xf0] }
 0xf47   : > { %v3926_v12 = vpack.c.bf16 %v3654_v2, %v3638_v7  ;;  %v3928_v14 = vpack.c.bf16 %v3656_v9, %v3640_v8  ;;  %10893 = vmatpush3.bf16.msra.mxu1 %v11711_v61  ;;  %10915 = vmatpush3.bf16.msra.mxu0 %v11712_v59  ;;  %v13149_v41 = vor.u32 %v9761_v29, %v9760_v39  ;;  %v11735_v44 = vld [vmem:[%s12906_s26 + $0x228] sm:$0xff]   ;;  %v11738_v50 = vld [vmem:[%s12906_s26 + $0x2f0] sm:$0xff]   ;;  %v11741_v1 = vld [vmem:[%s12906_s26 + $0x278] sm:$0xff]  }
 0xf48   : > { %10922 = vmatprep.subr.bf16.mxu1 %v11713_v5  ;;  %10944 = vmatprep.subr.bf16.mxu0 %v11714_v6  ;;  %v11736_v42 = vld [vmem:[%s12906_s26 + $0x2a8] sm:$0xff]   ;;  %v11739_v56 = vld [vmem:[%s12906_s26 + $0x230] sm:$0xff]   ;;  %v11742_v5 = vld [vmem:[%s12906_s26 + $0x2f8] sm:$0xff]  }
 0xf49   : > { %4820 = vmatprep.mubr.bf16.mxu1 %v3926_v12  ;;  %4861 = vmatprep.mubr.bf16.mxu0 %v3928_v14  ;;  %v2604_v45 = vrot.slane %v13149_v41, %v12643_v47  ;;  %v2612_v4 = vrot.slane %v13149_v41, %v12651_v51  ;;  %v2608_v54 = vrot.slane %v13149_v41, %v12647_v49  ;;  %v11740_v61 = vld [vmem:[%s12906_s26 + $0x2b0] sm:$0xff]   ;;  %v11747_v29 = vld [vmem:[%s12906_s26 + $0x300] sm:$0xff]  }
 0xf4a   : > { %4821 = vmatmul.mubr.bf16.vlgmr.msra.gmra.mrb[56].mxu1 %v3925_v10  ;;  %4862 = vmatmul.mubr.bf16.vlgmr.msra.gmra.mrb[32].mxu0 %v3927_v11  ;;  %v2616_v57 = vrot.slane %v13149_v41, %v13065_v22 }
 0xf4b   : > { %10923 = vmatpush3.bf16.msra.mxu1 %v11715_v16  ;;  %10945 = vmatpush3.bf16.msra.mxu0 %v11716_v17  ;;  %v11743_v17 = vld [vmem:[%s12906_s26 + $0x238] sm:$0xff]  }
 0xf4c   : > { %10924 = vmatprep.subr.bf16.mxu1 %v11717_v18  ;;  %10946 = vmatprep.subr.bf16.mxu0 %v11718_v53  ;;  %v11744_v18 = vld [vmem:[%s12906_s26 + $0x2b8] sm:$0xff]  }
 0xf4f   : > { %10925 = vmatpush3.bf16.msra.mxu1 %v11719_v21  ;;  %10947 = vmatpush3.bf16.msra.mxu0 %v11720_v52 }
 0xf50   : > { %10926 = vmatprep.subr.bf16.mxu1 %v11721_v27  ;;  %10948 = vmatprep.subr.bf16.mxu0 %v11722_v28  ;;  %v11745_v28 = vld [vmem:[%s12906_s26 + $0x340] sm:$0xff]  }
 0xf53   : > { %10927 = vmatpush3.bf16.msra.mxu1 %v11723_v30  ;;  %10949 = vmatpush3.bf16.msra.mxu0 %v11724_v33  ;;  %v11746_v30 = vld [vmem:[%s12906_s26 + $0x3c0] sm:$0xff]  }
 0xf54   : > { %10928 = vmatprep.subr.bf16.mxu1 %v11725_v34  ;;  %10950 = vmatprep.subr.bf16.mxu0 %v11726_v35 }
 0xf57   : > { %10929 = vmatpush3.bf16.msra.mxu1 %v11727_v46  ;;  %10951 = vmatpush3.bf16.msra.mxu0 %v11728_v37 }
 0xf58   : > { %10930 = vmatprep.subr.bf16.mxu1 %v11729_v38  ;;  %10952 = vmatprep.subr.bf16.mxu0 %v11730_v62 }
 0xf5b   : > { %10931 = vmatpush3.bf16.msra.mxu1 %v11731_v31  ;;  %10953 = vmatpush3.bf16.msra.mxu0 %v11732_v32  ;;  %v11748_v31 = vld [vmem:[%s12906_s26 + $0x380] sm:$0xff]   ;;  %v11749_v32 = vld [vmem:[%s12906_s26 + $0x348] sm:$0xff]  }
 0xf5c   : > { %10932 = vmatprep.subr.bf16.mxu1 %v11733_v40  ;;  %10954 = vmatprep.subr.bf16.mxu0 %v11734_v43  ;;  %v11750_v40 = vld [vmem:[%s12906_s26 + $0x3c8] sm:$0xff]  }
 0xf5d   : > { %v11751_v43 = vld [vmem:[%s12906_s26 + $0x308] sm:$0xff]  }
 0xf5f   : > { %v3495_v58 = vpop.f32.mrb[44].mxu1  ;;  %v3538_v60 = vpop.f32.mrb[20].mxu0  ;;  %10933 = vmatpush3.bf16.msra.mxu1 %v11735_v44  ;;  %10955 = vmatpush3.bf16.msra.mxu0 %v11736_v42  ;;  %v11752_v44 = vld [vmem:[%s12906_s26 + $0x388] sm:$0xff]   ;;  %v11753_v42 = vld [vmem:[%s12906_s26 + $0x350] sm:$0xff]  }
 0xf60   : > { %v3496_v59 = vadd.f32 %v3495_v58, %v2604_v45  ;;  %v3539_v55 = vadd.f32 %v3538_v60, %v2612_v4  ;;  %v3497_v3 = vpop.f32.mrb[45].mxu1  ;;  %v3540_v63 = vpop.f32.mrb[21].mxu0  ;;  %10934 = vmatprep.subr.bf16.mxu1 %v11737_v48  ;;  %10956 = vmatprep.subr.bf16.mxu0 %v11738_v50  ;;  %v11756_v48 = vld [vmem:[%s12906_s26 + $0x390] sm:$0xff]   ;;  %v11757_v50 = vld [vmem:[%s12906_s26 + $0x358] sm:$0xff]   ;;  %v11761_v60 = vld [vmem:[%s12906_s26 + $0x360] sm:$0xff]  }
 0xf61   : > { %v3498_v6 = vadd.f32 %v3497_v3, %v2608_v54  ;;  %v3541_v7 = vadd.f32 %v3540_v63, %v2616_v57  ;;  %v3499_v8 = vpop.f32.mrb[46].mxu1  ;;  %v3542_v2 = vpop.f32.mrb[22].mxu0  ;;  %v11760_v58 = vld [vmem:[%s12906_s26 + $0x398] sm:$0xff]   ;;  %v11766_v3 = vld [vmem:[%s12906_s26 + $0x3e8] sm:$0xff]  }
 0xf62   : > { %v3500_v9 = vadd.f32 %v3499_v8, %v2604_v45  ;;  %v3543_v10 = vadd.f32 %v3542_v2, %v2612_v4  ;;  %v3501_v11 = vpop.f32.mrb[47].mxu1  ;;  %v3544_v12 = vpop.f32.mrb[23].mxu0  ;;  %v3641_v53 = vmax.f32 %v3496_v59, 0.0  ;;  %v3643_v21 = vmax.f32 %v3539_v55, 0.0  ;;  %v11754_v45 = vld [vmem:[%s12906_s26 + $0x3d0] sm:$0xff]   ;;  %v11764_v59 = vld [vmem:[%s12906_s26 + $0x3a0] sm:$0xff]  }
 0xf63   : > { %v3502_v14 = vadd.f32 %v3501_v11, %v2608_v54  ;;  %v3545_v16 = vadd.f32 %v3544_v12, %v2616_v57  ;;  %10935 = vmatpush3.bf16.msra.mxu1 %v11739_v56  ;;  %10957 = vmatpush3.bf16.msra.mxu0 %v11740_v61  ;;  %v3642_v33 = vmax.f32 %v3498_v6, 0.0  ;;  %v3644_v34 = vmax.f32 %v3541_v7, 0.0  ;;  %v11755_v4 = vld [vmem:[%s12906_s26 + $0x310] sm:$0xff]   ;;  %v11758_v54 = vld [vmem:[%s12906_s26 + $0x3d8] sm:$0xff]   ;;  %v11762_v56 = vld [vmem:[%s12906_s26 + $0x3e0] sm:$0xff]  }
 0xf64   : > { %v3657_v52 = vmax.f32 %v3500_v9, 0.0  ;;  %v3659_v27 = vmax.f32 %v3543_v10, 0.0  ;;  %10936 = vmatprep.subr.bf16.mxu1 %v11741_v1  ;;  %10958 = vmatprep.subr.bf16.mxu0 %v11742_v5  ;;  %v11759_v57 = vld [vmem:[%s12906_s26 + $0x318] sm:$0xff]   ;;  %v11763_v61 = vld [vmem:[%s12906_s26 + $0x320] sm:$0xff]   ;;  %v11765_v55 = vld [vmem:[%s12906_s26 + $0x368] sm:$0xff]   ;;  %v2620_v5 = vrot.slane %v13149_v41, %v13096_v23  ;;  %v2628_v6 = vrot.slane %v13149_v41, %v13099_v24 }
 0xf65   : > { %v3658_v35 = vmax.f32 %v3502_v14, 0.0  ;;  %v3660_v46 = vmax.f32 %v3545_v16, 0.0  ;;  %v11767_v63 = vld [vmem:[%s12906_s26 + $0x328] sm:$0xff]   ;;  %v11769_v7 = vld [vmem:[%s12906_s26 + $0x370] sm:$0xff]   ;;  %v2624_v2 = vrot.slane %v13149_v41, %v13102_v25  ;;  %v2632_v9 = vrot.slane %v13149_v41, %v13105_v26 }
 0xf66   : > { %v3929_v37 = vpack.c.bf16 %v3657_v52, %v3641_v53  ;;  %v3931_v38 = vpack.c.bf16 %v3659_v27, %v3643_v21  ;;  %v11768_v1 = vld [vmem:[%s12906_s26 + $0x3a8] sm:$0xff]   ;;  %v11770_v8 = vld [vmem:[%s12906_s26 + $0x3f0] sm:$0xff]   ;;  %v11773_v21 = vld [vmem:[%s12906_s26 + $0x378] sm:$0xff]  }
 0xf67   : > { %v3930_v62 = vpack.c.bf16 %v3658_v35, %v3642_v33  ;;  %v3932_v39 = vpack.c.bf16 %v3660_v46, %v3644_v34  ;;  %10937 = vmatpush3.bf16.msra.mxu1 %v11743_v17  ;;  %10959 = vmatpush3.bf16.msra.mxu0 %v11744_v18  ;;  %v11771_v12 = vld [vmem:[%s12906_s26 + $0x330] sm:$0xff]   ;;  %v11774_v52 = vld [vmem:[%s12906_s26 + $0x3f8] sm:$0xff]  }
 0xf68   : > { %10966 = vmatprep.subr.bf16.mxu1 %v11745_v28  ;;  %10988 = vmatprep.subr.bf16.mxu0 %v11746_v30  ;;  %v11772_v14 = vld [vmem:[%s12906_s26 + $0x3b0] sm:$0xff]  }
 0xf69   : > { %4902 = vmatprep.mubr.bf16.mxu1 %v3930_v62  ;;  %4943 = vmatprep.mubr.bf16.mxu0 %v3932_v39  ;;  %v11775_v62 = vld [vmem:[%s12906_s26 + $0x338] sm:$0xff]  }
 0xf6a   : > { %4903 = vmatmul.mubr.bf16.vlgmr.msra.gmra.mrb[60].mxu1 %v3929_v37  ;;  %4944 = vmatmul.mubr.bf16.vlgmr.msra.gmra.mrb[36].mxu0 %v3931_v38  ;;  %v11776_v39 = vld [vmem:[%s12906_s26 + $0x3b8] sm:$0xff]  }
 0xf6b   : > { %10967 = vmatpush3.bf16.msra.mxu1 %v11747_v29  ;;  %10989 = vmatpush3.bf16.msra.mxu0 %v11748_v31 }
 0xf6c   : > { %10968 = vmatprep.subr.bf16.mxu1 %v11749_v32  ;;  %10990 = vmatprep.subr.bf16.mxu0 %v11750_v40 }
 0xf6f   : > { %10969 = vmatpush3.bf16.msra.mxu1 %v11751_v43  ;;  %10991 = vmatpush3.bf16.msra.mxu0 %v11752_v44 }
 0xf70   : > { %10970 = vmatprep.subr.bf16.mxu1 %v11753_v42  ;;  %10992 = vmatprep.subr.bf16.mxu0 %v11754_v45 }
 0xf73   : > { %10971 = vmatpush3.bf16.msra.mxu1 %v11755_v4  ;;  %10993 = vmatpush3.bf16.msra.mxu0 %v11756_v48 }
 0xf74   : > { %10972 = vmatprep.subr.bf16.mxu1 %v11757_v50  ;;  %10994 = vmatprep.subr.bf16.mxu0 %v11758_v54 }
 0xf77   : > { %10973 = vmatpush3.bf16.msra.mxu1 %v11759_v57  ;;  %10995 = vmatpush3.bf16.msra.mxu0 %v11760_v58 }
 0xf78   : > { %10974 = vmatprep.subr.bf16.mxu1 %v11761_v60  ;;  %10996 = vmatprep.subr.bf16.mxu0 %v11762_v56  ;;  %v3937_v60 = vld [vmem:[%s12627_s25 + $0x6] ss:$0 sm:$0xff] }
 0xf7b   : > { %10975 = vmatpush3.bf16.msra.mxu1 %v11763_v61  ;;  %10997 = vmatpush3.bf16.msra.mxu0 %v11764_v59 }
 0xf7c   : > { %10976 = vmatprep.subr.bf16.mxu1 %v11765_v55  ;;  %10998 = vmatprep.subr.bf16.mxu0 %v11766_v3 }
 0xf7f   : > { %v3581_v10 = vpop.f32.mrb[48].mxu1  ;;  %v3624_v11 = vpop.f32.mrb[24].mxu0  ;;  %10977 = vmatpush3.bf16.msra.mxu1 %v11767_v63  ;;  %10999 = vmatpush3.bf16.msra.mxu0 %v11768_v1 }
 0xf80   : > { %v3582_v16 = vadd.f32 %v3581_v10, %v2620_v5  ;;  %v3625_v17 = vadd.f32 %v3624_v11, %v2628_v6  ;;  %v3583_v18 = vpop.f32.mrb[49].mxu1  ;;  %v3626_v53 = vpop.f32.mrb[25].mxu0  ;;  %10978 = vmatprep.subr.bf16.mxu1 %v11769_v7  ;;  %11000 = vmatprep.subr.bf16.mxu0 %v11770_v8 }
 0xf81   : > { %v3584_v27 = vadd.f32 %v3583_v18, %v2624_v2  ;;  %v3627_v28 = vadd.f32 %v3626_v53, %v2632_v9  ;;  %v3585_v30 = vpop.f32.mrb[50].mxu1  ;;  %v3628_v41 = vpop.f32.mrb[26].mxu0 }
 0xf82   : > { %v3586_v33 = vadd.f32 %v3585_v30, %v2620_v5  ;;  %v3629_v34 = vadd.f32 %v3628_v41, %v2628_v6  ;;  %v3587_v35 = vpop.f32.mrb[51].mxu1  ;;  %v3630_v46 = vpop.f32.mrb[27].mxu0  ;;  %v3645_v29 = vmax.f32 %v3582_v16, 0.0  ;;  %v3647_v31 = vmax.f32 %v3625_v17, 0.0 }
 0xf83   : > { %v3588_v37 = vadd.f32 %v3587_v35, %v2624_v2  ;;  %v3631_v38 = vadd.f32 %v3630_v46, %v2632_v9  ;;  %10979 = vmatpush3.bf16.msra.mxu1 %v11771_v12  ;;  %11001 = vmatpush3.bf16.msra.mxu0 %v11772_v14  ;;  %v3646_v43 = vmax.f32 %v3584_v27, 0.0  ;;  %v3648_v44 = vmax.f32 %v3627_v28, 0.0 }
 0xf84   : > { %v3661_v32 = vmax.f32 %v3586_v33, 0.0  ;;  %v3663_v40 = vmax.f32 %v3629_v34, 0.0  ;;  %10980 = vmatprep.subr.bf16.mxu1 %v11773_v21  ;;  %11002 = vmatprep.subr.bf16.mxu0 %v11774_v52 }
 0xf85   : > { %v3662_v42 = vmax.f32 %v3588_v37, 0.0  ;;  %v3664_v45 = vmax.f32 %v3631_v38, 0.0 }
 0xf86   : > { %v3933_v4 = vpack.c.bf16 %v3661_v32, %v3645_v29  ;;  %v3935_v48 = vpack.c.bf16 %v3663_v40, %v3647_v31 }
 0xf87   : > { %v3934_v50 = vpack.c.bf16 %v3662_v42, %v3646_v43  ;;  %v3936_v54 = vpack.c.bf16 %v3664_v45, %v3648_v44  ;;  %10981 = vmatpush3.bf16.msra.mxu1 %v11775_v62  ;;  %11003 = vmatpush3.bf16.msra.mxu0 %v11776_v39 }
 0xf88   : > { %11376 = vmatprep.subr.bf16.mxu0 %v12229_v0 }
 0xf89   : > { %4984 = vmatprep.mubr.bf16.mxu1 %v3934_v50  ;;  %5025 = vmatprep.mubr.bf16.mxu0 %v3936_v54 }
 0xf8a   : > { %4985 = vmatmul.mubr.bf16.vlgmr.msra.gmra.mrb[64].mxu1 %v3933_v4  ;;  %5026 = vmatmul.mubr.bf16.vlgmr.msra.gmra.mrb[40].mxu0 %v3935_v48 }
 0xf8b   : > { %5276 = vmatprep.mubr.bf16.mxu1 %v12231_v36  ;;  %11392 = vmatprep.mubr.msk.bf16.mxu0 %vm12230_vm0, %v12229_v0 }
 0xffd   : > { %v10850_v57 = vpop.f32.mrb[52].mxu1  ;;  %v10872_v58 = vpop.f32.mrb[28].mxu0 }
 0xffe   : > { %v10851_v56 = vpop.f32.mrb[53].mxu1  ;;  %v10873_v61 = vpop.f32.mrb[29].mxu0 }
 0xfff   : > { %v10852_v59 = vadd.f32 %v10851_v56, %v10850_v57  ;;  %v10874_v55 = vadd.f32 %v10873_v61, %v10872_v58  ;;  %v10853_v3 = vpop.f32.mrb[54].mxu1  ;;  %v10875_v63 = vpop.f32.mrb[30].mxu0 }
0x1000   : > { %v10854_v1 = vpop.f32.mrb[55].mxu1  ;;  %v10876_v5 = vpop.f32.mrb[31].mxu0 }
0x1001   : > { %v4741_v6 = vadd.f32 %v10852_v59, %v3937_v60  ;;  %v10855_v7 = vadd.f32 %v10854_v1, %v10853_v3  ;;  %v10877_v8 = vadd.f32 %v10876_v5, %v10875_v63 }
0x1003   : > { %v4782_v2 = vadd.f32 %v10874_v55, %v4741_v6  ;;  %v4744_v9 = vadd.f32 %v10855_v7, %v3937_v60 }
0x1005   : > { %v4785_v10 = vadd.f32 %v10877_v8, %v4744_v9 }
0x101d   : > { %v10894_v11 = vpop.f32.mrb[56].mxu1  ;;  %v10916_v12 = vpop.f32.mrb[32].mxu0 }
0x101e   : > { %v10895_v14 = vpop.f32.mrb[57].mxu1  ;;  %v10917_v16 = vpop.f32.mrb[33].mxu0 }
0x101f   : > { %v10896_v17 = vadd.f32 %v10895_v14, %v10894_v11  ;;  %v10918_v18 = vadd.f32 %v10917_v16, %v10916_v12  ;;  %v10897_v53 = vpop.f32.mrb[58].mxu1  ;;  %v10919_v21 = vpop.f32.mrb[34].mxu0  ;;  %v11777_v11 = vld [vmem:[%s12542_s21 + $0xc0] ss:$12 sps:$4 sm:$0xff]   ;;  %v11779_v12 = vld [vmem:[%s12542_s21 + $0xc4] ss:$12 sps:$4 sm:$0xff]  }
0x1020   : > { %v10898_v52 = vpop.f32.mrb[59].mxu1  ;;  %v10920_v27 = vpop.f32.mrb[35].mxu0  ;;  %v11780_v14 = vld [vmem:[%s12542_s21 + $0xc8] ss:$12 sps:$4 sm:$0xff]   ;;  %5244 = vmatprep.subr.bf16.mxu1 %v11779_v12 }
0x1021   : > { %v4823_v28 = vadd.f32 %v10896_v17, %v4782_v2  ;;  %v10899_v30 = vadd.f32 %v10898_v52, %v10897_v53  ;;  %v10921_v41 = vadd.f32 %v10920_v27, %v10919_v21  ;;  %v11783_v16 = vld [vmem:[%s12542_s21 + $0xdc] ss:$12 sps:$4 sm:$0xff]   ;;  %11377 = vmatpush3.bf16.msra.mxu0 %v11780_v14  ;;  %v11784_v17 = vld [vmem:[%s12542_s21 + $0xe0] ss:$12 sps:$4 sm:$0xff]   ;;  %5245 = vmatpush1.bf16.msra.mxu1 %v11777_v11 }
0x1022   : > { %11378 = vmatprep.subr.bf16.mxu0 %v12229_v0  ;;  %5246 = vmatprep.subr.bf16.mxu1 %v11783_v16 }
0x1023   : > { %v4864_v33 = vadd.f32 %v10918_v18, %v4823_v28  ;;  %v4826_v34 = vadd.f32 %v10899_v30, %v4785_v10  ;;  %v11781_v18 = vld [vmem:[%s12542_s21 + $0xd8] ss:$12 sps:$4 sm:$0xff]  }
0x1025   : > { %v4867_v35 = vadd.f32 %v10921_v41, %v4826_v34  ;;  %11379 = vmatpush3.bf16.msra.mxu0 %v11784_v17  ;;  %5247 = vmatpush1.bf16.msra.mxu1 %v11781_v18  ;;  %v11787_v41 = vld [vmem:[%s12542_s21 + $0xf4] ss:$12 sps:$4 sm:$0xff]   ;;  %v11788_v34 = vld [vmem:[%s12542_s21 + $0xf8] ss:$12 sps:$4 sm:$0xff]  }
0x1026   : > { %11380 = vmatprep.subr.bf16.mxu0 %v12229_v0  ;;  %5248 = vmatprep.subr.bf16.mxu1 %v11787_v41 }
0x1029   : > { %11381 = vmatpush3.bf16.msra.mxu0 %v11788_v34 }
0x102a   : > { %11382 = vmatprep.subr.bf16.mxu0 %v12229_v0 }
0x103d   : > { %v10938_v46 = vpop.f32.mrb[60].mxu1  ;;  %v10960_v37 = vpop.f32.mrb[36].mxu0 }
0x103e   : > { %v10939_v38 = vpop.f32.mrb[61].mxu1  ;;  %v10961_v62 = vpop.f32.mrb[37].mxu0 }
0x103f   : > { %v10940_v39 = vadd.f32 %v10939_v38, %v10938_v46  ;;  %v10962_v29 = vadd.f32 %v10961_v62, %v10960_v37  ;;  %v10941_v31 = vpop.f32.mrb[62].mxu1  ;;  %v10963_v32 = vpop.f32.mrb[38].mxu0  ;;  %v11789_v46 = vld [vmem:[%s12542_s21 + $0x108] ss:$12 sps:$4 sm:$0xff]   ;;  %v11792_v37 = vld [vmem:[%s12542_s21 + $0x110] ss:$12 sps:$4 sm:$0xff]  }
0x1040   : > { %v10942_v40 = vpop.f32.mrb[63].mxu1  ;;  %v10964_v43 = vpop.f32.mrb[39].mxu0  ;;  %11383 = vmatpush3.bf16.msra.mxu0 %v11792_v37  ;;  %v11795_v38 = vld [vmem:[%s12542_s21 + $0x124] ss:$12 sps:$4 sm:$0xff]   ;;  %v11793_v62 = vld [vmem:[%s12542_s21 + $0x120] ss:$12 sps:$4 sm:$0xff]  }
0x1041   : > { %v4905_v44 = vadd.f32 %v10940_v39, %v4864_v33  ;;  %v10943_v42 = vadd.f32 %v10942_v40, %v10941_v31  ;;  %v10965_v45 = vadd.f32 %v10964_v43, %v10963_v32  ;;  %v11785_v33 = vld [vmem:[%s12542_s21 + $0xf0] ss:$12 sps:$4 sm:$0xff]   ;;  %11384 = vmatprep.subr.bf16.mxu0 %v12229_v0  ;;  %v11796_v39 = vld [vmem:[%s12542_s21 + $0x128] ss:$12 sps:$4 sm:$0xff]   ;;  %v11797_v31 = vld [vmem:[%s12542_s21 + $0x138] ss:$12 sps:$4 sm:$0xff]  }
0x1042   : > { %5249 = vmatpush1.bf16.msra.mxu1 %v11785_v33  ;;  %v11800_v32 = vld [vmem:[%s12542_s21 + $0x140] ss:$12 sps:$4 sm:$0xff]   ;;  %v11801_v43 = vld [vmem:[%s12542_s21 + $0x150] ss:$12 sps:$4 sm:$0xff]  }
0x1043   : > { %v4946_v4 = vadd.f32 %v10962_v29, %v4905_v44  ;;  %v4908_v48 = vadd.f32 %v10943_v42, %v4867_v35  ;;  %v11791_v35 = vld [vmem:[%s12542_s21 + $0x10c] ss:$12 sps:$4 sm:$0xff]   ;;  %v11799_v29 = vld [vmem:[%s12542_s21 + $0x13c] ss:$12 sps:$4 sm:$0xff]   ;;  %v11803_v40 = vld [vmem:[%s12542_s21 + $0x154] ss:$12 sps:$4 sm:$0xff]  }
0x1044   : > { %5250 = vmatprep.subr.bf16.mxu1 %v11791_v35  ;;  %11385 = vmatpush3.bf16.msra.mxu0 %v11796_v39  ;;  %v11804_v44 = vld [vmem:[%s12542_s21 + $0x158] ss:$12 sps:$4 sm:$0xff]  }
0x1045   : > { %v4949_v50 = vadd.f32 %v10965_v45, %v4908_v48  ;;  %11386 = vmatprep.subr.bf16.mxu0 %v12229_v0  ;;  %v11807_v42 = vld [vmem:[%s12542_s21 + $0x16c] ss:$12 sps:$4 sm:$0xff]   ;;  %v11805_v45 = vld [vmem:[%s12542_s21 + $0x168] ss:$12 sps:$4 sm:$0xff]  }
0x1046   : > { %5251 = vmatpush1.bf16.msra.mxu1 %v11789_v46 }
0x1047   : > { %5252 = vmatprep.subr.bf16.mxu1 %v11795_v38 }
0x1048   : > { %11387 = vmatpush3.bf16.msra.mxu0 %v11800_v32 }
0x1049   : > { %11388 = vmatprep.subr.bf16.mxu0 %v12229_v0 }
0x104a   : > { %5253 = vmatpush1.bf16.msra.mxu1 %v11793_v62 }
0x104b   : > { %5254 = vmatprep.subr.bf16.mxu1 %v11799_v29 }
0x104c   : > { %11389 = vmatpush3.bf16.msra.mxu0 %v11804_v44 }
0x104d   : > { %11390 = vmatprep.subr.bf16.mxu0 %v12229_v0 }
0x104e   : > { %5255 = vmatpush1.bf16.msra.mxu1 %v11797_v31 }
0x104f   : > { %5256 = vmatprep.subr.bf16.mxu1 %v11803_v40 }
0x1052   : > { %5257 = vmatpush1.bf16.msra.mxu1 %v11801_v43 }
0x1053   : > { %5258 = vmatprep.subr.bf16.mxu1 %v11807_v42 }
0x1056   : > { %5259 = vmatpush1.bf16.msra.mxu1 %v11805_v45 }
0x1057   : > { %11396 = vmatprep.subr.mxu1 %v12229_v0 }
0x105d   : > { %v10982_v54 = vpop.f32.mrb[64].mxu1  ;;  %v11004_v57 = vpop.f32.mrb[40].mxu0 }
0x105e   : > { %v10983_v58 = vpop.f32.mrb[65].mxu1  ;;  %v11005_v60 = vpop.f32.mrb[41].mxu0 }
0x105f   : > { %v10984_v56 = vadd.f32 %v10983_v58, %v10982_v54  ;;  %v11006_v61 = vadd.f32 %v11005_v60, %v11004_v57  ;;  %v10985_v59 = vpop.f32.mrb[66].mxu1  ;;  %v11007_v55 = vpop.f32.mrb[42].mxu0 }
0x1060   : > { %v10986_v3 = vpop.f32.mrb[67].mxu1  ;;  %v11008_v63 = vpop.f32.mrb[43].mxu0 }
0x1061   : > { %v4987_v1 = vadd.f32 %v10984_v56, %v4946_v4  ;;  %v10987_v5 = vadd.f32 %v10986_v3, %v10985_v59  ;;  %v11009_v6 = vadd.f32 %v11008_v63, %v11007_v55  ;;  %v11808_v4 = vld [vmem:[%s12542_s21 + $0x170] ss:$12 sps:$4 sm:$0xff]  }
0x1062   : > { %11391 = vmatpush3.bf16.msra.mxu0 %v11808_v4 }
0x1063   : > { %v5028_v7 = vadd.f32 %v11006_v61, %v4987_v1  ;;  %v4990_v8 = vadd.f32 %v10987_v5, %v4949_v50  ;;  %11436 = vmatprep.subr.mxu0 %v12229_v0  ;;  %v5036_v61 = vld [vmem:[%s12627_s25 + $0x7] ss:$0 sm:$0xff]  ;;  %v5037_v1 = vld [vmem:[%s12627_s25 + $0x80] ss:$0 sm:$0xff] }
0x1065   : > { %v5031_v2 = vadd.f32 %v11009_v6, %v4990_v8  ;;  %v5034_v9 = vadd.f32 %v5028_v7, %v12916_v19 }
0x1067   : > { %5038 = vadd.xlane.f32.xlu1 %v5034_v9  ;;  %v5035_v10 = vadd.f32 %v5031_v2, %v12918_v20  ;;  %v10050_v2 = vld [vmem:[%s12627_s25 + $0x81] ss:$8 sm:$0x7] }
0x1068   : > { %v5104_v12 = vrot.slane %v10050_v2, %v12643_v47  ;;  %v5112_v14 = vrot.slane %v10050_v2, %v12651_v51 }
0x1069   : > { %5040 = vadd.xlane.f32.xlu0 %v5035_v10 }
0x10f4   : > { %v5039_v19 = vpop.xlane.xlu1 %5038 }
0x10f5   : > { %v5042_v20 = vmul.f32 0.0078125, %v5039_v19 }
0x10f6   : > { %v5041_v53 = vpop.xlane.xlu0 %5040 }
0x10f7   : > { %v5044_v21 = vsub.f32 %v5034_v9, %v5042_v20  ;;  %v5043_v52 = vmul.f32 0.0078125, %v5041_v53  ;;  %v5108_v9 = vrot.slane %v10050_v2, %v12647_v49 }
0x10f9   : > { %v5045_v27 = vsub.f32 %v5035_v10, %v5043_v52  ;;  %v5046_v28 = vmul.f32 %v5044_v21, %v5044_v21 }
0x10fb   : > { %5048 = vadd.xlane.f32.xlu1 %v5046_v28  ;;  %v5047_v30 = vmul.f32 %v5045_v27, %v5045_v27 }
0x10fd   : > { %5050 = vadd.xlane.f32.xlu0 %v5047_v30 }
0x1188   : > { %v5049_v48 = vpop.xlane.xlu1 %5048 }
0x1189   : > { %v5052_v50 = vmul.f32 0.0078125, %v5049_v48 }
0x118a   : > { %v5051_v54 = vpop.xlane.xlu0 %5050 }
0x118b   : > { %v5054_v57 = vadd.f32 1e-05, %v5052_v50  ;;  %v5053_v58 = vmul.f32 0.0078125, %v5051_v54 }
0x118d   : > { %11981 = vrsqrt.f32 %v5054_v57  ;;  %v5055_v60 = vadd.f32 1e-05, %v5053_v58 }
0x118f   : > { %11983 = vrsqrt.f32 %v5055_v60 }
0x1197   : > { %v11982_v56 = vpop.eup %11981 }
0x1198   : > { %v5058_v59 = vmul.f32 %v11982_v56, %v5044_v21 }
0x1199   : > { %v11984_v55 = vpop.eup %11983 }
0x119a   : > { %v5059_v3 = vmul.f32 %v11984_v55, %v5045_v27  ;;  %v5060_v63 = vmul.f32 %v5058_v59, %v5036_v61 }
0x119c   : > { %v5061_v5 = vmul.f32 %v5059_v3, %v5036_v61  ;;  %v13251_v6 = vadd.f32 %v5060_v63, %v5037_v1 }
0x119e   : > { %v13253_v7 = vadd.f32 %v5061_v5, %v5037_v1 }
0x11a0   : > { %v5097_v8 = vpack.c.bf16 %v13253_v7, %v13251_v6 }
0x11a2   : > { %5277 = vmatmul.mubr.bf16.vlgmr.msra.gmra.mrb[68].mxu1 %v5097_v8  ;;  %11393 = vmatmul.mubr.bf16.vlgmr.msra.gmra.mrb[44].mxu0 %v5097_v8 }
0x11a3   : > { %11398 = vmatprep.mubr.msk.f32.mxu1 %vm12230_vm0, %v12229_v0  ;;  %11438 = vmatprep.mubr.msk.f32.mxu0 %vm12230_vm0, %v12229_v0 }
0x1275   : > { %v5278_v10 = vpop.f32.mrb[68].mxu1  ;;  %v5321_v11 = vpop.f32.mrb[44].mxu0 }
0x1276   : > { %v5280_v16 = vpop.f32.mrb[69].mxu1  ;;  %v11394_v17 = vpop.f32.mrb[45].mxu0  ;;  %v13271_v27 = vadd.f32 %v5278_v10, %v5104_v12  ;;  %v13285_v41 = vadd.f32 %v5321_v11, %v5112_v14 }
0x1277   : > { %v13265_v18 = vadd.f32 %v5280_v16, %v5108_v9  ;;  %v5282_v19 = vpop.f32.mrb[70].mxu1  ;;  %v5324_v20 = vpop.f32.mrb[46].mxu0 }
0x1278   : > { %v13267_v53 = vadd.f32 %v5324_v20, %v5112_v14  ;;  %v5284_v21 = vpop.f32.mrb[71].mxu1  ;;  %v11395_v52 = vpop.f32.mrb[47].mxu0  ;;  %v13282_v30 = vadd.f32 %v5282_v19, %v5104_v12 }
0x1279   : > { %11397 = vmatpush3.xpose.msk.msra.mxu1 %vm946_vm1, %v13265_v18  ;;  %v13274_v28 = vadd.f32 %v5284_v21, %v5108_v9 }
0x127a   : > { %11401 = vmatprep.subr.mxu1 %v12229_v0 }
0x127c   : > { %11399 = vmatmul.mubr.msk.f32.vlgmr.msra.gmra.mrb[72].mxu1 %vm946_vm1, %v13271_v27 }
0x127d   : > { %11402 = vmatpush3.xpose.msk.msra.mxu1 %vm946_vm1, %v13274_v28  ;;  %11403 = vmatprep.mubr.msk.f32.mxu1 %vm12230_vm0, %v12229_v0 }
0x127e   : > { %11406 = vmatprep.subr.mxu1 %v12229_v0 }
0x1280   : > { %11404 = vmatmul.mubr.msk.f32.vlgmr.msra.gmra.mrb[74].mxu1 %vm946_vm1, %v13282_v30 }
0x1281   : > { %11407 = vmatpush3.msra.mxu1 %v13285_v41  ;;  %11408 = vmatprep.mubr.msk.f32.mxu1 %vm12230_vm0, %v12229_v0 }
0x1282   : > { %11411 = vmatprep.subr.mxu1 %v12229_v0 }
0x134f   : > { %v5400_v33 = vpop.f32.mrb[72].mxu1 }
0x1350   : > { %v5401_v34 = vadd.f32 %v5400_v33, %v12694_v13  ;;  %v11400_v35 = vpop.f32.mrb[73].mxu1 }
0x1352   : > { %v5480_v46 = vsel %vm1099_vm2, %v5401_v34, -inf }
0x1353   : > { %5481 = vmax.xlane.f32.xlu1 %v5480_v46  ;;  %v5476_v37 = vpop.f32.mrb[74].mxu1 }
0x1354   : > { %v5477_v38 = vadd.f32 %v5476_v37, %v12697_v15  ;;  %v11405_v62 = vpop.f32.mrb[75].mxu1 }
0x1356   : > { %v5483_v39 = vsel %vm1099_vm2, %v5477_v38, -inf }
0x1357   : > { %5484 = vmax.xlane.f32.xlu0 %v5483_v39 }
0x13e0   : > { %v5482_v29 = vpop.xlane.xlu1 %5481 }
0x13e1   : > { %v5486_v31 = vsub.f32 %v5401_v34, %v5482_v29 }
0x13e3   : > { %v5488_v32 = vmul.f32 1.442695, %v5486_v31 }
0x13e4   : > { %v5485_v40 = vpop.xlane.xlu0 %5484 }
0x13e5   : > { %11985 = vpow2.f32 %v5488_v32  ;;  %v5487_v43 = vsub.f32 %v5477_v38, %v5485_v40 }
0x13e7   : > { %v5490_v44 = vmul.f32 1.442695, %v5487_v43 }
0x13e9   : > { %11987 = vpow2.f32 %v5490_v44 }
0x13ef   : > { %v11986_v42 = vpop.eup %11985 }
0x13f0   : > { %v5492_v45 = vsel %vm1099_vm2, %v11986_v42, 0.0 }
0x13f1   : > { %5493 = vadd.xlane.f32.xlu1 %v5492_v45 }
0x13f3   : > { %v11988_v4 = vpop.eup %11987 }
0x13f4   : > { %v5495_v48 = vsel %vm1099_vm2, %v11988_v4, 0.0 }
0x13f5   : > { %5496 = vadd.xlane.f32.xlu0 %v5495_v48 }
0x1402   : > { %5650 = vrot.lane.b32.xlu1 %v13265_v18, %s12232_s5 }
0x1406   : > { %5728 = vrot.lane.b32.xlu1 %v13274_v28, %s12232_s5 }
0x140a   : > { %5726 = vrot.lane.b32.xlu1 %v13282_v30, %s12232_s5 }
0x140b   : > { %5648 = vrot.lane.b32.xlu0 %v13271_v27, %s12232_s5 }
0x147e   : > { %v5494_v50 = vpop.xlane.xlu1 %5493 }
0x147f   : > { %11989 = vrcp.f32 %v5494_v50 }
0x1482   : > { %v5497_v54 = vpop.xlane.xlu0 %5496  ;;  %v5651_v56 = vpop.permute.xlu1 %5650 }
0x1483   : > { %11991 = vrcp.f32 %v5497_v54 }
0x1486   : > { %v5729_v59 = vpop.permute.xlu1 %5728  ;;  %v5649_v55 = vpop.permute.xlu0 %5648 }
0x1489   : > { %v11990_v57 = vpop.eup %11989 }
0x148a   : > { %v5499_v58 = vmul.f32 %v11990_v57, %v11986_v42  ;;  %v5727_v3 = vpop.permute.xlu1 %5726 }
0x148c   : > { %11409 = vmatmul.mubr.msk.f32.vlgmr.msra.gmra.mrb[76].mxu1 %vm1099_vm2, %v5499_v58 }
0x148d   : > { %v11992_v60 = vpop.eup %11991  ;;  %11412 = vmatpush3.msra.mxu1 %v13267_v53  ;;  %11413 = vmatprep.mubr.msk.f32.mxu1 %vm12230_vm0, %v12229_v0 }
0x148e   : > { %v5501_v61 = vmul.f32 %v11992_v60, %v11988_v4  ;;  %11416 = vmatprep.subr.mxu1 %v12229_v0 }
0x1490   : > { %11414 = vmatmul.mubr.msk.f32.vlgmr.msra.gmra.mrb[78].mxu1 %vm1099_vm2, %v5501_v61 }
0x1491   : > { %11418 = vmatprep.mubr.msk.f32.mxu1 %vm12230_vm0, %v12229_v0 }
0x1494   : > { %11417 = vmatpush3.xpose.msk.msra.mxu1 %vm946_vm1, %v5651_v56 }
0x1495   : > { %11421 = vmatprep.subr.mxu1 %v12229_v0 }
0x1497   : > { %11419 = vmatmul.mubr.msk.f32.vlgmr.msra.gmra.mrb[80].mxu1 %vm946_vm1, %v5649_v55 }
0x1498   : > { %11422 = vmatpush3.xpose.msk.msra.mxu1 %vm946_vm1, %v5729_v59  ;;  %11423 = vmatprep.mubr.msk.f32.mxu1 %vm12230_vm0, %v12229_v0 }
0x1499   : > { %11426 = vmatprep.subr.mxu1 %v12229_v0 }
0x149b   : > { %11424 = vmatmul.mubr.msk.f32.vlgmr.msra.gmra.mrb[82].mxu1 %vm946_vm1, %v5727_v3 }
0x149c   : > { %11428 = vmatprep.mubr.msk.f32.mxu1 %vm12230_vm0, %v12229_v0 }
0x155f   : > { %v13325_v63 = vpop.f32.mrb[76].mxu1 }
0x1560   : > { %v11410_v1 = vpop.f32.mrb[77].mxu1 }
0x1563   : > { %v13327_v5 = vpop.f32.mrb[78].mxu1 }
0x1564   : > { %v11415_v8 = vpop.f32.mrb[79].mxu1 }
0x156a   : > { %v5722_v2 = vpop.f32.mrb[80].mxu1 }
0x156b   : > { %v5723_v9 = vadd.f32 %v5722_v2, %v12694_v13  ;;  %v11420_v10 = vpop.f32.mrb[81].mxu1 }
0x156d   : > { %v5804_v11 = vsel %vm1099_vm2, %v5723_v9, -inf }
0x156e   : > { %5805 = vmax.xlane.f32.xlu1 %v5804_v11  ;;  %v5800_v12 = vpop.f32.mrb[82].mxu1 }
0x156f   : > { %v5801_v14 = vadd.f32 %v5800_v12, %v12697_v15  ;;  %v11425_v16 = vpop.f32.mrb[83].mxu1 }
0x1571   : > { %v5807_v17 = vsel %vm1099_vm2, %v5801_v14, -inf }
0x1572   : > { %5808 = vmax.xlane.f32.xlu0 %v5807_v17 }
0x157f   : > { %5827 = vrot.lane.b32.xlu1 %v13285_v41, %s12232_s5 }
0x1583   : > { %5982 = vrot.lane.b32.xlu1 %v13265_v18, %s12234_s16 }
0x1587   : > { %6060 = vrot.lane.b32.xlu1 %v13274_v28, %s12234_s16 }
0x158b   : > { %5980 = vrot.lane.b32.xlu1 %v13271_v27, %s12234_s16 }
0x15fb   : > { %v5806_v19 = vpop.xlane.xlu1 %5805 }
0x15fc   : > { %v5810_v20 = vsub.f32 %v5723_v9, %v5806_v19 }
0x15fe   : > { %v5812_v21 = vmul.f32 1.442695, %v5810_v20 }
0x15ff   : > { %v5828_v52 = vpop.permute.xlu1 %5827  ;;  %v5809_v38 = vpop.xlane.xlu0 %5808 }
0x1600   : > { %11993 = vpow2.f32 %v5812_v21  ;;  %11427 = vmatpush3.msra.mxu1 %v5828_v52  ;;  %v5811_v62 = vsub.f32 %v5801_v14, %v5809_v38 }
0x1601   : > { %11431 = vmatprep.subr.mxu1 %v12229_v0 }
0x1602   : > { %v5814_v39 = vmul.f32 1.442695, %v5811_v62 }
0x1603   : > { %v5983_v33 = vpop.permute.xlu1 %5982 }
0x1604   : > { %11437 = vmatpush3.xpose.msk.msra.mxu0 %vm946_vm1, %v5983_v33  ;;  %11995 = vpow2.f32 %v5814_v39 }
0x1605   : > { %11446 = vmatprep.subr.mxu0 %v12229_v0 }
0x1607   : > { %v6061_v34 = vpop.permute.xlu1 %6060 }
0x160a   : > { %v11994_v35 = vpop.eup %11993 }
0x160b   : > { %v5981_v46 = vpop.permute.xlu1 %5980  ;;  %v5816_v37 = vsel %vm1099_vm2, %v11994_v35, 0.0 }
0x160c   : > { %11439 = vmatmul.mubr.msk.f32.vlgmr.msra.gmra.mrb[48].mxu0 %vm946_vm1, %v5981_v46  ;;  %5817 = vadd.xlane.f32.xlu0 %v5816_v37 }
0x160d   : > { %11448 = vmatprep.mubr.msk.f32.mxu0 %vm12230_vm0, %v12229_v0 }
0x160e   : > { %v11996_v29 = vpop.eup %11995 }
0x160f   : > { %v5819_v31 = vsel %vm1099_vm2, %v11996_v29, 0.0 }
0x1622   : > { %5904 = vrot.lane.b32.xlu0 %v13267_v53, %s12232_s5 }
0x1641   : > { %5820 = vadd.xlane.f32.xlu0 %v5819_v31 }
0x1657   : > { %6058 = vrot.lane.b32.xlu0 %v13282_v30, %s12234_s16 }
0x1699   : > { %v5818_v32 = vpop.xlane.xlu0 %5817 }
0x169a   : > { %11997 = vrcp.f32 %v5818_v32 }
0x169d   : > { %v5905_v44 = vpop.permute.xlu0 %5904 }
0x16a4   : > { %v11998_v40 = vpop.eup %11997 }
0x16a5   : > { %v5823_v43 = vmul.f32 %v11998_v40, %v11994_v35 }
0x16a7   : > { %11429 = vmatmul.mubr.msk.f32.vlgmr.msra.gmra.mrb[84].mxu1 %vm1099_vm2, %v5823_v43 }
0x16a8   : > { %11432 = vmatpush3.msra.mxu1 %v5905_v44  ;;  %11433 = vmatprep.mubr.msk.f32.mxu1 %vm12230_vm0, %v12229_v0 }
0x16a9   : > { %11441 = vmatprep.subr.mxu1 %v12229_v0 }
0x16ce   : > { %v5821_v42 = vpop.xlane.xlu0 %5820 }
0x16cf   : > { %11999 = vrcp.f32 %v5821_v42 }
0x16d2   : > { %v6059_v48 = vpop.permute.xlu0 %6058 }
0x16d9   : > { %v12000_v45 = vpop.eup %11999 }
0x16da   : > { %v5825_v4 = vmul.f32 %v12000_v45, %v11996_v29 }
0x16dc   : > { %11434 = vmatmul.mubr.msk.f32.vlgmr.msra.gmra.mrb[86].mxu1 %vm1099_vm2, %v5825_v4 }
0x16dd   : > { %11442 = vmatpush3.xpose.msk.msra.mxu1 %vm946_vm1, %v6061_v34  ;;  %11443 = vmatprep.mubr.msk.f32.mxu1 %vm12230_vm0, %v12229_v0 }
0x16de   : > { %11451 = vmatprep.subr.mxu1 %v12229_v0 }
0x16df   : > { %v6054_v50 = vpop.f32.mrb[48].mxu0 }
0x16e0   : > { %v6055_v54 = vadd.f32 %v6054_v50, %v12694_v13  ;;  %v11440_v57 = vpop.f32.mrb[49].mxu0  ;;  %11444 = vmatmul.mubr.msk.f32.vlgmr.msra.gmra.mrb[88].mxu1 %vm946_vm1, %v6059_v48 }
0x16e1   : > { %11453 = vmatprep.mubr.msk.f32.mxu1 %vm12230_vm0, %v12229_v0 }
0x16e2   : > { %v6136_v58 = vsel %vm1099_vm2, %v6055_v54, -inf }
0x16e3   : > { %6137 = vmax.xlane.f32.xlu1 %v6136_v58 }
0x16f4   : > { %6158 = vrot.lane.b32.xlu1 %v13285_v41, %s12234_s16 }
0x16f8   : > { %6312 = vrot.lane.b32.xlu1 %v13265_v18, %s12235_s19 }
0x16fc   : > { %6390 = vrot.lane.b32.xlu1 %v13274_v28, %s12235_s19 }
0x1700   : > { %6310 = vrot.lane.b32.xlu1 %v13271_v27, %s12235_s19 }
0x1770   : > { %v6138_v60 = vpop.xlane.xlu1 %6137 }
0x1771   : > { %v6142_v55 = vsub.f32 %v6055_v54, %v6138_v60 }
0x1773   : > { %v6144_v3 = vmul.f32 1.442695, %v6142_v55 }
0x1774   : > { %v6159_v56 = vpop.permute.xlu1 %6158 }
0x1775   : > { %11447 = vmatpush3.msra.mxu0 %v6159_v56  ;;  %12001 = vpow2.f32 %v6144_v3 }
0x1776   : > { %11456 = vmatprep.subr.mxu0 %v12229_v0 }
0x1778   : > { %v6313_v20 = vpop.permute.xlu1 %6312 }
0x177a   : > { %v5899_v61 = vpop.f32.mrb[84].mxu1 }
0x177b   : > { %v11430_v59 = vpop.f32.mrb[85].mxu1 }
0x177c   : > { %v6391_v33 = vpop.permute.xlu1 %6390 }
0x177f   : > { %v12002_v27 = vpop.eup %12001 }
0x1780   : > { %v6148_v11 = vsel %vm1099_vm2, %v12002_v27, 0.0  ;;  %v6311_v46 = vpop.permute.xlu1 %6310 }
0x17af   : > { %v5976_v1 = vpop.f32.mrb[86].mxu1 }
0x17b0   : > { %v11586_v8 = vpack.i.bf16 %v5976_v1, %v5899_v61  ;;  %v11435_v2 = vpop.f32.mrb[87].mxu1 }
0x17b3   : > { %v6132_v18 = vpop.f32.mrb[88].mxu1 }
0x17b4   : > { %v6133_v9 = vadd.f32 %v6132_v18, %v12697_v15  ;;  %v11445_v28 = vpop.f32.mrb[89].mxu1 }
0x17b6   : > { %v6139_v10 = vsel %vm1099_vm2, %v6133_v9, -inf }
0x17b7   : > { %6140 = vmax.xlane.f32.xlu0 %v6139_v10 }
0x17bb   : > { %6149 = vadd.xlane.f32.xlu0 %v6148_v11 }
0x17d1   : > { %6234 = vrot.lane.b32.xlu0 %v13267_v53, %s12234_s16 }
0x1844   : > { %v6141_v12 = vpop.xlane.xlu0 %6140 }
0x1845   : > { %v6143_v14 = vsub.f32 %v6133_v9, %v6141_v12  ;;  %v11809_v12 = vld [vmem:[%s12550_s20 + $0x40] sm:$0xff]  }
0x1847   : > { %v6146_v16 = vmul.f32 1.442695, %v6143_v14  ;;  %v11811_v14 = vld [vmem:[%s12550_s20 + $0x50] sm:$0xff]  }
0x1848   : > { %v6150_v17 = vpop.xlane.xlu0 %6149 }
0x1849   : > { %12003 = vpow2.f32 %v6146_v16  ;;  %v11812_v16 = vld [vmem:[%s12550_s20 + $0x58] sm:$0xff]  }
0x184a   : > { %12005 = vrcp.f32 %v6150_v17  ;;  %v11813_v17 = vld [vmem:[%s12550_s20 + $0x60] sm:$0xff]  }
0x184c   : > { %v6235_v19 = vpop.permute.xlu0 %6234 }
0x184d   : > { %11452 = vmatpush3.msra.mxu1 %v6235_v19  ;;  %v11814_v19 = vld [vmem:[%s12550_s20 + $0x68] sm:$0xff]  }
0x184e   : > { %11461 = vmatprep.subr.mxu1 %v12229_v0 }
0x1853   : > { %v12004_v21 = vpop.eup %12003 }
0x1854   : > { %v12006_v52 = vpop.eup %12005  ;;  %v6151_v34 = vsel %vm1099_vm2, %v12004_v21, 0.0 }
0x1855   : > { %v6155_v35 = vmul.f32 %v12006_v52, %v12002_v27  ;;  %6152 = vadd.xlane.f32.xlu0 %v6151_v34 }
0x1857   : > { %11449 = vmatmul.mubr.msk.f32.vlgmr.msra.gmra.mrb[50].mxu0 %vm1099_vm2, %v6155_v35 }
0x1858   : > { %11457 = vmatpush3.xpose.msk.msra.mxu0 %vm946_vm1, %v6313_v20  ;;  %11458 = vmatprep.mubr.msk.f32.mxu0 %vm12230_vm0, %v12229_v0  ;;  %v11815_v20 = vld [vmem:[%s12550_s20 + $0x70] sm:$0xff]  }
0x1859   : > { %11466 = vmatprep.subr.mxu0 %v12229_v0 }
0x185b   : > { %11459 = vmatmul.mubr.msk.f32.vlgmr.msra.gmra.mrb[52].mxu0 %vm946_vm1, %v6311_v46 }
0x185c   : > { %11468 = vmatprep.mubr.msk.f32.mxu0 %vm12230_vm0, %v12229_v0 }
0x186b   : > { %6388 = vrot.lane.b32.xlu0 %v13282_v30, %s12235_s19 }
0x18e2   : > { %v6153_v37 = vpop.xlane.xlu0 %6152 }
0x18e3   : > { %12007 = vrcp.f32 %v6153_v37 }
0x18e6   : > { %v6389_v39 = vpop.permute.xlu0 %6388 }
0x18ed   : > { %v12008_v38 = vpop.eup %12007 }
0x18ee   : > { %v6157_v62 = vmul.f32 %v12008_v38, %v12004_v21  ;;  %v11816_v21 = vld [vmem:[%s12550_s20 + $0x78] sm:$0xff]  }
0x18f0   : > { %11454 = vmatmul.mubr.msk.f32.vlgmr.msra.gmra.mrb[90].mxu1 %vm1099_vm2, %v6157_v62 }
0x18f1   : > { %11462 = vmatpush3.xpose.msk.msra.mxu1 %vm946_vm1, %v6391_v33  ;;  %11463 = vmatprep.mubr.msk.f32.mxu1 %vm12230_vm0, %v12229_v0 }
0x18f2   : > { %11471 = vmatprep.subr.mxu1 %v12229_v0 }
0x18f4   : > { %11464 = vmatmul.mubr.msk.f32.vlgmr.msra.gmra.mrb[92].mxu1 %vm946_vm1, %v6389_v39 }
0x18f5   : > { %11473 = vmatprep.mubr.msk.f32.mxu1 %vm12230_vm0, %v12229_v0 }
0x192a   : > { %v6230_v30 = vpop.f32.mrb[50].mxu0 }
0x192b   : > { %v11450_v29 = vpop.f32.mrb[51].mxu0 }
0x192e   : > { %v6384_v31 = vpop.f32.mrb[52].mxu0 }
0x192f   : > { %v6385_v32 = vadd.f32 %v6384_v31, %v12694_v13  ;;  %v11460_v40 = vpop.f32.mrb[53].mxu0 }
0x1931   : > { %v6466_v43 = vsel %vm1099_vm2, %v6385_v32, -inf }
0x1932   : > { %6467 = vmax.xlane.f32.xlu1 %v6466_v43 }
0x1943   : > { %6488 = vrot.lane.b32.xlu1 %v13285_v41, %s12235_s19 }
0x1947   : > { %11587 = vrot.lane.b32.xlu1 %v11586_v8, %s12235_s19 }
0x19bf   : > { %v6468_v44 = vpop.xlane.xlu1 %6467 }
0x19c0   : > { %v6472_v42 = vsub.f32 %v6385_v32, %v6468_v44 }
0x19c2   : > { %v6474_v45 = vmul.f32 1.442695, %v6472_v42 }
0x19c3   : > { %v6489_v4 = vpop.permute.xlu1 %6488  ;;  %v6306_v48 = vpop.f32.mrb[90].mxu1 }
0x19c4   : > { %12009 = vpow2.f32 %v6474_v45  ;;  %v11591_v50 = vpack.i.bf16 %v6306_v48, %v6230_v30  ;;  %11467 = vmatpush3.msra.mxu0 %v6489_v4  ;;  %v11455_v54 = vpop.f32.mrb[91].mxu1 }
0x19c5   : > { %11476 = vmatprep.subr.bf16.mxu0 %v12229_v0 }
0x19c6   : > { %11592 = vrot.lane.b32.xlu1 %v11591_v50, %s12234_s16 }
0x19c7   : > { %v6462_v13 = vpop.f32.mrb[92].mxu1  ;;  %v11588_v35 = vpop.permute.xlu1 %11587 }
0x19c8   : > { %v6463_v57 = vadd.f32 %v6462_v13, %v12697_v15  ;;  %v11465_v58 = vpop.f32.mrb[93].mxu1  ;;  %v11590_v37 = vunpack.i.h.bf16 %v11588_v35  ;;  %v11589_v38 = vunpack.i.l.bf16 %v11588_v35 }
0x19ca   : > { %v6469_v41 = vsel %vm1099_vm2, %v6463_v57, -inf  ;;  %v6665_v29 = vsel %vm946_vm1, %v13327_v5, %v11590_v37  ;;  %v6688_v5 = vld [vmem:[%s12627_s25 + $0x82] ss:$0 sm:$0xff] }
0x19cb   : > { %6470 = vmax.xlane.f32.xlu0 %v6469_v41  ;;  %v10123_v41 = vld [vmem:[%s12554_s29 + $0x400] sm:$0xff] }
0x19cc   : > { %v10171_v37 = vld [vmem:[%s12554_s29 + $0x580] sm:$0xff] }
0x19ce   : > { %v12010_v60 = vpop.eup %12009 }
0x19cf   : > { %v6478_v56 = vsel %vm1099_vm2, %v12010_v60, 0.0 }
0x19d0   : > { %6479 = vadd.xlane.f32.xlu0 %v6478_v56  ;;  %v10124_v56 = vld [vmem:[%s12554_s29 + $0x408] sm:$0xff] }
0x1a38   : > { %v11593_v46 = vpop.permute.xlu1 %11592 }
0x1a39   : > { %v11595_v62 = vunpack.i.h.bf16 %v11593_v46  ;;  %v11594_v39 = vunpack.i.l.bf16 %v11593_v46 }
0x1a3b   : > { %v6667_v40 = vsel %vm2286_vm3, %v6665_v29, %v11595_v62  ;;  %v10172_v62 = vld [vmem:[%s12554_s29 + $0x588] sm:$0xff] }
0x1a58   : > { %v6471_v61 = vpop.xlane.xlu0 %6470 }
0x1a59   : > { %v6473_v59 = vsub.f32 %v6463_v57, %v6471_v61 }
0x1a5b   : > { %v6476_v55 = vmul.f32 1.442695, %v6473_v59 }
0x1a5d   : > { %12011 = vpow2.f32 %v6476_v55  ;;  %v6480_v3 = vpop.xlane.xlu0 %6479  ;;  %v10132_v55 = vld [vmem:[%s12554_s29 + $0x448] sm:$0xff] }
0x1a5e   : > { %12013 = vrcp.f32 %v6480_v3  ;;  %v10139_v3 = vld [vmem:[%s12554_s29 + $0x480] sm:$0xff] }
0x1a67   : > { %v12012_v1 = vpop.eup %12011 }
0x1a68   : > { %v12014_v8 = vpop.eup %12013  ;;  %v6481_v2 = vsel %vm1099_vm2, %v12012_v1, 0.0 }
0x1a69   : > { %v6485_v15 = vmul.f32 %v12014_v8, %v12010_v60  ;;  %6482 = vadd.xlane.f32.xlu0 %v6481_v2  ;;  %v10131_v60 = vld [vmem:[%s12554_s29 + $0x440] sm:$0xff]  ;;  %v10257_v8 = vcombine.low %v10124_v56, %v10132_v55  ;;  %v10258_v2 = vcombine.high %v10124_v56, %v10132_v55  ;;  %v10228_v55 = vld [vmem:[%s12554_s29 + $0x748] sm:$0xff] }
0x1a6a   : > { %v10255_v61 = vcombine.low %v10123_v41, %v10131_v60  ;;  %v10256_v59 = vcombine.high %v10123_v41, %v10131_v60  ;;  %v10219_v60 = vld [vmem:[%s12554_s29 + $0x700] sm:$0xff] }
0x1a6b   : > { %11469 = vmatmul.mubr.msk.f32.vlgmr.msra.gmra.mrb[54].mxu0 %vm1099_vm2, %v6485_v15  ;;  %v10227_v56 = vld [vmem:[%s12554_s29 + $0x740] sm:$0xff] }
0x1a6c   : > { %11492 = vmatprep.mubr.msk.bf16.mxu0 %vm12230_vm0, %v12229_v0  ;;  %11477 = vmatpush3.bf16.msra.mxu0 %v11809_v12 }
0x1a6d   : > { %11478 = vmatprep.subr.bf16.mxu0 %v12229_v0 }
0x1a7f   : > { %6564 = vrot.lane.b32.xlu0 %v13267_v53, %s12235_s19  ;;  %v11810_v53 = vld [vmem:[%s12550_s20 + $0x48] sm:$0xff]   ;;  %s537_s20 = scalar_lea.vmem %s13833_s3, %s9691_s27 }
0x1a80   : > { %11479 = vmatpush3.bf16.msra.mxu0 %v11810_v53 }
0x1a81   : > { %11480 = vmatprep.subr.bf16.mxu0 %v12229_v0 }
0x1a84   : > { %11481 = vmatpush3.bf16.msra.mxu0 %v11811_v14 }
0x1a85   : > { %11482 = vmatprep.subr.bf16.mxu0 %v12229_v0 }
0x1a88   : > { %11483 = vmatpush3.bf16.msra.mxu0 %v11812_v16 }
0x1a89   : > { %11484 = vmatprep.subr.bf16.mxu0 %v12229_v0 }
0x1a8c   : > { %11485 = vmatpush3.bf16.msra.mxu0 %v11813_v17 }
0x1a8d   : > { %11486 = vmatprep.subr.bf16.mxu0 %v12229_v0 }
0x1a90   : > { %11487 = vmatpush3.bf16.msra.mxu0 %v11814_v19  ;;  %v10155_v19 = vld [vmem:[%s12554_s29 + $0x500] sm:$0xff] }
0x1a91   : > { %11488 = vmatprep.subr.bf16.mxu0 %v12229_v0 }
0x1a94   : > { %11489 = vmatpush3.bf16.msra.mxu0 %v11815_v20  ;;  %v10163_v20 = vld [vmem:[%s12554_s29 + $0x540] sm:$0xff] }
0x1a95   : > { %11490 = vmatprep.subr.bf16.mxu0 %v12229_v0  ;;  %v6664_v0 = vsel %vm946_vm1, %v13325_v63, %v11589_v38  ;;  %v10179_v38 = vld [vmem:[%s12554_s29 + $0x5c0] sm:$0xff] }
0x1a96   : > { %v6666_v43 = vsel %vm2286_vm3, %v6664_v0, %v11594_v39  ;;  %v10304_v39 = vcombine.high %v10171_v37, %v10179_v38  ;;  %v10303_v29 = vcombine.low %v10171_v37, %v10179_v38 }
0x1a98   : > { %11491 = vmatpush3.bf16.msra.mxu0 %v11816_v21  ;;  %v10156_v21 = vld [vmem:[%s12554_s29 + $0x508] sm:$0xff] }
0x1a99   : > { %7711 = vmatprep.subr.bf16.mxu0 %v10258_v2  ;;  %v10235_v2 = vld [vmem:[%s12554_s29 + $0x780] sm:$0xff] }
0x1af6   : > { %v6483_v18 = vpop.xlane.xlu0 %6482 }
0x1af7   : > { %12015 = vrcp.f32 %v6483_v18  ;;  %v10140_v18 = vld [vmem:[%s12554_s29 + $0x488] sm:$0xff] }
0x1afa   : > { %v6565_v9 = vpop.permute.xlu0 %6564 }
0x1afb   : > { %11472 = vmatpush3.msra.mxu1 %v6565_v9  ;;  %v10148_v9 = vld [vmem:[%s12554_s29 + $0x4c8] sm:$0xff] }
0x1afc   : > { %7668 = vmatprep.subr.bf16.mxu1 %v10256_v59  ;;  %v10352_v59 = vcombine.high %v10219_v60, %v10227_v56 }
0x1b01   : > { %v12016_v28 = vpop.eup %12015 }
0x1b02   : > { %v6487_v10 = vmul.f32 %v12016_v28, %v12012_v1  ;;  %v10147_v1 = vld [vmem:[%s12554_s29 + $0x4c0] sm:$0xff] }
0x1b03   : > { %v10272_v15 = vcombine.high %v10139_v3, %v10147_v1  ;;  %v10271_v28 = vcombine.low %v10139_v3, %v10147_v1  ;;  %v10351_v3 = vcombine.low %v10219_v60, %v10227_v56  ;;  %v10173_v60 = vld [vmem:[%s12554_s29 + $0x590] sm:$0xff] }
0x1b04   : > { %11474 = vmatmul.mubr.msk.f32.vlgmr.msra.gmra.mrb[94].mxu1 %vm1099_vm2, %v6487_v10  ;;  %v10181_v56 = vld [vmem:[%s12554_s29 + $0x5d0] sm:$0xff] }
0x1b05   : > { %7700 = vmatprep.mubr.bf16.mxu1 %v12231_v36  ;;  %7669 = vmatpush1.bf16.msra.mxu1 %v10255_v61  ;;  %v10220_v61 = vld [vmem:[%s12554_s29 + $0x708] sm:$0xff] }
0x1b06   : > { %7670 = vmatprep.subr.bf16.mxu1 %v10272_v15  ;;  %v10353_v1 = vcombine.low %v10220_v61, %v10228_v55  ;;  %v10243_v15 = vld [vmem:[%s12554_s29 + $0x7c0] sm:$0xff] }
0x1b09   : > { %7671 = vmatpush1.bf16.msra.mxu1 %v10271_v28  ;;  %v10367_v28 = vcombine.low %v10235_v2, %v10243_v15 }
0x1b3e   : > { %v6560_v27 = vpop.f32.mrb[54].mxu0 }
0x1b3f   : > { %v11470_v11 = vpop.f32.mrb[55].mxu0 }
0x1bd7   : > { %v6636_v52 = vpop.f32.mrb[94].mxu1 }
0x1bd8   : > { %v11596_v33 = vpack.i.bf16 %v6636_v52, %v6560_v27  ;;  %v11475_v34 = vpop.f32.mrb[95].mxu1  ;;  %v10288_v52 = vcombine.high %v10155_v19, %v10163_v20 }
0x1bd9   : > { %v10287_v34 = vcombine.low %v10155_v19, %v10163_v20  ;;  %v10134_v19 = vld [vmem:[%s12554_s29 + $0x458] sm:$0xff] }
0x1bda   : > { %11597 = vrot.lane.b32.xlu1 %v11596_v33, %s12232_s5  ;;  %v10164_v33 = vld [vmem:[%s12554_s29 + $0x548] sm:$0xff]  ;;  %7672 = vmatprep.subr.bf16.mxu1 %v10288_v52 }
0x1bdb   : > { %v10289_v35 = vcombine.low %v10156_v21, %v10164_v33  ;;  %v10290_v46 = vcombine.high %v10156_v21, %v10164_v33  ;;  %7673 = vmatpush1.bf16.msra.mxu1 %v10287_v34 }
0x1bdc   : > { %7674 = vmatprep.subr.bf16.mxu1 %v10304_v39  ;;  %v6780_v39 = vld [vmem:[%s12627_s25 + $0x83] ss:$0 sm:$0xff] }
0x1bdf   : > { %7675 = vmatpush1.bf16.msra.mxu1 %v10303_v29 }
0x1c4c   : > { %v11598_v30 = vpop.permute.xlu1 %11597 }
0x1c4d   : > { %v11600_v31 = vunpack.i.h.bf16 %v11598_v30  ;;  %v11599_v32 = vunpack.i.l.bf16 %v11598_v30  ;;  %v10180_v30 = vld [vmem:[%s12554_s29 + $0x5c8] sm:$0xff] }
0x1c4e   : > { %v10305_v0 = vcombine.low %v10172_v62, %v10180_v30 }
0x1c4f   : > { %v6669_v44 = vsel %vm2289_vm4, %v6667_v40, %v11600_v31  ;;  %v6668_v42 = vsel %vm2289_vm4, %v6666_v43, %v11599_v32  ;;  %v10306_v31 = vcombine.high %v10172_v62, %v10180_v30  ;;  %v10187_v32 = vld [vmem:[%s12554_s29 + $0x600] sm:$0xff]  ;;  %v10188_v43 = vld [vmem:[%s12554_s29 + $0x608] sm:$0xff] }
0x1c50   : > { %v6687_v45 = vpack.c.bf16 %v6669_v44, %v6668_v42  ;;  %v10195_v40 = vld [vmem:[%s12554_s29 + $0x640] sm:$0xff]  ;;  %v10196_v42 = vld [vmem:[%s12554_s29 + $0x648] sm:$0xff] }
0x1c51   : > { %v10320_v44 = vcombine.high %v10187_v32, %v10195_v40 }
0x1c52   : > { %11493 = vmatmul.mubr.bf16.vlgmr.msra.gmra.mrb[56].mxu0 %v6687_v45  ;;  %v10319_v45 = vcombine.low %v10187_v32, %v10195_v40  ;;  %v10141_v40 = vld [vmem:[%s12554_s29 + $0x490] sm:$0xff] }
0x1c53   : > { %7743 = vmatprep.mubr.bf16.mxu0 %v12231_v36  ;;  %7712 = vmatpush1.bf16.msra.mxu0 %v10257_v8  ;;  %v10354_v8 = vcombine.high %v10220_v61, %v10228_v55  ;;  %v10174_v61 = vld [vmem:[%s12554_s29 + $0x598] sm:$0xff] }
0x1c54   : > { %7676 = vmatprep.subr.bf16.mxu1 %v10320_v44  ;;  %v10142_v44 = vld [vmem:[%s12554_s29 + $0x498] sm:$0xff] }
0x1c55   : > { %7677 = vmatpush1.bf16.msra.mxu1 %v10319_v45 }
0x1d25   : > { %v6771_v63 = vpop.f32.mrb[56].mxu0 }
0x1d26   : > { %v6772_v4 = vadd.f32 %v6771_v63, %v6688_v5  ;;  %v11494_v48 = vpop.f32.mrb[57].mxu0  ;;  %v10322_v63 = vcombine.high %v10188_v43, %v10196_v42 }
0x1d27   : > { %v6774_v50 = vpop.f32.mrb[58].mxu0  ;;  %v10211_v48 = vld [vmem:[%s12554_s29 + $0x6c0] sm:$0xff] }
0x1d28   : > { %v6775_v54 = vadd.f32 %v6774_v50, %v6688_v5  ;;  %v11495_v13 = vpop.f32.mrb[59].mxu0  ;;  %v6778_v57 = vadd.f32 %v6772_v4, %v13251_v6  ;;  %v10274_v6 = vcombine.high %v10140_v18, %v10148_v9  ;;  %v10321_v5 = vcombine.low %v10188_v43, %v10196_v42  ;;  %v10203_v4 = vld [vmem:[%s12554_s29 + $0x680] sm:$0xff]  ;;  %v10204_v50 = vld [vmem:[%s12554_s29 + $0x688] sm:$0xff]  ;;  %v10149_v43 = vld [vmem:[%s12554_s29 + $0x4d0] sm:$0xff] }
0x1d29   : > { %v10212_v13 = vld [vmem:[%s12554_s29 + $0x6c8] sm:$0xff]  ;;  %v10150_v42 = vld [vmem:[%s12554_s29 + $0x4d8] sm:$0xff] }
0x1d2a   : > { %6782 = vadd.xlane.f32.xlu0 %v6778_v57  ;;  %v6779_v58 = vadd.f32 %v6775_v54, %v13253_v7  ;;  %v10273_v7 = vcombine.low %v10140_v18, %v10148_v9  ;;  %7713 = vmatprep.subr.bf16.mxu0 %v10274_v6  ;;  %v10336_v54 = vcombine.high %v10203_v4, %v10211_v48  ;;  %v10236_v18 = vld [vmem:[%s12554_s29 + $0x788] sm:$0xff] }
0x1d2b   : > { %v10338_v41 = vcombine.high %v10204_v50, %v10212_v13  ;;  %v10368_v9 = vcombine.high %v10235_v2, %v10243_v15  ;;  %v10244_v6 = vld [vmem:[%s12554_s29 + $0x7c8] sm:$0xff]  ;;  %v10189_v2 = vld [vmem:[%s12554_s29 + $0x610] sm:$0xff] }
0x1d2c   : > { %6784 = vadd.xlane.f32.xlu1 %v6779_v58  ;;  %7714 = vmatpush1.bf16.msra.mxu0 %v10273_v7  ;;  %v10369_v7 = vcombine.low %v10236_v18, %v10244_v6  ;;  %v10197_v15 = vld [vmem:[%s12554_s29 + $0x650] sm:$0xff] }
0x1d2d   : > { %7715 = vmatprep.subr.bf16.mxu0 %v10290_v46  ;;  %7678 = vmatprep.subr.bf16.mxu1 %v10336_v54  ;;  %v10166_v54 = vld [vmem:[%s12554_s29 + $0x558] sm:$0xff] }
0x1d30   : > { %7716 = vmatpush1.bf16.msra.mxu0 %v10289_v35 }
0x1d31   : > { %7717 = vmatprep.subr.bf16.mxu0 %v10306_v31  ;;  %v6781_v31 = vld [vmem:[%s12627_s25 + $0x84] ss:$0 sm:$0xff] }
0x1d34   : > { %7718 = vmatpush1.bf16.msra.mxu0 %v10305_v0 }
0x1d35   : > { %7719 = vmatprep.subr.bf16.mxu0 %v10322_v63  ;;  %v10276_v63 = vcombine.high %v10141_v40, %v10149_v43 }
0x1d38   : > { %7720 = vmatpush1.bf16.msra.mxu0 %v10321_v5 }
0x1d39   : > { %7721 = vmatprep.subr.bf16.mxu0 %v10338_v41 }
0x1db7   : > { %v6783_v10 = vpop.xlane.xlu0 %6782 }
0x1db8   : > { %v6786_v27 = vmul.f32 0.0078125, %v6783_v10  ;;  %v10370_v10 = vcombine.high %v10236_v18, %v10244_v6  ;;  %v10190_v18 = vld [vmem:[%s12554_s29 + $0x618] sm:$0xff]  ;;  %v10307_v6 = vcombine.low %v10173_v60, %v10181_v56 }
0x1db9   : > { %v6785_v11 = vpop.xlane.xlu1 %6784 }
0x1dba   : > { %v13455_v12 = vsub.f32 %v6778_v57, %v6786_v27  ;;  %v6787_v53 = vmul.f32 0.0078125, %v6785_v11  ;;  %v10335_v57 = vcombine.low %v10203_v4, %v10211_v48  ;;  %v10125_v27 = vld [vmem:[%s12554_s29 + $0x410] sm:$0xff]  ;;  %v10278_v4 = vcombine.high %v10142_v44, %v10150_v42 }
0x1dbb   : > { %v10133_v11 = vld [vmem:[%s12554_s29 + $0x450] sm:$0xff] }
0x1dbc   : > { %v13457_v14 = vsub.f32 %v6779_v58, %v6787_v53  ;;  %v6790_v16 = vmul.f32 %v13455_v12, %v13455_v12  ;;  %v10337_v58 = vcombine.low %v10204_v50, %v10212_v13  ;;  %7679 = vmatpush1.bf16.msra.mxu1 %v10335_v57  ;;  %v10126_v53 = vld [vmem:[%s12554_s29 + $0x418] sm:$0xff]  ;;  %v10157_v48 = vld [vmem:[%s12554_s29 + $0x510] sm:$0xff]  ;;  %v10275_v13 = vcombine.low %v10141_v40, %v10149_v43 }
0x1dbd   : > { %7680 = vmatprep.subr.bf16.mxu1 %v10352_v59  ;;  %v10261_v20 = vcombine.low %v10126_v53, %v10134_v19  ;;  %v10262_v21 = vcombine.high %v10126_v53, %v10134_v19  ;;  %v10158_v50 = vld [vmem:[%s12554_s29 + $0x518] sm:$0xff]  ;;  %v10277_v57 = vcombine.low %v10142_v44, %v10150_v42  ;;  %v10127_v44 = vld [vmem:[%s12554_s29 + $0x420] sm:$0xff] }
0x1dbe   : > { %6792 = vadd.xlane.f32.xlu0 %v6790_v16  ;;  %v6791_v17 = vmul.f32 %v13457_v14, %v13457_v14  ;;  %7722 = vmatpush1.bf16.msra.mxu0 %v10337_v58  ;;  %v10259_v16 = vcombine.low %v10125_v27, %v10133_v11  ;;  %v10294_v41 = vcombine.high %v10158_v50, %v10166_v54  ;;  %v10182_v59 = vld [vmem:[%s12554_s29 + $0x5d8] sm:$0xff]  ;;  %v10135_v42 = vld [vmem:[%s12554_s29 + $0x460] sm:$0xff] }
0x1dbf   : > { %7723 = vmatprep.subr.bf16.mxu0 %v10354_v8  ;;  %v10310_v8 = vcombine.high %v10174_v61, %v10182_v59  ;;  %v10206_v53 = vld [vmem:[%s12554_s29 + $0x698] sm:$0xff] }
0x1dc0   : > { %7681 = vmatpush1.bf16.msra.mxu1 %v10351_v3  ;;  %v10293_v3 = vcombine.low %v10158_v50, %v10166_v54  ;;  %v10264_v50 = vcombine.high %v10127_v44, %v10135_v42 }
0x1dc1   : > { %7682 = vmatprep.subr.bf16.mxu1 %v10368_v9  ;;  %v10198_v9 = vld [vmem:[%s12554_s29 + $0x658] sm:$0xff] }
0x1dc2   : > { %6794 = vadd.xlane.f32.xlu0 %v6791_v17  ;;  %7724 = vmatpush1.bf16.msra.mxu0 %v10353_v1  ;;  %v10260_v17 = vcombine.high %v10125_v27, %v10133_v11  ;;  %v10308_v1 = vcombine.high %v10173_v60, %v10181_v56  ;;  %v10205_v27 = vld [vmem:[%s12554_s29 + $0x690] sm:$0xff]  ;;  %v10325_v19 = vcombine.low %v10190_v18, %v10198_v9 }
0x1dc3   : > { %7725 = vmatprep.subr.bf16.mxu0 %v10370_v10  ;;  %v10326_v10 = vcombine.high %v10190_v18, %v10198_v9  ;;  %v10213_v11 = vld [vmem:[%s12554_s29 + $0x6d0] sm:$0xff]  ;;  %v10263_v60 = vcombine.low %v10127_v44, %v10135_v42 }
0x1dc4   : > { %7683 = vmatpush1.bf16.msra.mxu1 %v10367_v28  ;;  %v10309_v28 = vcombine.low %v10174_v61, %v10182_v59 }
0x1dc5   : > { %7754 = vmatprep.subr.bf16.mxu1 %v10260_v17  ;;  %v10323_v17 = vcombine.low %v10189_v2, %v10197_v15 }
0x1dc6   : > { %7726 = vmatpush1.bf16.msra.mxu0 %v10369_v7  ;;  %v10324_v7 = vcombine.high %v10189_v2, %v10197_v15 }
0x1dc7   : > { %7797 = vmatprep.subr.bf16.mxu0 %v10262_v21 }
0x1e4b   : > { %v6793_v52 = vpop.xlane.xlu0 %6792 }
0x1e4c   : > { %v6796_v33 = vmul.f32 0.0078125, %v6793_v52  ;;  %v10221_v52 = vld [vmem:[%s12554_s29 + $0x710] sm:$0xff] }
0x1e4e   : > { %v6798_v34 = vadd.f32 1e-05, %v6796_v33  ;;  %v10229_v33 = vld [vmem:[%s12554_s29 + $0x750] sm:$0xff] }
0x1e4f   : > { %v6795_v35 = vpop.xlane.xlu0 %6794 }
0x1e50   : > { %12017 = vrsqrt.f32 %v6798_v34  ;;  %v6797_v46 = vmul.f32 0.0078125, %v6795_v35  ;;  %v10222_v34 = vld [vmem:[%s12554_s29 + $0x718] sm:$0xff] }
0x1e51   : > { %v10230_v35 = vld [vmem:[%s12554_s29 + $0x758] sm:$0xff] }
0x1e52   : > { %v6799_v37 = vadd.f32 1e-05, %v6797_v46  ;;  %v10339_v46 = vcombine.low %v10205_v27, %v10213_v11 }
0x1e54   : > { %12019 = vrsqrt.f32 %v6799_v37 }
0x1e5a   : > { %v12018_v38 = vpop.eup %12017 }
0x1e5b   : > { %v6802_v62 = vmul.f32 %v12018_v38, %v13455_v12  ;;  %v10356_v38 = vcombine.high %v10221_v52, %v10229_v33 }
0x1e5d   : > { %v6804_v29 = vmul.f32 %v6802_v62, %v6780_v39  ;;  %v10358_v62 = vcombine.high %v10222_v34, %v10230_v35 }
0x1e5e   : > { %v12020_v30 = vpop.eup %12019 }
0x1e5f   : > { %v6803_v0 = vmul.f32 %v12020_v30, %v13457_v14  ;;  %v13499_v45 = vadd.f32 %v6804_v29, %v6781_v31  ;;  %v10165_v14 = vld [vmem:[%s12554_s29 + $0x550] sm:$0xff]  ;;  %v10238_v29 = vld [vmem:[%s12554_s29 + $0x798] sm:$0xff] }
0x1e60   : > { %v10292_v58 = vcombine.high %v10157_v48, %v10165_v14  ;;  %v10291_v55 = vcombine.low %v10157_v48, %v10165_v14  ;;  %v10245_v30 = vld [vmem:[%s12554_s29 + $0x7d0] sm:$0xff] }
0x1e61   : > { %v6805_v32 = vmul.f32 %v6803_v0, %v6780_v39  ;;  %v10237_v39 = vld [vmem:[%s12554_s29 + $0x790] sm:$0xff]  ;;  %v10246_v0 = vld [vmem:[%s12554_s29 + $0x7d8] sm:$0xff] }
0x1e62   : > { %v10372_v40 = vcombine.high %v10237_v39, %v10245_v30  ;;  %v10374_v43 = vcombine.high %v10238_v29, %v10246_v0  ;;  %v10371_v48 = vcombine.low %v10237_v39, %v10245_v30  ;;  %v10373_v14 = vcombine.low %v10238_v29, %v10246_v0 }
0x1e63   : > { %v13501_v5 = vadd.f32 %v6805_v32, %v6781_v31  ;;  %v10355_v31 = vcombine.low %v10221_v52, %v10229_v33  ;;  %v10357_v32 = vcombine.low %v10222_v34, %v10230_v35 }
0x1e65   : > { %v13505_v12 = vpack.c.bf16 %v13501_v5, %v13499_v45 }
0x1e67   : > { %7701 = vmatmul.mubr.bf16.vlgmr.msra.gmra.mrb[96].mxu1 %v13505_v12  ;;  %7744 = vmatmul.mubr.bf16.vlgmr.msra.gmra.mrb[60].mxu0 %v13505_v12 }
0x1e68   : > { %7755 = vmatpush1.bf16.msra.mxu1 %v10259_v16  ;;  %7798 = vmatpush1.bf16.msra.mxu0 %v10261_v20  ;;  %v10214_v16 = vld [vmem:[%s12554_s29 + $0x6d8] sm:$0xff]  ;;  %v10340_v20 = vcombine.high %v10205_v27, %v10213_v11 }
0x1e69   : > { %7756 = vmatprep.subr.bf16.mxu1 %v10276_v63  ;;  %7799 = vmatprep.subr.bf16.mxu0 %v10278_v4  ;;  %v10342_v21 = vcombine.high %v10206_v53, %v10214_v16  ;;  %v10341_v37 = vcombine.low %v10206_v53, %v10214_v16  ;;  %v10128_v63 = vld [vmem:[%s12554_s29 + $0x428] sm:$0xff] }
0x1e6a   : > { %7786 = vmatprep.mubr.bf16.mxu1 %v12231_v36  ;;  %7829 = vmatprep.mubr.bf16.mxu0 %v12231_v36  ;;  %v10136_v4 = vld [vmem:[%s12554_s29 + $0x468] sm:$0xff] }
0x1e6b   : > { %v10266_v54 = vcombine.high %v10128_v63, %v10136_v4  ;;  %v10265_v56 = vcombine.low %v10128_v63, %v10136_v4 }
0x1e6c   : > { %7757 = vmatpush1.bf16.msra.mxu1 %v10275_v13  ;;  %7800 = vmatpush1.bf16.msra.mxu0 %v10277_v57  ;;  %v10143_v13 = vld [vmem:[%s12554_s29 + $0x4a0] sm:$0xff] }
0x1e6d   : > { %7758 = vmatprep.subr.bf16.mxu1 %v10292_v58  ;;  %7801 = vmatprep.subr.bf16.mxu0 %v10294_v41  ;;  %v10151_v57 = vld [vmem:[%s12554_s29 + $0x4e0] sm:$0xff]  ;;  %v10144_v58 = vld [vmem:[%s12554_s29 + $0x4a8] sm:$0xff] }
0x1e6e   : > { %v10152_v41 = vld [vmem:[%s12554_s29 + $0x4e8] sm:$0xff]  ;;  %v10280_v61 = vcombine.high %v10143_v13, %v10151_v57  ;;  %v10279_v2 = vcombine.low %v10143_v13, %v10151_v57 }
0x1e6f   : > { %v10282_v59 = vcombine.high %v10144_v58, %v10152_v41  ;;  %v10281_v15 = vcombine.low %v10144_v58, %v10152_v41 }
0x1e70   : > { %7759 = vmatpush1.bf16.msra.mxu1 %v10291_v55  ;;  %7802 = vmatpush1.bf16.msra.mxu0 %v10293_v3  ;;  %v10159_v55 = vld [vmem:[%s12554_s29 + $0x520] sm:$0xff] }
0x1e71   : > { %7760 = vmatprep.subr.bf16.mxu1 %v10308_v1  ;;  %7803 = vmatprep.subr.bf16.mxu0 %v10310_v8  ;;  %v10167_v3 = vld [vmem:[%s12554_s29 + $0x560] sm:$0xff]  ;;  %v10160_v1 = vld [vmem:[%s12554_s29 + $0x528] sm:$0xff] }
0x1e72   : > { %v10168_v8 = vld [vmem:[%s12554_s29 + $0x568] sm:$0xff]  ;;  %v10296_v18 = vcombine.high %v10159_v55, %v10167_v3  ;;  %v10295_v27 = vcombine.low %v10159_v55, %v10167_v3 }
0x1e73   : > { %v10298_v9 = vcombine.high %v10160_v1, %v10168_v8  ;;  %v10297_v11 = vcombine.low %v10160_v1, %v10168_v8 }
0x1e74   : > { %7761 = vmatpush1.bf16.msra.mxu1 %v10307_v6  ;;  %7804 = vmatpush1.bf16.msra.mxu0 %v10309_v28  ;;  %v10175_v6 = vld [vmem:[%s12554_s29 + $0x5a0] sm:$0xff] }
0x1e75   : > { %7762 = vmatprep.subr.bf16.mxu1 %v10324_v7  ;;  %7805 = vmatprep.subr.bf16.mxu0 %v10326_v10  ;;  %v10183_v28 = vld [vmem:[%s12554_s29 + $0x5e0] sm:$0xff]  ;;  %v10176_v7 = vld [vmem:[%s12554_s29 + $0x5a8] sm:$0xff] }
0x1e76   : > { %v10184_v10 = vld [vmem:[%s12554_s29 + $0x5e8] sm:$0xff]  ;;  %v10312_v53 = vcombine.high %v10175_v6, %v10183_v28  ;;  %v10311_v52 = vcombine.low %v10175_v6, %v10183_v28 }
0x1e77   : > { %v10314_v16 = vcombine.high %v10176_v7, %v10184_v10  ;;  %v10313_v33 = vcombine.low %v10176_v7, %v10184_v10 }
0x1e78   : > { %7763 = vmatpush1.bf16.msra.mxu1 %v10323_v17  ;;  %7806 = vmatpush1.bf16.msra.mxu0 %v10325_v19  ;;  %v10191_v17 = vld [vmem:[%s12554_s29 + $0x620] sm:$0xff] }
0x1e79   : > { %7764 = vmatprep.subr.bf16.mxu1 %v10340_v20  ;;  %7807 = vmatprep.subr.bf16.mxu0 %v10342_v21  ;;  %v10199_v19 = vld [vmem:[%s12554_s29 + $0x660] sm:$0xff]  ;;  %v10192_v20 = vld [vmem:[%s12554_s29 + $0x628] sm:$0xff] }
0x1e7a   : > { %v10200_v21 = vld [vmem:[%s12554_s29 + $0x668] sm:$0xff]  ;;  %v10328_v34 = vcombine.high %v10191_v17, %v10199_v19  ;;  %v10327_v39 = vcombine.low %v10191_v17, %v10199_v19 }
0x1e7b   : > { %v10330_v35 = vcombine.high %v10192_v20, %v10200_v21  ;;  %v10329_v30 = vcombine.low %v10192_v20, %v10200_v21 }
0x1e7c   : > { %7765 = vmatpush1.bf16.msra.mxu1 %v10339_v46  ;;  %7808 = vmatpush1.bf16.msra.mxu0 %v10341_v37  ;;  %v10207_v46 = vld [vmem:[%s12554_s29 + $0x6a0] sm:$0xff] }
0x1e7d   : > { %7766 = vmatprep.subr.bf16.mxu1 %v10356_v38  ;;  %7809 = vmatprep.subr.bf16.mxu0 %v10358_v62  ;;  %v10215_v37 = vld [vmem:[%s12554_s29 + $0x6e0] sm:$0xff]  ;;  %v10208_v38 = vld [vmem:[%s12554_s29 + $0x6a8] sm:$0xff] }
0x1e7e   : > { %v10216_v62 = vld [vmem:[%s12554_s29 + $0x6e8] sm:$0xff]  ;;  %v10344_v29 = vcombine.high %v10207_v46, %v10215_v37  ;;  %v10343_v44 = vcombine.low %v10207_v46, %v10215_v37 }
0x1e7f   : > { %v10346_v0 = vcombine.high %v10208_v38, %v10216_v62  ;;  %v10345_v42 = vcombine.low %v10208_v38, %v10216_v62 }
0x1e80   : > { %7767 = vmatpush1.bf16.msra.mxu1 %v10355_v31  ;;  %7810 = vmatpush1.bf16.msra.mxu0 %v10357_v32  ;;  %v10223_v31 = vld [vmem:[%s12554_s29 + $0x720] sm:$0xff] }
0x1e81   : > { %7768 = vmatprep.subr.bf16.mxu1 %v10372_v40  ;;  %7811 = vmatprep.subr.bf16.mxu0 %v10374_v43  ;;  %v10231_v32 = vld [vmem:[%s12554_s29 + $0x760] sm:$0xff]  ;;  %v10224_v40 = vld [vmem:[%s12554_s29 + $0x728] sm:$0xff] }
0x1e82   : > { %v10232_v43 = vld [vmem:[%s12554_s29 + $0x768] sm:$0xff]  ;;  %v10360_v63 = vcombine.high %v10223_v31, %v10231_v32  ;;  %v10359_v13 = vcombine.low %v10223_v31, %v10231_v32 }
0x1e83   : > { %v10362_v4 = vcombine.high %v10224_v40, %v10232_v43  ;;  %v10361_v57 = vcombine.low %v10224_v40, %v10232_v43  ;;  %v10209_v43 = vld [vmem:[%s12554_s29 + $0x6b0] sm:$0xff] }
0x1e84   : > { %7769 = vmatpush1.bf16.msra.mxu1 %v10371_v48  ;;  %7812 = vmatpush1.bf16.msra.mxu0 %v10373_v14  ;;  %v10239_v48 = vld [vmem:[%s12554_s29 + $0x7a0] sm:$0xff] }
0x1e85   : > { %7840 = vmatprep.subr.bf16.mxu1 %v10264_v50  ;;  %7883 = vmatprep.subr.bf16.mxu0 %v10266_v54  ;;  %v10247_v14 = vld [vmem:[%s12554_s29 + $0x7e0] sm:$0xff]  ;;  %v10240_v50 = vld [vmem:[%s12554_s29 + $0x7a8] sm:$0xff] }
0x1e86   : > { %v10248_v54 = vld [vmem:[%s12554_s29 + $0x7e8] sm:$0xff]  ;;  %v10376_v58 = vcombine.high %v10239_v48, %v10247_v14  ;;  %v10375_v55 = vcombine.low %v10239_v48, %v10247_v14 }
0x1e87   : > { %7787 = vmatmul.mubr.bf16.vlgmr.msra.gmra.mrb[100].mxu1 %v13505_v12  ;;  %7830 = vmatmul.mubr.bf16.vlgmr.msra.gmra.mrb[64].mxu0 %v13505_v12  ;;  %v10378_v41 = vcombine.high %v10240_v50, %v10248_v54  ;;  %v10377_v3 = vcombine.low %v10240_v50, %v10248_v54  ;;  %v10225_v54 = vld [vmem:[%s12554_s29 + $0x730] sm:$0xff] }
0x1e88   : > { %7841 = vmatpush1.bf16.msra.mxu1 %v10263_v60  ;;  %7884 = vmatpush1.bf16.msra.mxu0 %v10265_v56  ;;  %v10129_v60 = vld [vmem:[%s12554_s29 + $0x430] sm:$0xff] }
0x1e89   : > { %7842 = vmatprep.subr.bf16.mxu1 %v10280_v61  ;;  %7885 = vmatprep.subr.bf16.mxu0 %v10282_v59  ;;  %v10137_v56 = vld [vmem:[%s12554_s29 + $0x470] sm:$0xff]  ;;  %v10130_v61 = vld [vmem:[%s12554_s29 + $0x438] sm:$0xff] }
0x1e8a   : > { %7872 = vmatprep.mubr.bf16.mxu1 %v12231_v36  ;;  %7915 = vmatprep.mubr.bf16.mxu0 %v12231_v36  ;;  %v10138_v59 = vld [vmem:[%s12554_s29 + $0x478] sm:$0xff]  ;;  %v10268_v1 = vcombine.high %v10129_v60, %v10137_v56  ;;  %v10267_v6 = vcombine.low %v10129_v60, %v10137_v56 }
0x1e8b   : > { %v10270_v8 = vcombine.high %v10130_v61, %v10138_v59  ;;  %v10269_v28 = vcombine.low %v10130_v61, %v10138_v59  ;;  %v10241_v59 = vld [vmem:[%s12554_s29 + $0x7b0] sm:$0xff] }
0x1e8c   : > { %7843 = vmatpush1.bf16.msra.mxu1 %v10279_v2  ;;  %7886 = vmatpush1.bf16.msra.mxu0 %v10281_v15  ;;  %v10145_v2 = vld [vmem:[%s12554_s29 + $0x4b0] sm:$0xff] }
0x1e8d   : > { %7844 = vmatprep.subr.bf16.mxu1 %v10296_v18  ;;  %7887 = vmatprep.subr.bf16.mxu0 %v10298_v9  ;;  %v10153_v15 = vld [vmem:[%s12554_s29 + $0x4f0] sm:$0xff]  ;;  %v10146_v18 = vld [vmem:[%s12554_s29 + $0x4b8] sm:$0xff] }
0x1e8e   : > { %v10154_v9 = vld [vmem:[%s12554_s29 + $0x4f8] sm:$0xff]  ;;  %v10284_v7 = vcombine.high %v10145_v2, %v10153_v15  ;;  %v10283_v17 = vcombine.low %v10145_v2, %v10153_v15 }
0x1e8f   : > { %v10286_v10 = vcombine.high %v10146_v18, %v10154_v9  ;;  %v10285_v19 = vcombine.low %v10146_v18, %v10154_v9 }
0x1e90   : > { %7845 = vmatpush1.bf16.msra.mxu1 %v10295_v27  ;;  %7888 = vmatpush1.bf16.msra.mxu0 %v10297_v11  ;;  %v10161_v27 = vld [vmem:[%s12554_s29 + $0x530] sm:$0xff] }
0x1e91   : > { %7846 = vmatprep.subr.bf16.mxu1 %v10312_v53  ;;  %7889 = vmatprep.subr.bf16.mxu0 %v10314_v16  ;;  %v10169_v11 = vld [vmem:[%s12554_s29 + $0x570] sm:$0xff]  ;;  %v10162_v53 = vld [vmem:[%s12554_s29 + $0x538] sm:$0xff] }
0x1e92   : > { %v10170_v16 = vld [vmem:[%s12554_s29 + $0x578] sm:$0xff]  ;;  %v10300_v20 = vcombine.high %v10161_v27, %v10169_v11  ;;  %v10299_v46 = vcombine.low %v10161_v27, %v10169_v11  ;;  %v11820_v27 = vld [vmem:[%s12906_s26 + $0x480] sm:$0xff]   ;;  %v11821_v11 = vld [vmem:[%s12906_s26 + $0x448] sm:$0xff]  }
0x1e93   : > { %v10302_v21 = vcombine.high %v10162_v53, %v10170_v16  ;;  %v10301_v37 = vcombine.low %v10162_v53, %v10170_v16  ;;  %v11822_v53 = vld [vmem:[%s12906_s26 + $0x4c8] sm:$0xff]  }
0x1e94   : > { %7847 = vmatpush1.bf16.msra.mxu1 %v10311_v52  ;;  %7890 = vmatpush1.bf16.msra.mxu0 %v10313_v33  ;;  %v10177_v52 = vld [vmem:[%s12554_s29 + $0x5b0] sm:$0xff]  ;;  %v11823_v16 = vld [vmem:[%s12906_s26 + $0x408] sm:$0xff]  }
0x1e95   : > { %7848 = vmatprep.subr.bf16.mxu1 %v10328_v34  ;;  %7891 = vmatprep.subr.bf16.mxu0 %v10330_v35  ;;  %v10185_v33 = vld [vmem:[%s12554_s29 + $0x5f0] sm:$0xff]  ;;  %v10178_v34 = vld [vmem:[%s12554_s29 + $0x5b8] sm:$0xff] }
0x1e96   : > { %v10186_v35 = vld [vmem:[%s12554_s29 + $0x5f8] sm:$0xff]  ;;  %v10316_v38 = vcombine.high %v10177_v52, %v10185_v33  ;;  %v10315_v31 = vcombine.low %v10177_v52, %v10185_v33  ;;  %v11828_v52 = vld [vmem:[%s12906_s26 + $0x490] sm:$0xff]  }
0x1e97   : > { %v10318_v62 = vcombine.high %v10178_v34, %v10186_v35  ;;  %v11830_v33 = vld [vmem:[%s12906_s26 + $0x4d8] sm:$0xff]  }
0x1e98   : > { %7849 = vmatpush1.bf16.msra.mxu1 %v10327_v39  ;;  %7892 = vmatpush1.bf16.msra.mxu0 %v10329_v30  ;;  %v10193_v39 = vld [vmem:[%s12554_s29 + $0x630] sm:$0xff] }
0x1e99   : > { %7850 = vmatprep.subr.bf16.mxu1 %v10344_v29  ;;  %7893 = vmatprep.subr.bf16.mxu0 %v10346_v0  ;;  %v10201_v30 = vld [vmem:[%s12554_s29 + $0x670] sm:$0xff]  ;;  %v10194_v29 = vld [vmem:[%s12554_s29 + $0x638] sm:$0xff] }
0x1e9a   : > { %v10202_v0 = vld [vmem:[%s12554_s29 + $0x678] sm:$0xff]  ;;  %v10332_v32 = vcombine.high %v10193_v39, %v10201_v30 }
0x1e9b   : > { %v10334_v40 = vcombine.high %v10194_v29, %v10202_v0  ;;  %v10333_v48 = vcombine.low %v10194_v29, %v10202_v0  ;;  %v11839_v29 = vld [vmem:[%s12906_s26 + $0x428] sm:$0xff]  }
0x1e9c   : > { %7851 = vmatpush1.bf16.msra.mxu1 %v10343_v44  ;;  %7894 = vmatpush1.bf16.msra.mxu0 %v10345_v42  ;;  %v10217_v44 = vld [vmem:[%s12554_s29 + $0x6f0] sm:$0xff]  ;;  %v10210_v42 = vld [vmem:[%s12554_s29 + $0x6b8] sm:$0xff]  ;;  %v11840_v0 = vld [vmem:[%s12906_s26 + $0x4a8] sm:$0xff]  }
0x1e9d   : > { %7852 = vmatprep.subr.bf16.mxu1 %v10360_v63  ;;  %7895 = vmatprep.subr.bf16.mxu0 %v10362_v4  ;;  %v10218_v63 = vld [vmem:[%s12554_s29 + $0x6f8] sm:$0xff]  ;;  %v10331_v4 = vcombine.low %v10193_v39, %v10201_v30  ;;  %v10348_v14 = vcombine.high %v10209_v43, %v10217_v44  ;;  %v11837_v39 = vld [vmem:[%s12906_s26 + $0x468] sm:$0xff]  }
0x1e9e   : > { %v10350_v50 = vcombine.high %v10210_v42, %v10218_v63  ;;  %v10349_v60 = vcombine.low %v10210_v42, %v10218_v63  ;;  %v11838_v30 = vld [vmem:[%s12906_s26 + $0x4e8] sm:$0xff]   ;;  %v11847_v42 = vld [vmem:[%s12906_s26 + $0x438] sm:$0xff]  }
0x1e9f   : > { %v11848_v63 = vld [vmem:[%s12906_s26 + $0x4b8] sm:$0xff]  }
0x1ea0   : > { %7853 = vmatpush1.bf16.msra.mxu1 %v10359_v13  ;;  %7896 = vmatpush1.bf16.msra.mxu0 %v10361_v57  ;;  %v10233_v13 = vld [vmem:[%s12554_s29 + $0x770] sm:$0xff]  ;;  %v10226_v57 = vld [vmem:[%s12554_s29 + $0x738] sm:$0xff] }
0x1ea1   : > { %7854 = vmatprep.subr.bf16.mxu1 %v10376_v58  ;;  %7897 = vmatprep.subr.bf16.mxu0 %v10378_v41  ;;  %v10234_v58 = vld [vmem:[%s12554_s29 + $0x778] sm:$0xff]  ;;  %v10347_v41 = vcombine.low %v10209_v43, %v10217_v44  ;;  %v10364_v56 = vcombine.high %v10225_v54, %v10233_v13 }
0x1ea2   : > { %v10366_v61 = vcombine.high %v10226_v57, %v10234_v58  ;;  %v10365_v2 = vcombine.low %v10226_v57, %v10234_v58  ;;  %v11845_v43 = vld [vmem:[%s12906_s26 + $0x478] sm:$0xff]  }
0x1ea3   : > { %v11846_v44 = vld [vmem:[%s12906_s26 + $0x4f8] sm:$0xff]  }
0x1ea4   : > { %7855 = vmatpush1.bf16.msra.mxu1 %v10375_v55  ;;  %7898 = vmatpush1.bf16.msra.mxu0 %v10377_v3  ;;  %v10249_v55 = vld [vmem:[%s12554_s29 + $0x7f0] sm:$0xff]  ;;  %v10242_v3 = vld [vmem:[%s12554_s29 + $0x7b8] sm:$0xff] }
0x1ea5   : > { %7926 = vmatprep.subr.bf16.mxu1 %v10268_v1  ;;  %7969 = vmatprep.subr.bf16.mxu0 %v10270_v8  ;;  %v10250_v1 = vld [vmem:[%s12554_s29 + $0x7f8] sm:$0xff]  ;;  %v10363_v8 = vcombine.low %v10225_v54, %v10233_v13  ;;  %v10380_v15 = vcombine.high %v10241_v59, %v10249_v55  ;;  %v10379_v9 = vcombine.low %v10241_v59, %v10249_v55 }
0x1ea6   : > { %v10382_v18 = vcombine.high %v10242_v3, %v10250_v1 }
0x1ea7   : > { %7873 = vmatmul.mubr.bf16.vlgmr.msra.gmra.mrb[104].mxu1 %v13505_v12  ;;  %7916 = vmatmul.mubr.bf16.vlgmr.msra.gmra.mrb[68].mxu0 %v13505_v12 }
0x1ea8   : > { %7927 = vmatpush1.bf16.msra.mxu1 %v10267_v6  ;;  %7970 = vmatpush1.bf16.msra.mxu0 %v10269_v28  ;;  %v10381_v6 = vcombine.low %v10242_v3, %v10250_v1  ;;  %v11817_v28 = vld [vmem:[%s12906_s26 + $0x440] sm:$0xff]  }
0x1ea9   : > { %7928 = vmatprep.subr.bf16.mxu1 %v10284_v7  ;;  %7971 = vmatprep.subr.bf16.mxu0 %v10286_v10  ;;  %v11818_v7 = vld [vmem:[%s12906_s26 + $0x4c0] sm:$0xff]  }
0x1eaa   : > { %7958 = vmatprep.mubr.bf16.mxu1 %v12231_v36  ;;  %8001 = vmatprep.mubr.bf16.mxu0 %v12231_v36  ;;  %v10317_v36 = vcombine.low %v10178_v34, %v10186_v35  ;;  %v11819_v10 = vld [vmem:[%s12906_s26 + $0x400] sm:$0xff]   ;;  %v11831_v34 = vld [vmem:[%s12906_s26 + $0x418] sm:$0xff]  }
0x1eab   : > { %v11832_v35 = vld [vmem:[%s12906_s26 + $0x498] sm:$0xff]  }
0x1eac   : > { %7929 = vmatpush1.bf16.msra.mxu1 %v10283_v17  ;;  %7972 = vmatpush1.bf16.msra.mxu0 %v10285_v19  ;;  %v11824_v17 = vld [vmem:[%s12906_s26 + $0x488] sm:$0xff]   ;;  %v11825_v19 = vld [vmem:[%s12906_s26 + $0x450] sm:$0xff]  }
0x1ead   : > { %7930 = vmatprep.subr.bf16.mxu1 %v10300_v20  ;;  %7973 = vmatprep.subr.bf16.mxu0 %v10302_v21  ;;  %v11826_v20 = vld [vmem:[%s12906_s26 + $0x4d0] sm:$0xff]  }
0x1eae   : > { %v11827_v21 = vld [vmem:[%s12906_s26 + $0x410] sm:$0xff]  }
0x1eb0   : > { %7931 = vmatpush1.bf16.msra.mxu1 %v10299_v46  ;;  %7974 = vmatpush1.bf16.msra.mxu0 %v10301_v37  ;;  %v11833_v46 = vld [vmem:[%s12906_s26 + $0x460] sm:$0xff]  }
0x1eb1   : > { %7932 = vmatprep.subr.bf16.mxu1 %v10316_v38  ;;  %7975 = vmatprep.subr.bf16.mxu0 %v10318_v62  ;;  %v11834_v37 = vld [vmem:[%s12906_s26 + $0x4e0] sm:$0xff]  }
0x1eb2   : > { %v11835_v38 = vld [vmem:[%s12906_s26 + $0x420] sm:$0xff]  }
0x1eb3   : > { %v11836_v62 = vld [vmem:[%s12906_s26 + $0x4a0] sm:$0xff]  }
0x1eb4   : > { %7933 = vmatpush1.bf16.msra.mxu1 %v10315_v31  ;;  %7976 = vmatpush1.bf16.msra.mxu0 %v10317_v36  ;;  %v11841_v31 = vld [vmem:[%s12906_s26 + $0x470] sm:$0xff]  }
0x1eb5   : > { %7934 = vmatprep.subr.bf16.mxu1 %v10332_v32  ;;  %7977 = vmatprep.subr.bf16.mxu0 %v10334_v40  ;;  %v11842_v36 = vld [vmem:[%s12906_s26 + $0x4f0] sm:$0xff]  }
0x1eb6   : > { %v11843_v32 = vld [vmem:[%s12906_s26 + $0x430] sm:$0xff]  }
0x1eb7   : > { %v11844_v40 = vld [vmem:[%s12906_s26 + $0x4b0] sm:$0xff]  }
0x1eb8   : > { %7935 = vmatpush1.bf16.msra.mxu1 %v10331_v4  ;;  %7978 = vmatpush1.bf16.msra.mxu0 %v10333_v48  ;;  %v11849_v4 = vld [vmem:[%s12906_s26 + $0x540] sm:$0xff]  }
0x1eb9   : > { %7936 = vmatprep.subr.bf16.mxu1 %v10348_v14  ;;  %7979 = vmatprep.subr.bf16.mxu0 %v10350_v50  ;;  %v11850_v48 = vld [vmem:[%s12906_s26 + $0x5c0] sm:$0xff]  }
0x1eba   : > { %v10251_v14 = vld [vmem:[%s12627_s25 + $0x85] ss:$8 sm:$0xf] }
0x1ebb   : > { %v10252_v50 = vld [vmem:[%s12627_s25 + $0x85] ss:$8 sm:$0xf0] }
0x1ebc   : > { %7937 = vmatpush1.bf16.msra.mxu1 %v10347_v41  ;;  %7980 = vmatpush1.bf16.msra.mxu0 %v10349_v60  ;;  %v13645_v54 = vor.u32 %v10252_v50, %v10251_v14  ;;  %v11870_v14 = vld [vmem:[%s12906_s26 + $0x5e8] sm:$0xff]  }
0x1ebd   : > { %7938 = vmatprep.subr.bf16.mxu1 %v10364_v56  ;;  %7981 = vmatprep.subr.bf16.mxu0 %v10366_v61  ;;  %v11871_v50 = vld [vmem:[%s12906_s26 + $0x528] sm:$0xff]  }
0x1ebe   : > { %v6951_v13 = vrot.slane %v13645_v54, %v12643_v47  ;;  %v6959_v57 = vrot.slane %v13645_v54, %v12651_v51  ;;  %v6955_v58 = vrot.slane %v13645_v54, %v12647_v49  ;;  %v6963_v41 = vrot.slane %v13645_v54, %v13065_v22 }
0x1ec0   : > { %7939 = vmatpush1.bf16.msra.mxu1 %v10363_v8  ;;  %7982 = vmatpush1.bf16.msra.mxu0 %v10365_v2 }
0x1ec1   : > { %7940 = vmatprep.subr.bf16.mxu1 %v10380_v15  ;;  %7983 = vmatprep.subr.bf16.mxu0 %v10382_v18 }
0x1ec4   : > { %7941 = vmatpush1.bf16.msra.mxu1 %v10379_v9  ;;  %7984 = vmatpush1.bf16.msra.mxu0 %v10381_v6 }
0x1ec5   : > { %11060 = vmatprep.subr.bf16.mxu1 %v11817_v28  ;;  %11082 = vmatprep.subr.bf16.mxu0 %v11818_v7 }
0x1ec7   : > { %7959 = vmatmul.mubr.bf16.vlgmr.msra.gmra.mrb[108].mxu1 %v13505_v12  ;;  %8002 = vmatmul.mubr.bf16.vlgmr.msra.gmra.mrb[72].mxu0 %v13505_v12  ;;  %v11829_v12 = vld [vmem:[%s12906_s26 + $0x458] sm:$0xff]  }
0x1ec8   : > { %11061 = vmatpush3.bf16.msra.mxu1 %v11819_v10  ;;  %11083 = vmatpush3.bf16.msra.mxu0 %v11820_v27 }
0x1ec9   : > { %11062 = vmatprep.subr.bf16.mxu1 %v11821_v11  ;;  %11084 = vmatprep.subr.bf16.mxu0 %v11822_v53 }
0x1ecc   : > { %11063 = vmatpush3.bf16.msra.mxu1 %v11823_v16  ;;  %11085 = vmatpush3.bf16.msra.mxu0 %v11824_v17 }
0x1ecd   : > { %11064 = vmatprep.subr.bf16.mxu1 %v11825_v19  ;;  %11086 = vmatprep.subr.bf16.mxu0 %v11826_v20 }
0x1ed0   : > { %11065 = vmatpush3.bf16.msra.mxu1 %v11827_v21  ;;  %11087 = vmatpush3.bf16.msra.mxu0 %v11828_v52 }
0x1ed1   : > { %11066 = vmatprep.subr.bf16.mxu1 %v11829_v12  ;;  %11088 = vmatprep.subr.bf16.mxu0 %v11830_v33 }
0x1ed4   : > { %11067 = vmatpush3.bf16.msra.mxu1 %v11831_v34  ;;  %11089 = vmatpush3.bf16.msra.mxu0 %v11832_v35  ;;  %v11851_v35 = vld [vmem:[%s12906_s26 + $0x500] sm:$0xff]  }
0x1ed5   : > { %11068 = vmatprep.subr.bf16.mxu1 %v11833_v46  ;;  %11090 = vmatprep.subr.bf16.mxu0 %v11834_v37  ;;  %v11852_v46 = vld [vmem:[%s12906_s26 + $0x580] sm:$0xff]   ;;  %v11853_v37 = vld [vmem:[%s12906_s26 + $0x548] sm:$0xff]  }
0x1ed8   : > { %11069 = vmatpush3.bf16.msra.mxu1 %v11835_v38  ;;  %11091 = vmatpush3.bf16.msra.mxu0 %v11836_v62  ;;  %v11854_v38 = vld [vmem:[%s12906_s26 + $0x5c8] sm:$0xff]  }
0x1ed9   : > { %11070 = vmatprep.subr.bf16.mxu1 %v11837_v39  ;;  %11092 = vmatprep.subr.bf16.mxu0 %v11838_v30  ;;  %v11855_v62 = vld [vmem:[%s12906_s26 + $0x508] sm:$0xff]   ;;  %v11857_v30 = vld [vmem:[%s12906_s26 + $0x550] sm:$0xff]  }
0x1eda   : > { %v11856_v39 = vld [vmem:[%s12906_s26 + $0x588] sm:$0xff]  }
0x1edc   : > { %11071 = vmatpush3.bf16.msra.mxu1 %v11839_v29  ;;  %11093 = vmatpush3.bf16.msra.mxu0 %v11840_v0  ;;  %v11858_v29 = vld [vmem:[%s12906_s26 + $0x5d0] sm:$0xff]  }
0x1edd   : > { %11072 = vmatprep.subr.bf16.mxu1 %v11841_v31  ;;  %11094 = vmatprep.subr.bf16.mxu0 %v11842_v36  ;;  %v11859_v0 = vld [vmem:[%s12906_s26 + $0x510] sm:$0xff]   ;;  %v11861_v36 = vld [vmem:[%s12906_s26 + $0x558] sm:$0xff]  }
0x1ede   : > { %v11860_v31 = vld [vmem:[%s12906_s26 + $0x590] sm:$0xff]  }
0x1ee0   : > { %11073 = vmatpush3.bf16.msra.mxu1 %v11843_v32  ;;  %11095 = vmatpush3.bf16.msra.mxu0 %v11844_v40  ;;  %v11862_v32 = vld [vmem:[%s12906_s26 + $0x5d8] sm:$0xff]  }
0x1ee1   : > { %11074 = vmatprep.subr.bf16.mxu1 %v11845_v43  ;;  %11096 = vmatprep.subr.bf16.mxu0 %v11846_v44  ;;  %v11863_v40 = vld [vmem:[%s12906_s26 + $0x518] sm:$0xff]   ;;  %v11865_v44 = vld [vmem:[%s12906_s26 + $0x560] sm:$0xff]  }
0x1ee2   : > { %v11864_v43 = vld [vmem:[%s12906_s26 + $0x598] sm:$0xff]  }
0x1ee4   : > { %11075 = vmatpush3.bf16.msra.mxu1 %v11847_v42  ;;  %11097 = vmatpush3.bf16.msra.mxu0 %v11848_v63  ;;  %v11866_v42 = vld [vmem:[%s12906_s26 + $0x5e0] sm:$0xff]  }
0x1ee5   : > { %11104 = vmatprep.subr.bf16.mxu1 %v11849_v4  ;;  %11126 = vmatprep.subr.bf16.mxu0 %v11850_v48  ;;  %v11867_v63 = vld [vmem:[%s12906_s26 + $0x520] sm:$0xff]   ;;  %v11869_v48 = vld [vmem:[%s12906_s26 + $0x568] sm:$0xff]  }
0x1ee6   : > { %v11868_v4 = vld [vmem:[%s12906_s26 + $0x5a0] sm:$0xff]  }
0x1f3a   : > { %v7702_v60 = vpop.f32.mrb[96].mxu1  ;;  %v7745_v56 = vpop.f32.mrb[60].mxu0 }
0x1f3b   : > { %v7703_v61 = vadd.f32 %v7702_v60, %v6951_v13  ;;  %v7746_v59 = vadd.f32 %v7745_v56, %v6959_v57  ;;  %v7704_v55 = vpop.f32.mrb[97].mxu1  ;;  %v7747_v3 = vpop.f32.mrb[61].mxu0  ;;  %v11874_v60 = vld [vmem:[%s12906_s26 + $0x5f0] sm:$0xff]   ;;  %v6971_v56 = vrot.slane %v13645_v54, %v13102_v25 }
0x1f3c   : > { %v7705_v1 = vadd.f32 %v7704_v55, %v6955_v58  ;;  %v7748_v8 = vadd.f32 %v7747_v3, %v6963_v41  ;;  %v7706_v2 = vpop.f32.mrb[98].mxu1  ;;  %v7749_v15 = vpop.f32.mrb[62].mxu0  ;;  %v11875_v3 = vld [vmem:[%s12906_s26 + $0x530] sm:$0xff]  }
0x1f3d   : > { %v7707_v18 = vadd.f32 %v7706_v2, %v6951_v13  ;;  %v7750_v9 = vadd.f32 %v7749_v15, %v6959_v57  ;;  %v7708_v6 = vpop.f32.mrb[99].mxu1  ;;  %v7751_v28 = vpop.f32.mrb[63].mxu0  ;;  %v8012_v27 = vmax.f32 %v7703_v61, 0.0  ;;  %v8014_v11 = vmax.f32 %v7746_v59, 0.0  ;;  %v11872_v13 = vld [vmem:[%s12906_s26 + $0x5a8] sm:$0xff]  }
0x1f3e   : > { %v7709_v7 = vadd.f32 %v7708_v6, %v6955_v58  ;;  %v7752_v10 = vadd.f32 %v7751_v28, %v6963_v41  ;;  %v8013_v17 = vmax.f32 %v7705_v1, 0.0  ;;  %v8015_v19 = vmax.f32 %v7748_v8, 0.0  ;;  %v11873_v41 = vld [vmem:[%s12906_s26 + $0x570] sm:$0xff]   ;;  %v11878_v6 = vld [vmem:[%s12906_s26 + $0x5f8] sm:$0xff]  }
0x1f3f   : > { %v8028_v53 = vmax.f32 %v7707_v18, 0.0  ;;  %v8030_v16 = vmax.f32 %v7750_v9, 0.0  ;;  %v6967_v57 = vrot.slane %v13645_v54, %v13096_v23  ;;  %v6975_v58 = vrot.slane %v13645_v54, %v13099_v24  ;;  %v11876_v1 = vld [vmem:[%s12906_s26 + $0x5b0] sm:$0xff]   ;;  %v11877_v9 = vld [vmem:[%s12906_s26 + $0x578] sm:$0xff]  }
0x1f40   : > { %v8029_v20 = vmax.f32 %v7709_v7, 0.0  ;;  %v8031_v21 = vmax.f32 %v7752_v10, 0.0  ;;  %v6979_v61 = vrot.slane %v13645_v54, %v13105_v26 }
0x1f41   : > { %v8301_v52 = vpack.c.bf16 %v8028_v53, %v8012_v27  ;;  %v8303_v12 = vpack.c.bf16 %v8030_v16, %v8014_v11 }
0x1f42   : > { %v8302_v33 = vpack.c.bf16 %v8029_v20, %v8013_v17  ;;  %v8304_v34 = vpack.c.bf16 %v8031_v21, %v8015_v19  ;;  %v11879_v20 = vld [vmem:[%s12906_s26 + $0x538] sm:$0xff]  }
0x1f43   : > { %v11880_v21 = vld [vmem:[%s12906_s26 + $0x5b8] sm:$0xff]  }
0x1f44   : > { %9118 = vmatprep.mubr.bf16.mxu1 %v8302_v33  ;;  %9159 = vmatprep.mubr.bf16.mxu0 %v8304_v34 }
0x1f45   : > { %9119 = vmatmul.mubr.bf16.vlgmr.msra.gmra.mrb[112].mxu1 %v8301_v52  ;;  %9160 = vmatmul.mubr.bf16.vlgmr.msra.gmra.mrb[76].mxu0 %v8303_v12 }
0x1f46   : > { %11105 = vmatpush3.bf16.msra.mxu1 %v11851_v35  ;;  %11127 = vmatpush3.bf16.msra.mxu0 %v11852_v46  ;;  %v11881_v35 = vld [vmem:[%s12906_s26 + $0x640] sm:$0xff]  }
0x1f47   : > { %11106 = vmatprep.subr.bf16.mxu1 %v11853_v37  ;;  %11128 = vmatprep.subr.bf16.mxu0 %v11854_v38  ;;  %v11882_v46 = vld [vmem:[%s12906_s26 + $0x6c0] sm:$0xff]  }
0x1f4a   : > { %11107 = vmatpush3.bf16.msra.mxu1 %v11855_v62  ;;  %11129 = vmatpush3.bf16.msra.mxu0 %v11856_v39 }
0x1f4b   : > { %11108 = vmatprep.subr.bf16.mxu1 %v11857_v30  ;;  %11130 = vmatprep.subr.bf16.mxu0 %v11858_v29 }
0x1f4e   : > { %11109 = vmatpush3.bf16.msra.mxu1 %v11859_v0  ;;  %11131 = vmatpush3.bf16.msra.mxu0 %v11860_v31 }
0x1f4f   : > { %11110 = vmatprep.subr.bf16.mxu1 %v11861_v36  ;;  %11132 = vmatprep.subr.bf16.mxu0 %v11862_v32  ;;  %v11883_v36 = vld [vmem:[%s12906_s26 + $0x600] sm:$0xff]  }
0x1f50   : > { %v11884_v32 = vld [vmem:[%s12906_s26 + $0x680] sm:$0xff]  }
0x1f52   : > { %11111 = vmatpush3.bf16.msra.mxu1 %v11863_v40  ;;  %11133 = vmatpush3.bf16.msra.mxu0 %v11864_v43  ;;  %v11885_v40 = vld [vmem:[%s12906_s26 + $0x648] sm:$0xff]  }
0x1f53   : > { %11112 = vmatprep.subr.bf16.mxu1 %v11865_v44  ;;  %11134 = vmatprep.subr.bf16.mxu0 %v11866_v42  ;;  %v11886_v43 = vld [vmem:[%s12906_s26 + $0x6c8] sm:$0xff]  }
0x1f54   : > { %v11887_v44 = vld [vmem:[%s12906_s26 + $0x608] sm:$0xff]  }
0x1f55   : > { %v11888_v42 = vld [vmem:[%s12906_s26 + $0x688] sm:$0xff]  }
0x1f56   : > { %11113 = vmatpush3.bf16.msra.mxu1 %v11867_v63  ;;  %11135 = vmatpush3.bf16.msra.mxu0 %v11868_v4  ;;  %v11889_v63 = vld [vmem:[%s12906_s26 + $0x650] sm:$0xff]  }
0x1f57   : > { %11114 = vmatprep.subr.bf16.mxu1 %v11869_v48  ;;  %11136 = vmatprep.subr.bf16.mxu0 %v11870_v14  ;;  %v11890_v4 = vld [vmem:[%s12906_s26 + $0x6d0] sm:$0xff]  }
0x1f58   : > { %v11891_v48 = vld [vmem:[%s12906_s26 + $0x610] sm:$0xff]  }
0x1f59   : > { %v11892_v14 = vld [vmem:[%s12906_s26 + $0x690] sm:$0xff]  }
0x1f5a   : > { %v7788_v59 = vpop.f32.mrb[100].mxu1  ;;  %v7831_v55 = vpop.f32.mrb[64].mxu0  ;;  %11115 = vmatpush3.bf16.msra.mxu1 %v11871_v50  ;;  %11137 = vmatpush3.bf16.msra.mxu0 %v11872_v13  ;;  %v11893_v50 = vld [vmem:[%s12906_s26 + $0x658] sm:$0xff]  }
0x1f5b   : > { %v7789_v8 = vadd.f32 %v7788_v59, %v6967_v57  ;;  %v7832_v2 = vadd.f32 %v7831_v55, %v6975_v58  ;;  %v7790_v15 = vpop.f32.mrb[101].mxu1  ;;  %v7833_v18 = vpop.f32.mrb[65].mxu0  ;;  %11116 = vmatprep.subr.bf16.mxu1 %v11873_v41  ;;  %11138 = vmatprep.subr.bf16.mxu0 %v11874_v60  ;;  %v11894_v13 = vld [vmem:[%s12906_s26 + $0x6d8] sm:$0xff]   ;;  %v11897_v41 = vld [vmem:[%s12906_s26 + $0x660] sm:$0xff]  }
0x1f5c   : > { %v7791_v28 = vadd.f32 %v7790_v15, %v6971_v56  ;;  %v7834_v7 = vadd.f32 %v7833_v18, %v6979_v61  ;;  %v7792_v10 = vpop.f32.mrb[102].mxu1  ;;  %v7835_v54 = vpop.f32.mrb[66].mxu0  ;;  %v11898_v60 = vld [vmem:[%s12906_s26 + $0x6e0] sm:$0xff]   ;;  %v11904_v15 = vld [vmem:[%s12906_s26 + $0x6a8] sm:$0xff]  }
0x1f5d   : > { %v7793_v27 = vadd.f32 %v7792_v10, %v6967_v57  ;;  %v7836_v11 = vadd.f32 %v7835_v54, %v6975_v58  ;;  %v7794_v53 = vpop.f32.mrb[103].mxu1  ;;  %v7837_v16 = vpop.f32.mrb[67].mxu0  ;;  %v8016_v52 = vmax.f32 %v7789_v8, 0.0  ;;  %v8018_v12 = vmax.f32 %v7832_v2, 0.0  ;;  %v11895_v57 = vld [vmem:[%s12906_s26 + $0x618] sm:$0xff]   ;;  %v11899_v59 = vld [vmem:[%s12906_s26 + $0x620] sm:$0xff]  }
0x1f5e   : > { %v7795_v17 = vadd.f32 %v7794_v53, %v6971_v56  ;;  %v7838_v19 = vadd.f32 %v7837_v16, %v6979_v61  ;;  %11117 = vmatpush3.bf16.msra.mxu1 %v11875_v3  ;;  %11139 = vmatpush3.bf16.msra.mxu0 %v11876_v1  ;;  %v8017_v37 = vmax.f32 %v7791_v28, 0.0  ;;  %v8019_v38 = vmax.f32 %v7834_v7, 0.0  ;;  %v11896_v58 = vld [vmem:[%s12906_s26 + $0x698] sm:$0xff]   ;;  %v11900_v55 = vld [vmem:[%s12906_s26 + $0x6a0] sm:$0xff]   ;;  %v11901_v3 = vld [vmem:[%s12906_s26 + $0x668] sm:$0xff]  }
0x1f5f   : > { %v8032_v33 = vmax.f32 %v7793_v27, 0.0  ;;  %v8034_v34 = vmax.f32 %v7836_v11, 0.0  ;;  %11118 = vmatprep.subr.bf16.mxu1 %v11877_v9  ;;  %11140 = vmatprep.subr.bf16.mxu0 %v11878_v6  ;;  %v10253_v56 = vld [vmem:[%s12627_s25 + $0xc5] ss:$8 sm:$0xf] }
0x1f60   : > { %v8033_v62 = vmax.f32 %v7795_v17, 0.0  ;;  %v8035_v39 = vmax.f32 %v7838_v19, 0.0  ;;  %v10254_v61 = vld [vmem:[%s12627_s25 + $0xc5] ss:$8 sm:$0xf0] }
0x1f61   : > { %v8305_v30 = vpack.c.bf16 %v8032_v33, %v8016_v52  ;;  %v8307_v29 = vpack.c.bf16 %v8034_v34, %v8018_v12  ;;  %v11902_v1 = vld [vmem:[%s12906_s26 + $0x6e8] sm:$0xff]   ;;  %v13717_v8 = vor.u32 %v10254_v61, %v10253_v56  ;;  %v11905_v6 = vld [vmem:[%s12906_s26 + $0x670] sm:$0xff]  }
0x1f62   : > { %v8306_v0 = vpack.c.bf16 %v8033_v62, %v8017_v37  ;;  %v8308_v31 = vpack.c.bf16 %v8035_v39, %v8019_v38  ;;  %11119 = vmatpush3.bf16.msra.mxu1 %v11879_v20  ;;  %11141 = vmatpush3.bf16.msra.mxu0 %v11880_v21  ;;  %v11903_v2 = vld [vmem:[%s12906_s26 + $0x628] sm:$0xff]   ;;  %v11906_v28 = vld [vmem:[%s12906_s26 + $0x6f0] sm:$0xff]   ;;  %v11909_v20 = vld [vmem:[%s12906_s26 + $0x678] sm:$0xff]  }
0x1f63   : > { %11148 = vmatprep.subr.bf16.mxu1 %v11881_v35  ;;  %11170 = vmatprep.subr.bf16.mxu0 %v11882_v46  ;;  %v6983_v18 = vrot.slane %v13717_v8, %v12643_v47  ;;  %v6991_v9 = vrot.slane %v13717_v8, %v12651_v51  ;;  %v6987_v7 = vrot.slane %v13717_v8, %v12647_v49  ;;  %v11907_v11 = vld [vmem:[%s12906_s26 + $0x630] sm:$0xff]   ;;  %v11910_v21 = vld [vmem:[%s12906_s26 + $0x6f8] sm:$0xff]   ;;  %v11920_v56 = vld [vmem:[%s12906_s26 + $0x788] sm:$0xff]  }
0x1f64   : > { %9200 = vmatprep.mubr.bf16.mxu1 %v8306_v0  ;;  %9241 = vmatprep.mubr.bf16.mxu0 %v8308_v31  ;;  %v6995_v10 = vrot.slane %v13717_v8, %v13065_v22  ;;  %v11908_v53 = vld [vmem:[%s12906_s26 + $0x6b0] sm:$0xff]   ;;  %v11911_v39 = vld [vmem:[%s12906_s26 + $0x638] sm:$0xff]  }
0x1f65   : > { %9201 = vmatmul.mubr.bf16.vlgmr.msra.gmra.mrb[116].mxu1 %v8305_v30  ;;  %9242 = vmatmul.mubr.bf16.vlgmr.msra.gmra.mrb[80].mxu0 %v8307_v29  ;;  %v11912_v30 = vld [vmem:[%s12906_s26 + $0x6b8] sm:$0xff]   ;;  %v11921_v61 = vld [vmem:[%s12906_s26 + $0x750] sm:$0xff]  }
0x1f66   : > { %11149 = vmatpush3.bf16.msra.mxu1 %v11883_v36  ;;  %11171 = vmatpush3.bf16.msra.mxu0 %v11884_v32  ;;  %v11913_v32 = vld [vmem:[%s12906_s26 + $0x740] sm:$0xff]  }
0x1f67   : > { %11150 = vmatprep.subr.bf16.mxu1 %v11885_v40  ;;  %11172 = vmatprep.subr.bf16.mxu0 %v11886_v43  ;;  %v11914_v40 = vld [vmem:[%s12906_s26 + $0x7c0] sm:$0xff]  }
0x1f6a   : > { %11151 = vmatpush3.bf16.msra.mxu1 %v11887_v44  ;;  %11173 = vmatpush3.bf16.msra.mxu0 %v11888_v42 }
0x1f6b   : > { %11152 = vmatprep.subr.bf16.mxu1 %v11889_v63  ;;  %11174 = vmatprep.subr.bf16.mxu0 %v11890_v4 }
0x1f6e   : > { %11153 = vmatpush3.bf16.msra.mxu1 %v11891_v48  ;;  %11175 = vmatpush3.bf16.msra.mxu0 %v11892_v14 }
0x1f6f   : > { %11154 = vmatprep.subr.bf16.mxu1 %v11893_v50  ;;  %11176 = vmatprep.subr.bf16.mxu0 %v11894_v13  ;;  %v11915_v13 = vld [vmem:[%s12906_s26 + $0x700] sm:$0xff]  }
0x1f72   : > { %11155 = vmatpush3.bf16.msra.mxu1 %v11895_v57  ;;  %11177 = vmatpush3.bf16.msra.mxu0 %v11896_v58  ;;  %v11916_v57 = vld [vmem:[%s12906_s26 + $0x780] sm:$0xff]   ;;  %v11917_v58 = vld [vmem:[%s12906_s26 + $0x748] sm:$0xff]  }
0x1f73   : > { %11156 = vmatprep.subr.bf16.mxu1 %v11897_v41  ;;  %11178 = vmatprep.subr.bf16.mxu0 %v11898_v60  ;;  %v11918_v41 = vld [vmem:[%s12906_s26 + $0x7c8] sm:$0xff]  }
0x1f74   : > { %v11919_v60 = vld [vmem:[%s12906_s26 + $0x708] sm:$0xff]  }
0x1f76   : > { %11157 = vmatpush3.bf16.msra.mxu1 %v11899_v59  ;;  %11179 = vmatpush3.bf16.msra.mxu0 %v11900_v55  ;;  %v11922_v59 = vld [vmem:[%s12906_s26 + $0x7d0] sm:$0xff]  }
0x1f77   : > { %11158 = vmatprep.subr.bf16.mxu1 %v11901_v3  ;;  %11180 = vmatprep.subr.bf16.mxu0 %v11902_v1  ;;  %v11923_v55 = vld [vmem:[%s12906_s26 + $0x710] sm:$0xff]   ;;  %v11925_v1 = vld [vmem:[%s12906_s26 + $0x758] sm:$0xff]  }
0x1f78   : > { %v11924_v3 = vld [vmem:[%s12906_s26 + $0x790] sm:$0xff]  }
0x1f7a   : > { %v7874_v54 = vpop.f32.mrb[104].mxu1  ;;  %v7917_v27 = vpop.f32.mrb[68].mxu0  ;;  %11159 = vmatpush3.bf16.msra.mxu1 %v11903_v2  ;;  %11181 = vmatpush3.bf16.msra.mxu0 %v11904_v15  ;;  %v11926_v2 = vld [vmem:[%s12906_s26 + $0x7d8] sm:$0xff]  }
0x1f7b   : > { %v7875_v16 = vadd.f32 %v7874_v54, %v6983_v18  ;;  %v7918_v17 = vadd.f32 %v7917_v27, %v6991_v9  ;;  %v7876_v19 = vpop.f32.mrb[105].mxu1  ;;  %v7919_v51 = vpop.f32.mrb[69].mxu0  ;;  %11160 = vmatprep.subr.bf16.mxu1 %v11905_v6  ;;  %11182 = vmatprep.subr.bf16.mxu0 %v11906_v28  ;;  %v11927_v15 = vld [vmem:[%s12906_s26 + $0x718] sm:$0xff]   ;;  %v11930_v6 = vld [vmem:[%s12906_s26 + $0x7e0] sm:$0xff]   ;;  %v11934_v54 = vld [vmem:[%s12906_s26 + $0x7e8] sm:$0xff]  }
0x1f7c   : > { %v7877_v52 = vadd.f32 %v7876_v19, %v6987_v7  ;;  %v7920_v12 = vadd.f32 %v7919_v51, %v6995_v10  ;;  %v7878_v33 = vpop.f32.mrb[106].mxu1  ;;  %v7921_v22 = vpop.f32.mrb[70].mxu0  ;;  %v11931_v28 = vld [vmem:[%s12906_s26 + $0x720] sm:$0xff]   ;;  %v11935_v27 = vld [vmem:[%s12906_s26 + $0x728] sm:$0xff]   ;;  %v11938_v19 = vld [vmem:[%s12906_s26 + $0x7f0] sm:$0xff]   ;;  %v7003_v51 = vrot.slane %v13717_v8, %v13102_v25 }
0x1f7d   : > { %v7879_v34 = vadd.f32 %v7878_v33, %v6983_v18  ;;  %v7922_v35 = vadd.f32 %v7921_v22, %v6991_v9  ;;  %v7880_v46 = vpop.f32.mrb[107].mxu1  ;;  %v7923_v37 = vpop.f32.mrb[71].mxu0  ;;  %v8020_v29 = vmax.f32 %v7875_v16, 0.0  ;;  %v8022_v0 = vmax.f32 %v7918_v17, 0.0  ;;  %v11928_v18 = vld [vmem:[%s12906_s26 + $0x798] sm:$0xff]   ;;  %v11929_v9 = vld [vmem:[%s12906_s26 + $0x760] sm:$0xff]  }
0x1f7e   : > { %v7881_v38 = vadd.f32 %v7880_v46, %v6987_v7  ;;  %v7924_v62 = vadd.f32 %v7923_v37, %v6995_v10  ;;  %11161 = vmatpush3.bf16.msra.mxu1 %v11907_v11  ;;  %11183 = vmatpush3.bf16.msra.mxu0 %v11908_v53  ;;  %v8021_v43 = vmax.f32 %v7877_v52, 0.0  ;;  %v8023_v44 = vmax.f32 %v7920_v12, 0.0  ;;  %v11932_v7 = vld [vmem:[%s12906_s26 + $0x7a0] sm:$0xff]   ;;  %v11933_v10 = vld [vmem:[%s12906_s26 + $0x768] sm:$0xff]   ;;  %v11937_v17 = vld [vmem:[%s12906_s26 + $0x770] sm:$0xff]  }
0x1f7f   : > { %v8036_v31 = vmax.f32 %v7879_v34, 0.0  ;;  %v8038_v36 = vmax.f32 %v7922_v35, 0.0  ;;  %11162 = vmatprep.subr.bf16.mxu1 %v11909_v20  ;;  %11184 = vmatprep.subr.bf16.mxu0 %v11910_v21  ;;  %v11936_v11 = vld [vmem:[%s12906_s26 + $0x7a8] sm:$0xff]   ;;  %v6999_v53 = vrot.slane %v13717_v8, %v13096_v23  ;;  %v7007_v16 = vrot.slane %v13717_v8, %v13099_v24  ;;  %v11939_v12 = vld [vmem:[%s12906_s26 + $0x730] sm:$0xff]   ;;  %v11941_v35 = vld [vmem:[%s12906_s26 + $0x778] sm:$0xff]  }
0x1f80   : > { %v8037_v42 = vmax.f32 %v7881_v38, 0.0  ;;  %v8039_v63 = vmax.f32 %v7924_v62, 0.0  ;;  %v7011_v20 = vrot.slane %v13717_v8, %v13105_v26  ;;  %v11940_v33 = vld [vmem:[%s12906_s26 + $0x7b0] sm:$0xff]   ;;  %v11942_v46 = vld [vmem:[%s12906_s26 + $0x7f8] sm:$0xff]  }
0x1f81   : > { %v8309_v4 = vpack.c.bf16 %v8036_v31, %v8020_v29  ;;  %v8311_v48 = vpack.c.bf16 %v8038_v36, %v8022_v0  ;;  %v11943_v31 = vld [vmem:[%s12906_s26 + $0x738] sm:$0xff]  }
0x1f82   : > { %v8310_v14 = vpack.c.bf16 %v8037_v42, %v8021_v43  ;;  %v8312_v50 = vpack.c.bf16 %v8039_v63, %v8023_v44  ;;  %11163 = vmatpush3.bf16.msra.mxu1 %v11911_v39  ;;  %11185 = vmatpush3.bf16.msra.mxu0 %v11912_v30  ;;  %v11944_v36 = vld [vmem:[%s12906_s26 + $0x7b8] sm:$0xff]  }
0x1f83   : > { %11192 = vmatprep.subr.bf16.mxu1 %v11913_v32  ;;  %11214 = vmatprep.subr.bf16.mxu0 %v11914_v40 }
0x1f84   : > { %9282 = vmatprep.mubr.bf16.mxu1 %v8310_v14  ;;  %9323 = vmatprep.mubr.bf16.mxu0 %v8312_v50 }
0x1f85   : > { %9283 = vmatmul.mubr.bf16.vlgmr.msra.gmra.mrb[120].mxu1 %v8309_v4  ;;  %9324 = vmatmul.mubr.bf16.vlgmr.msra.gmra.mrb[84].mxu0 %v8311_v48 }
0x1f86   : > { %11193 = vmatpush3.bf16.msra.mxu1 %v11915_v13  ;;  %11215 = vmatpush3.bf16.msra.mxu0 %v11916_v57 }
0x1f87   : > { %11194 = vmatprep.subr.bf16.mxu1 %v11917_v58  ;;  %11216 = vmatprep.subr.bf16.mxu0 %v11918_v41 }
0x1f8a   : > { %11195 = vmatpush3.bf16.msra.mxu1 %v11919_v60  ;;  %11217 = vmatpush3.bf16.msra.mxu0 %v11920_v56  ;;  %v8317_v60 = vld [vmem:[%s12627_s25 + $0x86] ss:$0 sm:$0xff] }
0x1f8b   : > { %11196 = vmatprep.subr.bf16.mxu1 %v11921_v61  ;;  %11218 = vmatprep.subr.bf16.mxu0 %v11922_v59 }
0x1f8e   : > { %11197 = vmatpush3.bf16.msra.mxu1 %v11923_v55  ;;  %11219 = vmatpush3.bf16.msra.mxu0 %v11924_v3 }
0x1f8f   : > { %11198 = vmatprep.subr.bf16.mxu1 %v11925_v1  ;;  %11220 = vmatprep.subr.bf16.mxu0 %v11926_v2 }
0x1f92   : > { %11199 = vmatpush3.bf16.msra.mxu1 %v11927_v15  ;;  %11221 = vmatpush3.bf16.msra.mxu0 %v11928_v18 }
0x1f93   : > { %11200 = vmatprep.subr.bf16.mxu1 %v11929_v9  ;;  %11222 = vmatprep.subr.bf16.mxu0 %v11930_v6 }
0x1f96   : > { %11201 = vmatpush3.bf16.msra.mxu1 %v11931_v28  ;;  %11223 = vmatpush3.bf16.msra.mxu0 %v11932_v7 }
0x1f97   : > { %11202 = vmatprep.subr.bf16.mxu1 %v11933_v10  ;;  %11224 = vmatprep.subr.bf16.mxu0 %v11934_v54 }
0x1f9a   : > { %v7960_v21 = vpop.f32.mrb[108].mxu1  ;;  %v8003_v52 = vpop.f32.mrb[72].mxu0  ;;  %11203 = vmatpush3.bf16.msra.mxu1 %v11935_v27  ;;  %11225 = vmatpush3.bf16.msra.mxu0 %v11936_v11 }
0x1f9b   : > { %v7961_v23 = vadd.f32 %v7960_v21, %v6999_v53  ;;  %v8004_v22 = vadd.f32 %v8003_v52, %v7007_v16  ;;  %v7962_v34 = vpop.f32.mrb[109].mxu1  ;;  %v8005_v24 = vpop.f32.mrb[73].mxu0  ;;  %11204 = vmatprep.subr.bf16.mxu1 %v11937_v17  ;;  %11226 = vmatprep.subr.bf16.mxu0 %v11938_v19 }
0x1f9c   : > { %v7963_v25 = vadd.f32 %v7962_v34, %v7003_v51  ;;  %v8006_v37 = vadd.f32 %v8005_v24, %v7011_v20  ;;  %v7964_v38 = vpop.f32.mrb[110].mxu1  ;;  %v8007_v26 = vpop.f32.mrb[74].mxu0 }
0x1f9d   : > { %v7965_v8 = vadd.f32 %v7964_v38, %v6999_v53  ;;  %v8008_v62 = vadd.f32 %v8007_v26, %v7007_v16  ;;  %v7966_v39 = vpop.f32.mrb[111].mxu1  ;;  %v8009_v30 = vpop.f32.mrb[75].mxu0  ;;  %v8024_v32 = vmax.f32 %v7961_v23, 0.0  ;;  %v8026_v40 = vmax.f32 %v8004_v22, 0.0 }
0x1f9e   : > { %v7967_v29 = vadd.f32 %v7966_v39, %v7003_v51  ;;  %v8010_v0 = vadd.f32 %v8009_v30, %v7011_v20  ;;  %11205 = vmatpush3.bf16.msra.mxu1 %v11939_v12  ;;  %11227 = vmatpush3.bf16.msra.mxu0 %v11940_v33  ;;  %v8025_v42 = vmax.f32 %v7963_v25, 0.0  ;;  %v8027_v63 = vmax.f32 %v8006_v37, 0.0 }
0x1f9f   : > { %v8040_v43 = vmax.f32 %v7965_v8, 0.0  ;;  %v8042_v44 = vmax.f32 %v8008_v62, 0.0  ;;  %11206 = vmatprep.subr.bf16.mxu1 %v11941_v35  ;;  %11228 = vmatprep.subr.bf16.mxu0 %v11942_v46 }
0x1fa0   : > { %v8041_v4 = vmax.f32 %v7967_v29, 0.0  ;;  %v8043_v48 = vmax.f32 %v8010_v0, 0.0 }
0x1fa1   : > { %v8313_v14 = vpack.c.bf16 %v8040_v43, %v8024_v32  ;;  %v8315_v50 = vpack.c.bf16 %v8042_v44, %v8026_v40 }
0x1fa2   : > { %v8314_v13 = vpack.c.bf16 %v8041_v4, %v8025_v42  ;;  %v8316_v57 = vpack.c.bf16 %v8043_v48, %v8027_v63  ;;  %11207 = vmatpush3.bf16.msra.mxu1 %v11943_v31  ;;  %11229 = vmatpush3.bf16.msra.mxu0 %v11944_v36 }
0x1fa4   : > { %9364 = vmatprep.mubr.bf16.mxu1 %v8314_v13  ;;  %9405 = vmatprep.mubr.bf16.mxu0 %v8316_v57 }
0x1fa5   : > { %9365 = vmatmul.mubr.bf16.vlgmr.msra.gmra.mrb[124].mxu1 %v8313_v14  ;;  %9406 = vmatmul.mubr.bf16.vlgmr.msra.gmra.mrb[88].mxu0 %v8315_v50 }
0x2018   : > { %v11076_v58 = vpop.f32.mrb[112].mxu1  ;;  %v11098_v41 = vpop.f32.mrb[76].mxu0 }
0x2019   : > { %v11077_v56 = vpop.f32.mrb[113].mxu1  ;;  %v11099_v61 = vpop.f32.mrb[77].mxu0 }
0x201a   : > { %v11078_v59 = vadd.f32 %v11077_v56, %v11076_v58  ;;  %v11100_v55 = vadd.f32 %v11099_v61, %v11098_v41  ;;  %v11079_v3 = vpop.f32.mrb[114].mxu1  ;;  %v11101_v1 = vpop.f32.mrb[78].mxu0 }
0x201b   : > { %v11080_v2 = vpop.f32.mrb[115].mxu1  ;;  %v11102_v15 = vpop.f32.mrb[79].mxu0 }
0x201c   : > { %v9121_v18 = vadd.f32 %v11078_v59, %v8317_v60  ;;  %v11081_v9 = vadd.f32 %v11080_v2, %v11079_v3  ;;  %v11103_v6 = vadd.f32 %v11102_v15, %v11101_v1 }
0x201e   : > { %v9162_v28 = vadd.f32 %v11100_v55, %v9121_v18  ;;  %v9124_v7 = vadd.f32 %v11081_v9, %v8317_v60 }
0x2020   : > { %v9165_v10 = vadd.f32 %v11103_v6, %v9124_v7  ;;  %v540_v7 = vld [vmem:[%s12689_s11 + $0x2] sm:$0x3] }
0x2038   : > { %v11120_v54 = vpop.f32.mrb[116].mxu1  ;;  %v11142_v27 = vpop.f32.mrb[80].mxu0 }
0x2039   : > { %v11121_v11 = vpop.f32.mrb[117].mxu1  ;;  %v11143_v53 = vpop.f32.mrb[81].mxu0 }
0x203a   : > { %v11122_v16 = vadd.f32 %v11121_v11, %v11120_v54  ;;  %v11144_v17 = vadd.f32 %v11143_v53, %v11142_v27  ;;  %v11123_v19 = vpop.f32.mrb[118].mxu1  ;;  %v11145_v51 = vpop.f32.mrb[82].mxu0 }
0x203b   : > { %v11124_v20 = vpop.f32.mrb[119].mxu1  ;;  %v11146_v21 = vpop.f32.mrb[83].mxu0 }
0x203c   : > { %v9203_v52 = vadd.f32 %v11122_v16, %v9162_v28  ;;  %v11125_v12 = vadd.f32 %v11124_v20, %v11123_v19  ;;  %v11147_v33 = vadd.f32 %v11146_v21, %v11145_v51  ;;  %v9416_v19 = vld [vmem:[%s12627_s25 + $0x87] ss:$0 sm:$0xff]  ;;  %v9417_v21 = vld [vmem:[%s12627_s25 + $0x100] ss:$0 sm:$0xff] }
0x203e   : > { %v9244_v23 = vadd.f32 %v11144_v17, %v9203_v52  ;;  %v9206_v22 = vadd.f32 %v11125_v12, %v9165_v10  ;;  %v9454_v10 = vrot.slane %v540_v7, %v12647_v49 }
0x2040   : > { %v9247_v34 = vadd.f32 %v11147_v33, %v9206_v22 }
0x2058   : > { %v11164_v24 = vpop.f32.mrb[120].mxu1  ;;  %v11186_v35 = vpop.f32.mrb[84].mxu0 }
0x2059   : > { %v11165_v46 = vpop.f32.mrb[121].mxu1  ;;  %v11187_v25 = vpop.f32.mrb[85].mxu0 }
0x205a   : > { %v11166_v37 = vadd.f32 %v11165_v46, %v11164_v24  ;;  %v11188_v38 = vadd.f32 %v11187_v25, %v11186_v35  ;;  %v11167_v26 = vpop.f32.mrb[122].mxu1  ;;  %v11189_v8 = vpop.f32.mrb[86].mxu0 }
0x205b   : > { %v11168_v62 = vpop.f32.mrb[123].mxu1  ;;  %v11190_v39 = vpop.f32.mrb[87].mxu0 }
0x205c   : > { %v9285_v30 = vadd.f32 %v11166_v37, %v9244_v23  ;;  %v11169_v29 = vadd.f32 %v11168_v62, %v11167_v26  ;;  %v11191_v0 = vadd.f32 %v11190_v39, %v11189_v8 }
0x205e   : > { %v9326_v31 = vadd.f32 %v11188_v38, %v9285_v30  ;;  %v9288_v36 = vadd.f32 %v11169_v29, %v9247_v34 }
0x2060   : > { %v9329_v32 = vadd.f32 %v11191_v0, %v9288_v36 }
0x2078   : > { %v11208_v40 = vpop.f32.mrb[124].mxu1  ;;  %v11230_v43 = vpop.f32.mrb[88].mxu0 }
0x2079   : > { %v11209_v44 = vpop.f32.mrb[125].mxu1  ;;  %v11231_v42 = vpop.f32.mrb[89].mxu0 }
0x207a   : > { %v11210_v63 = vadd.f32 %v11209_v44, %v11208_v40  ;;  %v11232_v4 = vadd.f32 %v11231_v42, %v11230_v43  ;;  %v11211_v48 = vpop.f32.mrb[126].mxu1  ;;  %v11233_v14 = vpop.f32.mrb[90].mxu0 }
0x207b   : > { %v11212_v50 = vpop.f32.mrb[127].mxu1  ;;  %v11234_v13 = vpop.f32.mrb[91].mxu0 }
0x207c   : > { %v9367_v57 = vadd.f32 %v11210_v63, %v9326_v31  ;;  %v11213_v58 = vadd.f32 %v11212_v50, %v11211_v48  ;;  %v11235_v41 = vadd.f32 %v11234_v13, %v11233_v14 }
0x207e   : > { %v9408_v60 = vadd.f32 %v11232_v4, %v9367_v57  ;;  %v9370_v56 = vadd.f32 %v11213_v58, %v9329_v32 }
0x2080   : > { %v9411_v61 = vadd.f32 %v11235_v41, %v9370_v56  ;;  %v9414_v59 = vadd.f32 %v9408_v60, %v13499_v45  ;;  %v9447_v45 = vrot.slane %v540_v7, %v12643_v47 }
0x2082   : > { %9418 = vadd.xlane.f32.xlu0 %v9414_v59  ;;  %v9415_v55 = vadd.f32 %v9411_v61, %v13501_v5 }
0x2084   : > { %9420 = vadd.xlane.f32.xlu1 %v9415_v55 }
0x210f   : > { %v9419_v3 = vpop.xlane.xlu0 %9418 }
0x2110   : > { %v9422_v1 = vmul.f32 0.0078125, %v9419_v3 }
0x2111   : > { %v9421_v2 = vpop.xlane.xlu1 %9420 }
0x2112   : > { %v9424_v15 = vsub.f32 %v9414_v59, %v9422_v1  ;;  %v9423_v18 = vmul.f32 0.0078125, %v9421_v2 }
0x2114   : > { %v9425_v9 = vsub.f32 %v9415_v55, %v9423_v18  ;;  %v9426_v6 = vmul.f32 %v9424_v15, %v9424_v15 }
0x2116   : > { %9428 = vadd.xlane.f32.xlu0 %v9426_v6  ;;  %v9427_v28 = vmul.f32 %v9425_v9, %v9425_v9 }
0x2118   : > { %9430 = vadd.xlane.f32.xlu1 %v9427_v28 }
0x2129   : > { %9456 = vbcast.lane.b32.xlu1 %v9454_v10, 256 }
0x212c   : > { %9449 = vbcast.lane.b32.xlu0 %v9447_v45, 256 }
0x21a3   : > { %v9429_v5 = vpop.xlane.xlu0 %9428 }
0x21a4   : > { %v9432_v54 = vmul.f32 0.0078125, %v9429_v5 }
0x21a5   : > { %v9431_v27 = vpop.xlane.xlu1 %9430 }
0x21a6   : > { %v9434_v11 = vadd.f32 1e-05, %v9432_v54  ;;  %v9433_v53 = vmul.f32 0.0078125, %v9431_v27 }
0x21a7   : > { %v9450_v12 = vpop.permute.xlu0 %9449 }
0x21a8   : > { %12021 = vrsqrt.f32 %v9434_v11  ;;  %v9435_v16 = vadd.f32 1e-05, %v9433_v53 }
0x21a9   : > { %v9457_v23 = vpop.permute.xlu1 %9456 }
0x21aa   : > { %12023 = vrsqrt.f32 %v9435_v16 }
0x21b2   : > { %v12022_v17 = vpop.eup %12021 }
0x21b3   : > { %v9438_v51 = vmul.f32 %v12022_v17, %v9424_v15 }
0x21b4   : > { %v12024_v20 = vpop.eup %12023 }
0x21b5   : > { %v9440_v52 = vmul.f32 %v9438_v51, %v9416_v19  ;;  %v9439_v49 = vmul.f32 %v12024_v20, %v9425_v9 }
0x21b7   : > { %v9442_v47 = vadd.f32 %v9440_v52, %v9417_v21  ;;  %v9441_v33 = vmul.f32 %v9439_v49, %v9416_v19 }
0x21b9   : > { %v9458_v22 = vmul.f32 %v9450_v12, %v9442_v47  ;;  %v9443_v34 = vadd.f32 %v9441_v33, %v9417_v21 }
0x21bb   : > { %v9460_v24 = vrot.slane %v9458_v22, 4  ;;  %v9459_v35 = vmul.f32 %v9457_v23, %v9443_v34 }
0x21bd   : > { %v9461_v46 = vadd.f32 %v9460_v24, %v9458_v22  ;;  %v9466_v25 = vrot.slane %v9459_v35, 4 }
0x21bf   : > { %v9462_v37 = vrot.slane %v9461_v46, 2  ;;  %v9467_v38 = vadd.f32 %v9466_v25, %v9459_v35 }
0x21c1   : > { %v9463_v26 = vadd.f32 %v9462_v37, %v9461_v46  ;;  %v9468_v8 = vrot.slane %v9467_v38, 2 }
0x21c3   : > { %v9464_v62 = vrot.slane %v9463_v26, 1  ;;  %v9469_v39 = vadd.f32 %v9468_v8, %v9467_v38 }
0x21c5   : > { %v9470_v30 = vrot.slane %v9469_v39, 1  ;;  %v9465_v29 = vadd.f32 %v9464_v62, %v9463_v26 }
0x21c7   : > { %v9471_v0 = vadd.f32 %v9470_v30, %v9469_v39 }
0x21c9   : > { %v9475_v31 = vsel %vm9474_vm5, %v9471_v0, %v9465_v29 }
0x21ca   : > { %9477 = vst [vmem:[%s537_s20] sm:$0x3] %v9475_v31 }
0x21cb PF: > { %s13834_s30 = sld [smem:[#allocation14_spill]]  ;;  %s13835_s8 = sld [smem:[#allocation13_spill]] }
0x21cc   : > { %s13836_s29 = sld [smem:[#allocation15_spill]]  ;;  %s13837_s27 = smov %s12209_s28 }
0x21d1   : > { %p24_p4 = scmp.ge.s32.totalorder %s13834_s30, 4   ;;  %s13838_s28 = smov %s13835_s8 }
0x21d3   :  { %26 = sbr.rel (!%p24_p4) target bundleno = 12 (0xc), region = 159 }
0x21da   :  { %9497 = vsyncpa [#allocation3], 1 }
0x21db   :  { %9499 = vsyncpa [#allocation3 + $0x1], 1 }
0x21dc   :  { %9500 = vsyncpa [#allocation5], 1 }
0x21dd   :  { %9502 = vsyncpa [#allocation5 + $0x1], 1 }
0x21de   :  { %9503 = vsyncpa [#allocation8], 1 }
0x21df   :  { %9505 = vsyncpa [#allocation8 + $0x1], 1 }

</bundles_post_ra>
